<compile_context>
chip_gen: v5e
topology: v5e:2x2
jax: 0.10.0
libtpu: 0.0.40
codegen_flags: <defaults>
</compile_context>

<pallas_src>
import numpy as np

import jax
import jax.numpy as jnp
from jax.experimental import pallas as pl
from jax.experimental.pallas import tpu as pltpu

_BN_EPS = 1e-5          # nn.BatchNorm2d default eps
_LEAKY_SLOPE = 0.2      # nn.LeakyReLU(0.2) in the reference Decoder


# ---------------------------------------------------------------------------
# Host-side (NumPy, float64) transcription of the PyTorch ops.  Used only for
# (a) the one-time weight fold in prepare_params() and (b) the self-check.
# ---------------------------------------------------------------------------
def _np_upsample2x(x):
    # UpsamplingNearest2d(scale_factor=2) on NCHW: out[h, w] = in[h // 2, w // 2]
    return x.repeat(2, axis=2).repeat(2, axis=3)


def _np_reppad1(x):
    # ReplicationPad2d(1) on NCHW
    return np.pad(x, ((0, 0), (0, 0), (1, 1), (1, 1)), mode="edge")


def _np_conv2d_valid(x, w, b):
    # x:(N,Cin,H,W)  w:(Cout,Cin,KH,KW)  b:(Cout,) -> (N,Cout,Ho,Wo); stride 1, no pad
    N, Cin, H, W = x.shape
    Cout, _, KH, KW = w.shape
    Ho, Wo = H - KH + 1, W - KW + 1
    y = np.zeros((N, Cout, Ho, Wo), dtype=x.dtype)
    for kh in range(KH):
        for kw in range(KW):
            patch = x[:, :, kh:kh + Ho, kw:kw + Wo]            # (N, Cin, Ho, Wo)
            y += np.einsum("nchw,oc->nohw", patch, w[:, :, kh, kw])
    return y + b[None, :, None, None]


def _stage1_affine_np(z, p):
    # d1 pre-activation: (N, z_dim) -> (N, C*8*8)
    return z @ p["d1_w"].T + p["d1_b"][None, :]


def _stage2_affine_np(h_flat, p, channels):
    # upsample1 -> pd1 -> conv1 -> bn1(eval): (N, C*8*8) -> (N, C*15*15)
    x = h_flat.reshape(-1, channels, 8, 8)                     # torch .view(-1, C, 8, 8)
    x = _np_reppad1(_np_upsample2x(x))                         # (N, C, 18, 18)
    y = _np_conv2d_valid(x, p["conv1_w"], p["conv1_b"])        # (N, C, 15, 15)
    scale = p["bn_gamma"] / np.sqrt(p["bn_var"] + _BN_EPS)
    shift = p["bn_beta"] - p["bn_mean"] * scale
    y = y * scale[None, :, None, None] + shift[None, :, None, None]
    return y.reshape(y.shape[0], -1)


def _stage3_affine_np(y_flat, p, channels):
    # upsample2 -> pd2 -> conv2 -> flatten: (N, C*15*15) -> (N, 900)
    x = y_flat.reshape(-1, channels, 15, 15)
    x = _np_reppad1(_np_upsample2x(x))                         # (N, C, 32, 32)
    y = _np_conv2d_valid(x, p["conv2_w"], p["conv2_b"])        # (N, 1, 30, 30)
    return y.reshape(y.shape[0], -1)


def reference_forward_np(z, params, channels):
    # Straight NumPy float64 transcription of Decoder.forward (eval mode).
    p = {k: np.asarray(v, np.float64) for k, v in params.items()}
    z = np.asarray(z, np.float64)
    h = np.maximum(_stage1_affine_np(z, p), 0.0)
    a1 = _stage2_affine_np(h, p, channels)
    y1 = np.where(a1 > 0, a1, _LEAKY_SLOPE * a1)
    a2 = _stage3_affine_np(y1, p, channels)
    return 1.0 / (1.0 + np.exp(-a2))


def _linearize(fn, in_dim):
    # fn is affine: fn(x) = x @ M + c.  Recover (M, c) by probing with a basis.
    c = fn(np.zeros((1, in_dim), np.float64))                  # (1, out_dim)
    M = fn(np.eye(in_dim, dtype=np.float64)) - c               # (in_dim, out_dim)
    return M, c


def prepare_params(params, channels=4):
    """One-time host-side fold of the Decoder weights into the fused-kernel form.

    Weight matrices are stored in bf16 (halves the HBM weight stream, which is
    the kernel's bottleneck at small batch); biases/offsets stay f32.
    """
    p = {k: np.asarray(v, np.float64) for k, v in params.items()}
    f1 = channels * 8 * 8            # 256
    m1, c1 = _linearize(lambda a: _stage2_affine_np(a, p, channels), f1)
    f2 = m1.shape[1]                 # C*225 = 900
    m2, c2 = _linearize(lambda a: _stage3_affine_np(a, p, channels), f2)
    return {
        "w1": jnp.asarray(p["d1_w"].T, jnp.bfloat16),          # (z_dim, C*64), pre-transposed
        "b1": jnp.asarray(p["d1_b"][None, :], jnp.float32),    # (1, C*64)
        "m1": jnp.asarray(m1, jnp.bfloat16),                   # (C*64, C*225)  up+pad+conv1+BN
        "c1": jnp.asarray(c1, jnp.float32),                    # (1, C*225)
        "m2": jnp.asarray(m2, jnp.bfloat16),                   # (C*225, 900)   up+pad+conv2
        "c2": jnp.asarray(c2, jnp.float32),                    # (1, 900)
    }


# ---------------------------------------------------------------------------
# Pallas kernel: the entire Decoder forward, 3 MXU matmuls + pointwise epilogues.
# ---------------------------------------------------------------------------
def _decoder_fused_kernel(z_ref, w1_ref, b1_ref, m1_ref, c1_ref, m2_ref, c2_ref, o_ref):
    # d1 + ReLU  (bf16 operands, f32 MXU accumulation)
    z_bf = z_ref[...].astype(jnp.bfloat16)
    h = jnp.dot(z_bf, w1_ref[...], preferred_element_type=jnp.float32) + b1_ref[...]
    h = jnp.maximum(h, 0.0).astype(jnp.bfloat16)

    # upsample1 + ReplicationPad2d(1) + conv1 + BatchNorm(eval)  (folded affine), LeakyReLU(0.2)
    a1 = jnp.dot(h, m1_ref[...], preferred_element_type=jnp.float32) + c1_ref[...]
    y1 = jnp.where(a1 > 0, a1, _LEAKY_SLOPE * a1).astype(jnp.bfloat16)

    # dropout1: eval-mode identity
    # TODO(synk): training-mode Dropout(p=0.2) is stochastic; eval-mode (identity) implemented.

    # upsample2 + ReplicationPad2d(1) + conv2  (folded affine), sigmoid
    a2 = jnp.dot(y1, m2_ref[...], preferred_element_type=jnp.float32) + c2_ref[...]
    # exp and the approx reciprocal both land on the EUP slot; clamp keeps the
    # exact sigmoid range [0, 1] despite the approximate reciprocal.
    sig = pl.reciprocal(1.0 + jnp.exp(-a2), approx=True)
    o_ref[...] = jnp.minimum(sig, 1.0).astype(o_ref.dtype)


def decoder_forward(z, prep, *, num_column_blocks=1):
    """Fused Decoder forward: (B, z_dim) -> (B, 900) in a single pallas_call.

    num_column_blocks=2 splits the output columns (and the dominant m2 weight
    stream) across a second "parallel" grid axis — useful on v7x (2 TCs/chip)
    at small batch.  Default 1 is best on single-TensorCore chips (v5e/v6e).
    """
    B, z_dim = z.shape
    f1 = prep["w1"].shape[1]        # C*64
    f2 = prep["m1"].shape[1]        # C*225
    f3 = prep["m2"].shape[1]        # 900

    # Batch tiling: capped at 256 rows so double-buffered (tb, 900) out tiles +
    # materialized intermediates fit v5e's 16 MiB scoped-VMEM default.
    tb = min(B, 256)

    # Output-column tiling (lane dim stays a multiple of 128 when split).
    if num_column_blocks <= 1:
        tn = f3
    else:
        tn = 128 * pl.cdiv(pl.cdiv(f3, num_column_blocks), 128)
        tn = min(tn, f3)

    grid = (pl.cdiv(B, tb), pl.cdiv(f3, tn))

    flops = 2 * B * (z_dim * f1 + f1 * f2 + f2 * f3)
    bytes_accessed = (4 * B * z_dim                              # z (f32)
                      + 2 * (z_dim * f1 + f1 * f2 + f2 * f3)     # bf16 weights
                      + 4 * (f1 + f2 + f3)                       # f32 biases
                      + 4 * B * f3)                              # output (f32)

    # Weights/biases use constant index_maps: fetched once, resident across all
    # grid steps (bf16 keeps even the doubled buffers ~4 MB — well under the
    # scoped-VMEM default on every TPU generation).
    def const_spec(nrows, ncols):
        return pl.BlockSpec((nrows, ncols), lambda i, j: (0, 0))

    return pl.pallas_call(
        _decoder_fused_kernel,
        out_shape=jax.ShapeDtypeStruct((B, f3), jnp.float32),
        grid=grid,
        in_specs=[
            pl.BlockSpec((tb, z_dim), lambda i, j: (i, 0)),      # z   (batch-tiled)
            const_spec(z_dim, f1),                               # w1  (bf16)
            const_spec(1, f1),                                   # b1
            const_spec(f1, f2),                                  # m1  (bf16)
            const_spec(1, f2),                                   # c1
            pl.BlockSpec((f2, tn), lambda i, j: (0, j)),         # m2  (bf16, column-tiled)
            pl.BlockSpec((1, tn), lambda i, j: (0, j)),          # c2  (column-tiled)
        ],
        out_specs=pl.BlockSpec((tb, tn), lambda i, j: (i, j)),   # lane-dense output slab
        compiler_params=pltpu.CompilerParams(
            dimension_semantics=("parallel", "parallel")),
        cost_estimate=pl.CostEstimate(
            flops=flops, transcendentals=B * f3, bytes_accessed=bytes_accessed),
    )(z, prep["w1"], prep["b1"], prep["m1"], prep["c1"], prep["m2"], prep["c2"])


# ---------------------------------------------------------------------------
# Deterministic synthetic parameters (shapes from Decoder.__init__).
# ---------------------------------------------------------------------------
def init_params(key, z_dim, channels):
    ks = jax.random.split(key, 10)
    n1 = channels * 8 * 8
    return {
        "d1_w": jax.random.normal(ks[0], (n1, z_dim), jnp.float32) * 0.1,
        "d1_b": jax.random.normal(ks[1], (n1,), jnp.float32) * 0.1,
        "conv1_w": jax.random.normal(ks[2], (channels, channels, 4, 4), jnp.float32) * 0.1,
        "conv1_b": jax.random.normal(ks[3], (channels,), jnp.float32) * 0.1,
        "conv2_w": jax.random.normal(ks[4], (1, channels, 3, 3), jnp.float32) * 0.1,
        "conv2_b": jax.random.normal(ks[5], (1,), jnp.float32) * 0.1,
        # BatchNorm2d eval-mode state.  (A fresh torch module has gamma=1, beta=0,
        # mean=0, var=1; non-trivial values here so the BN fold is exercised.)
        "bn_gamma": 1.0 + 0.1 * jax.random.normal(ks[6], (channels,), jnp.float32),
        "bn_beta": 0.1 * jax.random.normal(ks[7], (channels,), jnp.float32),
        "bn_mean": 0.1 * jax.random.normal(ks[8], (channels,), jnp.float32),
        "bn_var": 0.5 + jax.random.uniform(ks[9], (channels,), jnp.float32),
    }


# ---------------------------------------------------------------------------
if __name__ == "__main__":
    key = jax.random.PRNGKey(0)
    z_dim, channels, batch = 32, 4, 2
    pkey, zkey = jax.random.split(key)

    params = init_params(pkey, z_dim, channels)
    prep = prepare_params(params, channels)        # one-time host-side fold (outside jit)
    z = jax.random.normal(zkey, (batch, z_dim), jnp.float32)

    fwd = jax.jit(decoder_forward)
    out = fwd(z, prep)
    jax.block_until_ready(out)

    assert out.shape == (batch, 30 * 30), out.shape
    out_np = np.asarray(out)
    assert np.all(np.isfinite(out_np))
    assert np.all((out_np >= 0.0) & (out_np <= 1.0))           # sigmoid range

    # Self-check vs. a float64 NumPy transcription of the PyTorch forward.
    # Tolerance covers the bf16 weight/activation quantization (f32 accumulate);
    # structural/layout bugs would show up as O(0.1) errors.
    ref = reference_forward_np(np.asarray(z), params, channels)
    max_err = float(np.max(np.abs(out_np - ref)))
    assert max_err < 3e-2, max_err

    print("KERNEL_OK")
</pallas_src>

<mosaic_0001>
module attributes {stable_mosaic.version = 11 : i64} {
  func.func @_decoder_fused_kernel(%arg0: i32, %arg1: i32, %arg2: memref<2x32xf32, #tpu.memory_space<vmem>>, %arg3: memref<32x256xbf16, #tpu.memory_space<vmem>>, %arg4: memref<1x256xf32, #tpu.memory_space<vmem>>, %arg5: memref<256x900xbf16, #tpu.memory_space<vmem>>, %arg6: memref<1x900xf32, #tpu.memory_space<vmem>>, %arg7: memref<900x900xbf16, #tpu.memory_space<vmem>>, %arg8: memref<1x900xf32, #tpu.memory_space<vmem>>, %arg9: memref<2x900xf32, #tpu.memory_space<vmem>>) attributes {dimension_semantics = [#tpu.dimension_semantics<parallel>, #tpu.dimension_semantics<parallel>], iteration_bounds = array<i64: 1, 1>, scalar_prefetch = 0 : i64, scratch_operands = 0 : i64, tpu.core_type = #tpu.core_type<tc>, window_params = [{transform_indices = @transform_0, window_bounds = array<i64: 2, 32>}, {pipeline_mode = #tpu.pipeline_mode<synchronous>, transform_indices = @transform_1, window_bounds = array<i64: 32, 256>}, {pipeline_mode = #tpu.pipeline_mode<synchronous>, transform_indices = @transform_2, window_bounds = array<i64: 1, 256>}, {pipeline_mode = #tpu.pipeline_mode<synchronous>, transform_indices = @transform_3, window_bounds = array<i64: 256, 900>}, {pipeline_mode = #tpu.pipeline_mode<synchronous>, transform_indices = @transform_4, window_bounds = array<i64: 1, 900>}, {transform_indices = @transform_5, window_bounds = array<i64: 900, 900>}, {transform_indices = @transform_6, window_bounds = array<i64: 1, 900>}, {transform_indices = @transform_7, window_bounds = array<i64: 2, 900>}]} {
    %c0 = arith.constant 0 : index
    %c0_0 = arith.constant 0 : index
    %0 = vector.load %arg2[%c0, %c0_0] : memref<2x32xf32, #tpu.memory_space<vmem>>, vector<2x32xf32>
    %1 = arith.truncf %0 : vector<2x32xf32> to vector<2x32xbf16>
    %c0_1 = arith.constant 0 : index
    %c0_2 = arith.constant 0 : index
    %2 = vector.load %arg3[%c0_1, %c0_2] : memref<32x256xbf16, #tpu.memory_space<vmem>>, vector<32x256xbf16>
    %cst = arith.constant dense<0.000000e+00> : vector<2x256xf32>
    %3 = tpu.matmul %1, %2, %cst {dimension_numbers = #tpu.dot_dimension_numbers<[1], [0], [0], [1], [0, 0, 1, 1], [], []>} : vector<2x32xbf16>, vector<32x256xbf16>, vector<2x256xf32> -> vector<2x256xf32>
    %c0_3 = arith.constant 0 : index
    %c0_4 = arith.constant 0 : index
    %4 = vector.load %arg4[%c0_3, %c0_4] : memref<1x256xf32, #tpu.memory_space<vmem>>, vector<1x256xf32>
    %5 = vector.broadcast %4 : vector<1x256xf32> to vector<2x256xf32>
    %6 = arith.addf %3, %5 : vector<2x256xf32>
    %cst_5 = arith.constant 0.000000e+00 : f32
    %7 = vector.broadcast %cst_5 : f32 to vector<2x256xf32>
    %8 = arith.maximumf %6, %7 : vector<2x256xf32>
    %9 = arith.truncf %8 : vector<2x256xf32> to vector<2x256xbf16>
    %c0_6 = arith.constant 0 : index
    %c0_7 = arith.constant 0 : index
    %10 = vector.load %arg5[%c0_6, %c0_7] : memref<256x900xbf16, #tpu.memory_space<vmem>>, vector<256x900xbf16>
    %cst_8 = arith.constant dense<0.000000e+00> : vector<2x900xf32>
    %11 = tpu.matmul %9, %10, %cst_8 {dimension_numbers = #tpu.dot_dimension_numbers<[1], [0], [0], [1], [0, 0, 1, 1], [], []>} : vector<2x256xbf16>, vector<256x900xbf16>, vector<2x900xf32> -> vector<2x900xf32>
    %c0_9 = arith.constant 0 : index
    %c0_10 = arith.constant 0 : index
    %12 = vector.load %arg6[%c0_9, %c0_10] : memref<1x900xf32, #tpu.memory_space<vmem>>, vector<1x900xf32>
    %13 = vector.broadcast %12 : vector<1x900xf32> to vector<2x900xf32>
    %14 = arith.addf %11, %13 : vector<2x900xf32>
    %cst_11 = arith.constant 0.000000e+00 : f32
    %15 = vector.broadcast %cst_11 : f32 to vector<2x900xf32>
    %16 = arith.cmpf ogt, %14, %15 : vector<2x900xf32>
    %cst_12 = arith.constant 2.000000e-01 : f32
    %17 = vector.broadcast %cst_12 : f32 to vector<2x900xf32>
    %18 = arith.mulf %17, %14 : vector<2x900xf32>
    %19 = arith.select %16, %14, %18 : vector<2x900xi1>, vector<2x900xf32>
    %20 = arith.truncf %19 : vector<2x900xf32> to vector<2x900xbf16>
    %c0_13 = arith.constant 0 : index
    %c0_14 = arith.constant 0 : index
    %21 = vector.load %arg7[%c0_13, %c0_14] : memref<900x900xbf16, #tpu.memory_space<vmem>>, vector<900x900xbf16>
    %cst_15 = arith.constant dense<0.000000e+00> : vector<2x900xf32>
    %22 = tpu.matmul %20, %21, %cst_15 {dimension_numbers = #tpu.dot_dimension_numbers<[1], [0], [0], [1], [0, 0, 1, 1], [], []>} : vector<2x900xbf16>, vector<900x900xbf16>, vector<2x900xf32> -> vector<2x900xf32>
    %c0_16 = arith.constant 0 : index
    %c0_17 = arith.constant 0 : index
    %23 = vector.load %arg8[%c0_16, %c0_17] : memref<1x900xf32, #tpu.memory_space<vmem>>, vector<1x900xf32>
    %24 = vector.broadcast %23 : vector<1x900xf32> to vector<2x900xf32>
    %25 = arith.addf %22, %24 : vector<2x900xf32>
    %cst_18 = arith.constant 0.000000e+00 : f32
    %26 = vector.broadcast %cst_18 : f32 to vector<2x900xf32>
    %27 = arith.subf %26, %25 : vector<2x900xf32>
    %28 = math.exp %27 : vector<2x900xf32>
    %cst_19 = arith.constant 1.000000e+00 : f32
    %29 = vector.broadcast %cst_19 : f32 to vector<2x900xf32>
    %30 = arith.addf %29, %28 : vector<2x900xf32>
    %31 = tpu.reciprocal %30 {approx = true} : vector<2x900xf32> -> vector<2x900xf32>
    %cst_20 = arith.constant 1.000000e+00 : f32
    %32 = vector.broadcast %cst_20 : f32 to vector<2x900xf32>
    %33 = arith.minimumf %31, %32 : vector<2x900xf32>
    %c0_21 = arith.constant 0 : index
    %c0_22 = arith.constant 0 : index
    %34 = vector.load %arg9[%c0_21, %c0_22] : memref<2x900xf32, #tpu.memory_space<vmem>>, vector<2x900xf32>
    tpu.vector_store %arg9[%c0_21, %c0_22], %33 {strides = array<i32>} : memref<2x900xf32, #tpu.memory_space<vmem>>, vector<2x900xf32>,
    return
  }
  func.func @transform_0(%arg0: i32, %arg1: i32) -> (i32, i32) {
    %c0_i32 = arith.constant 0 : i32
    %c0_i32_0 = arith.constant 0 : i32
    return %arg0, %c0_i32 : i32, i32
  }
  func.func @transform_1(%arg0: i32, %arg1: i32) -> (i32, i32) {
    %c0_i32 = arith.constant 0 : i32
    %c0_i32_0 = arith.constant 0 : i32
    %c0_i32_1 = arith.constant 0 : i32
    return %c0_i32, %c0_i32_0 : i32, i32
  }
  func.func @transform_2(%arg0: i32, %arg1: i32) -> (i32, i32) {
    %c0_i32 = arith.constant 0 : i32
    %c0_i32_0 = arith.constant 0 : i32
    %c0_i32_1 = arith.constant 0 : i32
    return %c0_i32, %c0_i32_0 : i32, i32
  }
  func.func @transform_3(%arg0: i32, %arg1: i32) -> (i32, i32) {
    %c0_i32 = arith.constant 0 : i32
    %c0_i32_0 = arith.constant 0 : i32
    %c0_i32_1 = arith.constant 0 : i32
    return %c0_i32, %c0_i32_0 : i32, i32
  }
  func.func @transform_4(%arg0: i32, %arg1: i32) -> (i32, i32) {
    %c0_i32 = arith.constant 0 : i32
    %c0_i32_0 = arith.constant 0 : i32
    %c0_i32_1 = arith.constant 0 : i32
    return %c0_i32, %c0_i32_0 : i32, i32
  }
  func.func @transform_5(%arg0: i32, %arg1: i32) -> (i32, i32) {
    %c0_i32 = arith.constant 0 : i32
    %c0_i32_0 = arith.constant 0 : i32
    return %c0_i32, %arg1 : i32, i32
  }
  func.func @transform_6(%arg0: i32, %arg1: i32) -> (i32, i32) {
    %c0_i32 = arith.constant 0 : i32
    %c0_i32_0 = arith.constant 0 : i32
    return %c0_i32, %arg1 : i32, i32
  }
  func.func @transform_7(%arg0: i32, %arg1: i32) -> (i32, i32) {
    %c0_i32 = arith.constant 0 : i32
    return %arg0, %arg1 : i32, i32
  }
}

</mosaic_0001>

<bundles_post_ra>
// kernel: decoder_forward.1
= control target key start
LH: loop header
LB: loop body
LE: loop exit
PB: predicated region body
PF: predicated region fallthrough
CT: control target
= control target key end

     0   :  { %12 = vsyncpa [#allocation3], 0  ;;  %s9110_s0 = inlined_call_operand.hbm [shape: f32[2,32], index: 0, kind: input, shape index: {}]   ;;  %s9111_s1 = inlined_call_operand.hbm [shape: bf16[32,256], index: 1, kind: input, shape index: {}]   ;;  %s9112_s2 = inlined_call_operand.hbm [shape: f32[1,256], index: 2, kind: input, shape index: {}]   ;;  %s9113_s3 = inlined_call_operand.vmem [shape: bf16[256,900], index: 3, kind: input, shape index: {}]   ;;  %s9114_s4 = inlined_call_operand.hbm [shape: f32[1,900], index: 4, kind: input, shape index: {}]   ;;  %s9115_s5 = inlined_call_operand.hbm [shape: bf16[900,900], index: 5, kind: input, shape index: {}]   ;;  %s9116_s6 = inlined_call_operand.hbm [shape: f32[1,900], index: 6, kind: input, shape index: {}]   ;;  %s9117_s7 = inlined_call_operand.hbm [shape: f32[2,900], index: 7, kind: output, shape index: {}]  }
   0x1   :  { %13 = vsyncpa [#allocation6], 0 }
   0x2   :  { %14 = vsyncpa [#allocation9], 0 }
   0x3   :  { %15 = vsyncpa [#allocation12], 0  ;;  %s32_s26 = sshll.u32 %s9111_s1, 4  ;;  %s33_s26 = int_to_ptr.hbm [resolvable:$true] %s32_s26 }
   0x4   :  { %16 = vsyncpa [#allocation4], 0  ;;  %s8029_s27 = smov [#allocation5]   ;;  %s59_s8 = sshll.u32 %s9114_s4, 4  ;;  %s60_s8 = int_to_ptr.hbm [resolvable:$true] %s59_s8 }
   0x5   :  { %s34_s28 = sshll.u32 %s8029_s27, 4  ;;  %s8030_s9 = smov 128   ;;  %s35_s28 = int_to_ptr.vmem [resolvable:$true] %s34_s28 }
   0x6   :  { %s8031_s10 = smov 8   ;;  %s8032_s11 = smov [#allocation8]  }
   0x7   :  { %40 = dma.hbm_to_vmem [thread:$0]  %s33_s26, 512, %s35_s28, [#allocation6], %s8030_s9, %s8030_s9, %s8031_s10  }
   0x8   :  { %s61_s12 = sshll.u32 %s8032_s11, 4  ;;  %s22_s15 = sshll.u32 %s9110_s0, 4  ;;  %s62_s12 = int_to_ptr.vmem [resolvable:$true] %s61_s12  ;;  %s23_s15 = int_to_ptr.hbm [resolvable:$true] %s22_s15 }
   0x9   :  { %64 = dma.hbm_to_vmem [thread:$0]  %s60_s8, 128, %s62_s12, [#allocation9]  }
   0xa   :  { %s46_s17 = sshll.u32 %s9112_s2, 4  ;;  %s8033_s18 = smov [#allocation2]   ;;  %s47_s17 = int_to_ptr.hbm [resolvable:$true] %s46_s17 }
   0xb   :  { %s24_s19 = sshll.u32 %s8033_s18, 4  ;;  %s8034_s4 = smov [#allocation7]   ;;  %s25_s19 = int_to_ptr.vmem [resolvable:$true] %s24_s19 }
   0xc   :  { %27 = dma.hbm_to_vmem [thread:$0]  %s23_s15, 32, %s25_s19, [#allocation3]  }
   0xd   :  { %s48_s20 = sshll.u32 %s8034_s4, 4  ;;  %s69_s23 = sshll.u32 %s9115_s5, 4  ;;  %s49_s20 = int_to_ptr.vmem [resolvable:$true] %s48_s20  ;;  %s70_s23 = int_to_ptr.hbm [resolvable:$true] %s69_s23 }
   0xe   :  { %51 = dma.hbm_to_vmem [thread:$0]  %s47_s17, 32, %s49_s20, [#allocation6]  }
   0xf   :  { %s8035_s0 = smov [#allocation10]   ;;  %s83_s2 = sshll.u32 %s9116_s6, 4  ;;  %s84_s2 = int_to_ptr.hbm [resolvable:$true] %s83_s2 }
  0x10   :  { %s71_s24 = sshll.u32 %s8035_s0, 4  ;;  %s8036_s27 = smov 512   ;;  %s72_s24 = int_to_ptr.vmem [resolvable:$true] %s71_s24 }
  0x11   :  { %s8037_s28 = smov 32   ;;  %s8038_s29 = smov [#allocation11]  }
  0x12   :  { %77 = dma.hbm_to_vmem [thread:$0]  %s70_s23, 57856, %s72_s24, [#allocation9], %s8036_s27, %s8036_s27, %s8037_s28  }
  0x13   :  { %s85_s30 = sshll.u32 %s8038_s29, 4  ;;  %s86_s30 = int_to_ptr.vmem [resolvable:$true] %s85_s30 }
  0x14   :  { %88 = dma.hbm_to_vmem [thread:$0]  %s84_s2, 128, %s86_s30, [#allocation12]  }
  0x15   :  { %8019 = dma.done.wait [#allocation3], 32  }
  0x16   :  { %8020 = vsyncadd [#allocation3], 4294967264 }
  0x17   :  { %8021 = dma.done.wait [#allocation6], 544  }
  0x18   :  { %8022 = vsyncadd [#allocation6], 4294966752 }
  0x19   :  { %8023 = dma.done.wait [#allocation9], 57984  }
  0x1a   :  { %8024 = vsyncadd [#allocation9], 4294909312 }
  0x1b   :  { %8025 = dma.done.wait [#allocation12], 128  }
  0x1c   :  { %8026 = vsyncadd [#allocation12], 4294967168  ;;  %vm146_vm0 = vcmask 261120   ;;  %v4906_v0 = vld [vmem:[#allocation5 + $0x10] sm:$0xf]  ;;  %vm3940_vm2 = vcmask 1041408  }
  0x1d   :  { %v7229_v1 = vld [vmem:[#allocation5 + $0x14] sm:$0xf0]  ;;  %v7228_v2 = vld [vmem:[#allocation5 + $0x14] sm:$0xf]  ;;  %v4908_v4 = vld [vmem:[#allocation5 + $0x18] sm:$0xf0] }
  0x1e   :  { %v4907_v3 = vor.u32 %v7229_v1, %v4906_v0  ;;  %v4898_v5 = vld [vmem:[#allocation5] sm:$0xf]  ;;  %v7227_v6 = vld [vmem:[#allocation5 + $0x4] sm:$0xf0]  ;;  %v4911_v7 = vor.u32 %v7228_v2, %v4908_v4  ;;  %v7226_v8 = vld [vmem:[#allocation5 + $0x4] sm:$0xf] }
  0x1f   :  { %v4900_v9 = vld [vmem:[#allocation5 + $0x8] sm:$0xf0]  ;;  %v114_v10 = vld [vmem:[#allocation2] sm:$0x3]  ;;  %v4899_v11 = vor.u32 %v7227_v6, %v4898_v5  ;;  %v7286_v18 = vld [vmem:[%s9113_s3 + $0x1c4] sm:$0xf] }
  0x20   :  { %156 = vmatpush.bf16.msra.mxu0 %v4907_v3  ;;  %v5140_v12 = vld [vmem:[%s9113_s3 + $0x1c0] sm:$0xf]  ;;  %169 = vmatpush.bf16.msra.mxu1 %v4911_v7  ;;  %v4903_v15 = vor.u32 %v7226_v8, %v4900_v9  ;;  %v5142_v19 = vld [vmem:[%s9113_s3 + $0x1e0] sm:$0xf0]  ;;  %v115_v25 = vpack.c.bf16 %v114_v10, %v114_v10  ;;  %vm3936_vm9 = vcmask 31744   ;;  %vm4860_vm11 = vcmask 1045508  }
  0x21   :  { %v7290_v13 = vld [vmem:[%s9113_s3 + $0x1dc] sm:$0xf0]  ;;  %v5145_v21 = vor.u32 %v7286_v18, %v5142_v19  ;;  %v7350_v22 = vld [vmem:[%s9113_s3 + $0x3c4] sm:$0xf]  ;;  %vm4862_vm12 = vcmask 1043456   ;;  %vm4870_vm13 = vcmask 1043458  }
  0x22   :  { %v5396_v14 = vld [vmem:[%s9113_s3 + $0x3c0] sm:$0xf]  ;;  %v5141_v16 = vor.u32 %v7290_v13, %v5140_v12  ;;  %v5398_v23 = vld [vmem:[%s9113_s3 + $0x3e0] sm:$0xf0]  ;;  %vm4871_vm14 = vmor %vm4870_vm13, %vm3940_vm2  ;;  %s4883_s25 = sshll.u32 %s9117_s7, 4  ;;  %s4884_s25 = int_to_ptr.hbm [resolvable:$true] %s4883_s25 }
  0x23   :  { %v7354_v17 = vld [vmem:[%s9113_s3 + $0x3dc] sm:$0xf0]  ;;  %v5401_v26 = vor.u32 %v7350_v22, %v5398_v23  ;;  %v7278_v32 = vld [vmem:[%s9113_s3 + $0x184] sm:$0xf]  ;;  %vm4872_vm15 = vmor %vm4860_vm11, %vm4871_vm14 }
  0x24   :  { %v5397_v20 = vor.u32 %v7354_v17, %v5396_v14  ;;  %v5108_v24 = vld [vmem:[%s9113_s3 + $0x180] sm:$0xf]  ;;  %966 = vmatpush.bf16.msra.mxu2 %v5141_v16  ;;  %157 = vmatpush.bf16.msra.mxu0 %v4899_v11  ;;  %v5110_v33 = vld [vmem:[%s9113_s3 + $0x1a0] sm:$0xf0] }
  0x25   :  { %v7282_v27 = vld [vmem:[%s9113_s3 + $0x19c] sm:$0xf0]  ;;  %v7342_v34 = vld [vmem:[%s9113_s3 + $0x384] sm:$0xf]  ;;  %170 = vmatpush.bf16.msra.mxu1 %v4903_v15  ;;  %v5113_v35 = vor.u32 %v7278_v32, %v5110_v33 }
  0x26   :  { %v5364_v28 = vld [vmem:[%s9113_s3 + $0x380] sm:$0xf]  ;;  %979 = vmatpush.bf16.msra.mxu3 %v5397_v20  ;;  %v5109_v30 = vor.u32 %v7282_v27, %v5108_v24  ;;  %v5366_v36 = vld [vmem:[%s9113_s3 + $0x3a0] sm:$0xf0] }
  0x27   :  { %v7346_v29 = vld [vmem:[%s9113_s3 + $0x39c] sm:$0xf0]  ;;  %v5369_v39 = vor.u32 %v7342_v34, %v5366_v36  ;;  %v7270_v42 = vld [vmem:[%s9113_s3 + $0x144] sm:$0xf]  ;;  %4912 = vmatmul.msk.bf16.vlgmr.msra.gmra.mxu0 %vm146_vm0, %v115_v25 }
  0x28   :  { %v5365_v31 = vor.u32 %v7346_v29, %v5364_v28  ;;  %992 = vmatpush.bf16.msrb.mxu0 %v5145_v21  ;;  %v5076_v37 = vld [vmem:[%s9113_s3 + $0x140] sm:$0xf]  ;;  %967 = vmatpush.bf16.msra.mxu2 %v5109_v30  ;;  %v5078_v44 = vld [vmem:[%s9113_s3 + $0x160] sm:$0xf0] }
  0x29   :  { %v7274_v38 = vld [vmem:[%s9113_s3 + $0x15c] sm:$0xf0]  ;;  %1005 = vmatpush.bf16.msrb.mxu1 %v5401_v26  ;;  %v7334_v45 = vld [vmem:[%s9113_s3 + $0x344] sm:$0xf]  ;;  %v5081_v50 = vor.u32 %v7270_v42, %v5078_v44  ;;  %v7355_v44 = vld [vmem:[%s9113_s3 + $0x3e4] sm:$0xf0] }
  0x2a   :  { %v5332_v40 = vld [vmem:[%s9113_s3 + $0x340] sm:$0xf]  ;;  %v5077_v43 = vor.u32 %v7274_v38, %v5076_v37  ;;  %v5334_v46 = vld [vmem:[%s9113_s3 + $0x360] sm:$0xf0]  ;;  %4913 = vmatmul.msk.bf16.vlgmr.msra.gmra.mxu1 %vm146_vm0, %v115_v25  ;;  %980 = vmatpush.bf16.msra.mxu3 %v5365_v31  ;;  %vm4873_vm0 = vcmask 31750  }
  0x2b   :  { %v7338_v41 = vld [vmem:[%s9113_s3 + $0x35c] sm:$0xf0]  ;;  %v5337_v53 = vor.u32 %v7334_v45, %v5334_v46  ;;  %v7262_v54 = vld [vmem:[%s9113_s3 + $0x104] sm:$0xf] }
  0x2c   :  { %v5333_v47 = vor.u32 %v7338_v41, %v5332_v40  ;;  %v5044_v48 = vld [vmem:[%s9113_s3 + $0x100] sm:$0xf]  ;;  %993 = vmatpush.bf16.msrb.mxu0 %v5113_v35  ;;  %v5046_v55 = vld [vmem:[%s9113_s3 + $0x120] sm:$0xf0]  ;;  %968 = vmatpush.bf16.msra.mxu2 %v5077_v43  ;;  %v7291_v40 = vld [vmem:[%s9113_s3 + $0x1e4] sm:$0xf0] }
  0x2d   :  { %v7266_v49 = vld [vmem:[%s9113_s3 + $0x11c] sm:$0xf0]  ;;  %1006 = vmatpush.bf16.msrb.mxu1 %v5369_v39  ;;  %v7326_v57 = vld [vmem:[%s9113_s3 + $0x304] sm:$0xf]  ;;  %v5049_v62 = vor.u32 %v7262_v54, %v5046_v55  ;;  %v5148_v39 = vld [vmem:[%s9113_s3 + $0x1c8] sm:$0xf] }
  0x2e   :  { %v5300_v51 = vld [vmem:[%s9113_s3 + $0x300] sm:$0xf]  ;;  %v5045_v56 = vor.u32 %v7266_v49, %v5044_v48  ;;  %v5302_v58 = vld [vmem:[%s9113_s3 + $0x320] sm:$0xf0]  ;;  %981 = vmatpush.bf16.msra.mxu3 %v5333_v47  ;;  %v5404_v43 = vld [vmem:[%s9113_s3 + $0x3c8] sm:$0xf] }
  0x2f   :  { %v7330_v52 = vld [vmem:[%s9113_s3 + $0x31c] sm:$0xf0]  ;;  %v5305_v1 = vor.u32 %v7326_v57, %v5302_v58  ;;  %v7254_v2 = vld [vmem:[%s9113_s3 + $0xc4] sm:$0xf]  ;;  %v7287_v47 = vld [vmem:[%s9113_s3 + $0x1cc] sm:$0xf]  ;;  %v5405_v54 = vor.u32 %v7355_v44, %v5404_v43 }
  0x30   :  { %v5301_v59 = vor.u32 %v7330_v52, %v5300_v51  ;;  %v5012_v60 = vld [vmem:[%s9113_s3 + $0xc0] sm:$0xf]  ;;  %994 = vmatpush.bf16.msrb.mxu0 %v5081_v50  ;;  %v5014_v3 = vld [vmem:[%s9113_s3 + $0xe0] sm:$0xf0]  ;;  %969 = vmatpush.bf16.msra.mxu2 %v5045_v56  ;;  %v5150_v48 = vld [vmem:[%s9113_s3 + $0x1e8] sm:$0xf0]  ;;  %v5149_v50 = vor.u32 %v7291_v40, %v5148_v39 }
  0x31   :  { %v7258_v61 = vld [vmem:[%s9113_s3 + $0xdc] sm:$0xf0]  ;;  %1007 = vmatpush.bf16.msrb.mxu1 %v5337_v53  ;;  %v7318_v5 = vld [vmem:[%s9113_s3 + $0x2c4] sm:$0xf]  ;;  %v5017_v10 = vor.u32 %v7254_v2, %v5014_v3  ;;  %v7351_v51 = vld [vmem:[%s9113_s3 + $0x3cc] sm:$0xf]  ;;  %v5153_v58 = vor.u32 %v7287_v47, %v5150_v48 }
  0x32   :  { %v5268_v63 = vld [vmem:[%s9113_s3 + $0x2c0] sm:$0xf]  ;;  %v5013_v4 = vor.u32 %v7258_v61, %v5012_v60  ;;  %v5270_v6 = vld [vmem:[%s9113_s3 + $0x2e0] sm:$0xf0]  ;;  %982 = vmatpush.bf16.msra.mxu3 %v5301_v59  ;;  %v5406_v52 = vld [vmem:[%s9113_s3 + $0x3e8] sm:$0xf0] }
  0x33   :  { %v7322_v0 = vld [vmem:[%s9113_s3 + $0x2dc] sm:$0xf0]  ;;  %v5273_v13 = vor.u32 %v7318_v5, %v5270_v6  ;;  %v7246_v14 = vld [vmem:[%s9113_s3 + $0x84] sm:$0xf]  ;;  %v5116_v55 = vld [vmem:[%s9113_s3 + $0x188] sm:$0xf]  ;;  %v5409_v61 = vor.u32 %v7351_v51, %v5406_v52 }
  0x34   :  { %v5269_v7 = vor.u32 %v7322_v0, %v5268_v63  ;;  %v4980_v8 = vld [vmem:[%s9113_s3 + $0x80] sm:$0xf]  ;;  %995 = vmatpush.bf16.msrb.mxu0 %v5049_v62  ;;  %v4982_v15 = vld [vmem:[%s9113_s3 + $0xa0] sm:$0xf0]  ;;  %970 = vmatpush.bf16.msra.mxu2 %v5013_v4  ;;  %v7283_v56 = vld [vmem:[%s9113_s3 + $0x1a4] sm:$0xf0] }
  0x35   :  { %v7250_v9 = vld [vmem:[%s9113_s3 + $0x9c] sm:$0xf0]  ;;  %1008 = vmatpush.bf16.msrb.mxu1 %v5305_v1  ;;  %v7310_v17 = vld [vmem:[%s9113_s3 + $0x284] sm:$0xf]  ;;  %v4985_v22 = vor.u32 %v7246_v14, %v4982_v15  ;;  %v5372_v59 = vld [vmem:[%s9113_s3 + $0x388] sm:$0xf]  ;;  %v5117_v0 = vor.u32 %v7283_v56, %v5116_v55 }
  0x36   :  { %v5236_v11 = vld [vmem:[%s9113_s3 + $0x280] sm:$0xf]  ;;  %v4981_v16 = vor.u32 %v7250_v9, %v4980_v8  ;;  %v5238_v18 = vld [vmem:[%s9113_s3 + $0x2a0] sm:$0xf0]  ;;  %983 = vmatpush.bf16.msra.mxu3 %v5269_v7  ;;  %v7347_v60 = vld [vmem:[%s9113_s3 + $0x3a4] sm:$0xf0] }
  0x37   :  { %v7314_v12 = vld [vmem:[%s9113_s3 + $0x29c] sm:$0xf0]  ;;  %v5241_v25 = vor.u32 %v7310_v17, %v5238_v18  ;;  %v7238_v26 = vld [vmem:[%s9113_s3 + $0x44] sm:$0xf]  ;;  %v7279_v62 = vld [vmem:[%s9113_s3 + $0x18c] sm:$0xf]  ;;  %v5373_v3 = vor.u32 %v7347_v60, %v5372_v59 }
  0x38   :  { %v5237_v19 = vor.u32 %v7314_v12, %v5236_v11  ;;  %v4948_v20 = vld [vmem:[%s9113_s3 + $0x40] sm:$0xf]  ;;  %996 = vmatpush.bf16.msrb.mxu0 %v5017_v10  ;;  %v4950_v27 = vld [vmem:[%s9113_s3 + $0x60] sm:$0xf0]  ;;  %971 = vmatpush.bf16.msra.mxu2 %v4981_v16  ;;  %v5118_v63 = vld [vmem:[%s9113_s3 + $0x1a8] sm:$0xf0] }
  0x39   :  { %v7242_v21 = vld [vmem:[%s9113_s3 + $0x5c] sm:$0xf0]  ;;  %1009 = vmatpush.bf16.msrb.mxu1 %v5273_v13  ;;  %v7302_v28 = vld [vmem:[%s9113_s3 + $0x244] sm:$0xf]  ;;  %v4953_v37 = vor.u32 %v7238_v26, %v4950_v27  ;;  %v7343_v1 = vld [vmem:[%s9113_s3 + $0x38c] sm:$0xf]  ;;  %v5121_v6 = vor.u32 %v7279_v62, %v5118_v63 }
  0x3a   :  { %v5204_v23 = vld [vmem:[%s9113_s3 + $0x240] sm:$0xf]  ;;  %v4949_v29 = vor.u32 %v7242_v21, %v4948_v20  ;;  %v5206_v30 = vld [vmem:[%s9113_s3 + $0x260] sm:$0xf0]  ;;  %984 = vmatpush.bf16.msra.mxu3 %v5237_v19  ;;  %v5374_v2 = vld [vmem:[%s9113_s3 + $0x3a8] sm:$0xf0] }
  0x3b   :  { %v7306_v24 = vld [vmem:[%s9113_s3 + $0x25c] sm:$0xf0]  ;;  %v7230_v36 = vld [vmem:[%s9113_s3 + $0x4] sm:$0xf]  ;;  %v5209_v41 = vor.u32 %v7302_v28, %v5206_v30  ;;  %v5084_v4 = vld [vmem:[%s9113_s3 + $0x148] sm:$0xf]  ;;  %v5377_v9 = vor.u32 %v7343_v1, %v5374_v2 }
  0x3c   :  { %v4916_v31 = vld [vmem:[%s9113_s3] sm:$0xf]  ;;  %v5205_v33 = vor.u32 %v7306_v24, %v5204_v23  ;;  %997 = vmatpush.bf16.msrb.mxu0 %v4985_v22  ;;  %v4918_v38 = vld [vmem:[%s9113_s3 + $0x20] sm:$0xf0]  ;;  %972 = vmatpush.bf16.msra.mxu2 %v4949_v29  ;;  %v7275_v5 = vld [vmem:[%s9113_s3 + $0x164] sm:$0xf0] }
  0x3d   :  { %v7234_v32 = vld [vmem:[%s9113_s3 + $0x1c] sm:$0xf0]  ;;  %1010 = vmatpush.bf16.msrb.mxu1 %v5241_v25  ;;  %v7294_v42 = vld [vmem:[%s9113_s3 + $0x204] sm:$0xf]  ;;  %v4921_v53 = vor.u32 %v7230_v36, %v4918_v38  ;;  %v5340_v7 = vld [vmem:[%s9113_s3 + $0x348] sm:$0xf]  ;;  %v5085_v12 = vor.u32 %v7275_v5, %v5084_v4 }
  0x3e   :  { %v5172_v34 = vld [vmem:[%s9113_s3 + $0x200] sm:$0xf]  ;;  %v4917_v45 = vor.u32 %v7234_v32, %v4916_v31  ;;  %v5174_v46 = vld [vmem:[%s9113_s3 + $0x220] sm:$0xf0]  ;;  %985 = vmatpush.bf16.msra.mxu3 %v5205_v33  ;;  %v7339_v8 = vld [vmem:[%s9113_s3 + $0x364] sm:$0xf0] }
  0x3f   :  { %v7298_v35 = vld [vmem:[%s9113_s3 + $0x21c] sm:$0xf0]  ;;  %v5177_v57 = vor.u32 %v7294_v42, %v5174_v46  ;;  %v7271_v10 = vld [vmem:[%s9113_s3 + $0x14c] sm:$0xf]  ;;  %v5341_v15 = vor.u32 %v7339_v8, %v5340_v7  ;;  %v5052_v16 = vld [vmem:[%s9113_s3 + $0x108] sm:$0xf] }
  0x40   :  { %v5173_v49 = vor.u32 %v7298_v35, %v5172_v34  ;;  %998 = vmatpush.bf16.msrb.mxu0 %v4953_v37  ;;  %973 = vmatpush.bf16.msra.mxu2 %v4917_v45  ;;  %v5086_v11 = vld [vmem:[%s9113_s3 + $0x168] sm:$0xf0]  ;;  %v7267_v17 = vld [vmem:[%s9113_s3 + $0x124] sm:$0xf0] }
  0x41   :  { %1011 = vmatpush.bf16.msrb.mxu1 %v5209_v41  ;;  %v7335_v13 = vld [vmem:[%s9113_s3 + $0x34c] sm:$0xf]  ;;  %v5089_v18 = vor.u32 %v7271_v10, %v5086_v11  ;;  %v5308_v19 = vld [vmem:[%s9113_s3 + $0x308] sm:$0xf]  ;;  %v5053_v24 = vor.u32 %v7267_v17, %v5052_v16 }
  0x42   :  { %986 = vmatpush.bf16.msra.mxu3 %v5173_v49  ;;  %v5342_v14 = vld [vmem:[%s9113_s3 + $0x368] sm:$0xf0]  ;;  %v7331_v20 = vld [vmem:[%s9113_s3 + $0x324] sm:$0xf0] }
  0x43   :  { %v5345_v21 = vor.u32 %v7335_v13, %v5342_v14  ;;  %v7263_v22 = vld [vmem:[%s9113_s3 + $0x10c] sm:$0xf]  ;;  %v5309_v27 = vor.u32 %v7331_v20, %v5308_v19  ;;  %v5020_v28 = vld [vmem:[%s9113_s3 + $0xc8] sm:$0xf]  ;;  %v120_v14 = vld [vmem:[#allocation7] sm:$0x3] }
  0x44   :  { %1018 = vmatpush.bf16.msrb.mxu2 %v5149_v50  ;;  %999 = vmatpush.bf16.msrb.mxu0 %v4921_v53  ;;  %v5054_v23 = vld [vmem:[%s9113_s3 + $0x128] sm:$0xf0]  ;;  %v7259_v29 = vld [vmem:[%s9113_s3 + $0xe4] sm:$0xf0]  ;;  %v123_v16 = vperm.slane %v120_v14, 1 }
  0x45   :  { %1012 = vmatpush.bf16.msrb.mxu1 %v5177_v57  ;;  %v7327_v25 = vld [vmem:[%s9113_s3 + $0x30c] sm:$0xf]  ;;  %v5057_v30 = vor.u32 %v7263_v22, %v5054_v23  ;;  %v5276_v31 = vld [vmem:[%s9113_s3 + $0x2c8] sm:$0xf]  ;;  %v5021_v36 = vor.u32 %v7259_v29, %v5020_v28  ;;  %v5156_v20 = vld [vmem:[%s9113_s3 + $0x1d0] sm:$0xf] }
  0x46   :  { %1031 = vmatpush.bf16.msrb.mxu3 %v5405_v54  ;;  %v5310_v26 = vld [vmem:[%s9113_s3 + $0x328] sm:$0xf0]  ;;  %v7323_v32 = vld [vmem:[%s9113_s3 + $0x2e4] sm:$0xf0]  ;;  %v5412_v22 = vld [vmem:[%s9113_s3 + $0x3d0] sm:$0xf] }
  0x47   :  { %v5313_v33 = vor.u32 %v7327_v25, %v5310_v26  ;;  %v7255_v34 = vld [vmem:[%s9113_s3 + $0xcc] sm:$0xf]  ;;  %v5277_v39 = vor.u32 %v7323_v32, %v5276_v31  ;;  %v4988_v40 = vld [vmem:[%s9113_s3 + $0x88] sm:$0xf]  ;;  %v7288_v25 = vld [vmem:[%s9113_s3 + $0x1d4] sm:$0xf] }
  0x48   :  { %1044 = vmatpush.bf16.msra.mxu0 %v5153_v58  ;;  %1019 = vmatpush.bf16.msrb.mxu2 %v5117_v0  ;;  %v5022_v35 = vld [vmem:[%s9113_s3 + $0xe8] sm:$0xf0]  ;;  %v7251_v41 = vld [vmem:[%s9113_s3 + $0xa4] sm:$0xf0]  ;;  %v5158_v26 = vld [vmem:[%s9113_s3 + $0x1f0] sm:$0xf0] }
  0x49   :  { %1057 = vmatpush.bf16.msra.mxu1 %v5409_v61  ;;  %v7319_v37 = vld [vmem:[%s9113_s3 + $0x2cc] sm:$0xf]  ;;  %v5025_v42 = vor.u32 %v7255_v34, %v5022_v35  ;;  %v5244_v43 = vld [vmem:[%s9113_s3 + $0x288] sm:$0xf]  ;;  %v4989_v48 = vor.u32 %v7251_v41, %v4988_v40  ;;  %v7352_v28 = vld [vmem:[%s9113_s3 + $0x3d4] sm:$0xf] }
  0x4a   :  { %1032 = vmatpush.bf16.msrb.mxu3 %v5373_v3  ;;  %v5278_v38 = vld [vmem:[%s9113_s3 + $0x2e8] sm:$0xf0]  ;;  %v7315_v44 = vld [vmem:[%s9113_s3 + $0x2a4] sm:$0xf0]  ;;  %v5414_v29 = vld [vmem:[%s9113_s3 + $0x3f0] sm:$0xf0] }
  0x4b   :  { %v5281_v45 = vor.u32 %v7319_v37, %v5278_v38  ;;  %v7247_v46 = vld [vmem:[%s9113_s3 + $0x8c] sm:$0xf]  ;;  %v5245_v51 = vor.u32 %v7315_v44, %v5244_v43  ;;  %v4956_v54 = vld [vmem:[%s9113_s3 + $0x48] sm:$0xf]  ;;  %v5124_v34 = vld [vmem:[%s9113_s3 + $0x190] sm:$0xf]  ;;  %v5161_v37 = vor.u32 %v7288_v25, %v5158_v26  ;;  %v5417_v38 = vor.u32 %v7352_v28, %v5414_v29 }
  0x4c   :  { %1045 = vmatpush.bf16.msra.mxu0 %v5121_v6  ;;  %1020 = vmatpush.bf16.msrb.mxu2 %v5085_v12  ;;  %v4990_v47 = vld [vmem:[%s9113_s3 + $0xa8] sm:$0xf0]  ;;  %v7243_v55 = vld [vmem:[%s9113_s3 + $0x64] sm:$0xf0]  ;;  %v7284_v35 = vld [vmem:[%s9113_s3 + $0x1ac] sm:$0xf0] }
  0x4d   :  { %1058 = vmatpush.bf16.msra.mxu1 %v5377_v9  ;;  %v7311_v49 = vld [vmem:[%s9113_s3 + $0x28c] sm:$0xf]  ;;  %v4993_v52 = vor.u32 %v7247_v46, %v4990_v47  ;;  %v4957_v56 = vor.u32 %v7243_v55, %v4956_v54  ;;  %v5212_v57 = vld [vmem:[%s9113_s3 + $0x248] sm:$0xf]  ;;  %v7348_v40 = vld [vmem:[%s9113_s3 + $0x3ac] sm:$0xf0]  ;;  %v5125_v47 = vor.u32 %v7284_v35, %v5124_v34 }
  0x4e   :  { %1033 = vmatpush.bf16.msrb.mxu3 %v5341_v15  ;;  %v5246_v50 = vld [vmem:[%s9113_s3 + $0x2a8] sm:$0xf0]  ;;  %v7307_v58 = vld [vmem:[%s9113_s3 + $0x264] sm:$0xf0]  ;;  %v122_v15 = vperm.slane %v120_v14, 0 }
  0x4f   :  { %v5249_v53 = vor.u32 %v7311_v49, %v5246_v50  ;;  %v7239_v59 = vld [vmem:[%s9113_s3 + $0x4c] sm:$0xf]  ;;  %v5213_v60 = vor.u32 %v7307_v58, %v5212_v57  ;;  %v4924_v2 = vld [vmem:[%s9113_s3 + $0x8] sm:$0xf]  ;;  %v7280_v41 = vld [vmem:[%s9113_s3 + $0x194] sm:$0xf] }
  0x50   :  { %1046 = vmatpush.bf16.msra.mxu0 %v5089_v18  ;;  %1021 = vmatpush.bf16.msrb.mxu2 %v5053_v24  ;;  %v4958_v61 = vld [vmem:[%s9113_s3 + $0x68] sm:$0xf0]  ;;  %v7235_v3 = vld [vmem:[%s9113_s3 + $0x24] sm:$0xf0]  ;;  %v7356_v24 = vld [vmem:[%s9113_s3 + $0x3ec] sm:$0xf0] }
  0x51   :  { %1059 = vmatpush.bf16.msra.mxu1 %v5345_v21  ;;  %v7303_v62 = vld [vmem:[%s9113_s3 + $0x24c] sm:$0xf]  ;;  %v4961_v0 = vor.u32 %v7239_v59, %v4958_v61  ;;  %v5180_v4 = vld [vmem:[%s9113_s3 + $0x208] sm:$0xf]  ;;  %v4925_v5 = vor.u32 %v7235_v3, %v4924_v2  ;;  %v7292_v21 = vld [vmem:[%s9113_s3 + $0x1ec] sm:$0xf0] }
  0x52   :  { %1034 = vmatpush.bf16.msrb.mxu3 %v5309_v27  ;;  %v5214_v63 = vld [vmem:[%s9113_s3 + $0x268] sm:$0xf0]  ;;  %v7299_v6 = vld [vmem:[%s9113_s3 + $0x224] sm:$0xf0]  ;;  %v5157_v32 = vor.u32 %v7292_v21, %v5156_v20  ;;  %v7344_v43 = vld [vmem:[%s9113_s3 + $0x394] sm:$0xf] }
  0x53   :  { %v5217_v1 = vor.u32 %v7303_v62, %v5214_v63  ;;  %v7231_v7 = vld [vmem:[%s9113_s3 + $0xc] sm:$0xf]  ;;  %v5181_v9 = vor.u32 %v7299_v6, %v5180_v4  ;;  %v5382_v44 = vld [vmem:[%s9113_s3 + $0x3b0] sm:$0xf0]  ;;  %v5092_v49 = vld [vmem:[%s9113_s3 + $0x150] sm:$0xf] }
  0x54   :  { %1047 = vmatpush.bf16.msra.mxu0 %v5057_v30  ;;  %1022 = vmatpush.bf16.msrb.mxu2 %v5021_v36  ;;  %v4926_v8 = vld [vmem:[%s9113_s3 + $0x28] sm:$0xf0]  ;;  %v7276_v50 = vld [vmem:[%s9113_s3 + $0x16c] sm:$0xf0]  ;;  %v7272_v55 = vld [vmem:[%s9113_s3 + $0x154] sm:$0xf] }
  0x55   :  { %1060 = vmatpush.bf16.msra.mxu1 %v5313_v33  ;;  %v4929_v10 = vor.u32 %v7231_v7, %v4926_v8  ;;  %v7295_v11 = vld [vmem:[%s9113_s3 + $0x20c] sm:$0xf]  ;;  %v5413_v33 = vor.u32 %v7356_v24, %v5412_v22  ;;  %v7340_v54 = vld [vmem:[%s9113_s3 + $0x36c] sm:$0xf0]  ;;  %v7336_v57 = vld [vmem:[%s9113_s3 + $0x354] sm:$0xf]  ;;  %v5093_v59 = vor.u32 %v7276_v50, %v5092_v49 }
  0x56   :  { %1035 = vmatpush.bf16.msrb.mxu3 %v5277_v39  ;;  %v5182_v12 = vld [vmem:[%s9113_s3 + $0x228] sm:$0xf0]  ;;  %v5380_v39 = vld [vmem:[%s9113_s3 + $0x390] sm:$0xf]  ;;  %v5350_v58 = vld [vmem:[%s9113_s3 + $0x370] sm:$0xf0] }
  0x57   :  { %v5185_v13 = vor.u32 %v7295_v11, %v5182_v12  ;;  %v5060_v61 = vld [vmem:[%s9113_s3 + $0x110] sm:$0xf]  ;;  %v7264_v3 = vld [vmem:[%s9113_s3 + $0x114] sm:$0xf] }
  0x58   :  { %1048 = vmatpush.bf16.msra.mxu0 %v5025_v42  ;;  %1023 = vmatpush.bf16.msrb.mxu2 %v4989_v48  ;;  %v5126_v42 = vld [vmem:[%s9113_s3 + $0x1b0] sm:$0xf0]  ;;  %v5381_v48 = vor.u32 %v7348_v40, %v5380_v39  ;;  %v7268_v62 = vld [vmem:[%s9113_s3 + $0x12c] sm:$0xf0] }
  0x59   :  { %1061 = vmatpush.bf16.msra.mxu1 %v5281_v45  ;;  %v7332_v2 = vld [vmem:[%s9113_s3 + $0x32c] sm:$0xf0]  ;;  %v5062_v4 = vld [vmem:[%s9113_s3 + $0x130] sm:$0xf0]  ;;  %v5061_v7 = vor.u32 %v7268_v62, %v5060_v61  ;;  %v7289_v61 = vld [vmem:[%s9113_s3 + $0x1dc] sm:$0xf] }
  0x5a   :  { %1036 = vmatpush.bf16.msrb.mxu3 %v5245_v51  ;;  %v5129_v51 = vor.u32 %v7280_v41, %v5126_v42  ;;  %v5318_v6 = vld [vmem:[%s9113_s3 + $0x330] sm:$0xf0]  ;;  %v5065_v11 = vor.u32 %v7264_v3, %v5062_v4  ;;  %v7324_v14 = vld [vmem:[%s9113_s3 + $0x2ec] sm:$0xf0] }
  0x5b   :  { %v4996_v21 = vld [vmem:[%s9113_s3 + $0x90] sm:$0xf]  ;;  %v4998_v28 = vld [vmem:[%s9113_s3 + $0xb0] sm:$0xf0] }
  0x5c   :  { %1049 = vmatpush.bf16.msra.mxu0 %v4993_v52  ;;  %1024 = vmatpush.bf16.msrb.mxu2 %v4957_v56  ;;  %v5385_v52 = vor.u32 %v7344_v43, %v5382_v44  ;;  %v5094_v56 = vld [vmem:[%s9113_s3 + $0x170] sm:$0xf0]  ;;  %v7252_v22 = vld [vmem:[%s9113_s3 + $0xac] sm:$0xf0] }
  0x5d   :  { %1062 = vmatpush.bf16.msra.mxu1 %v5249_v53  ;;  %v5348_v53 = vld [vmem:[%s9113_s3 + $0x350] sm:$0xf]  ;;  %v5097_v63 = vor.u32 %v7272_v55, %v5094_v56  ;;  %v7312_v29 = vld [vmem:[%s9113_s3 + $0x294] sm:$0xf] }
  0x5e   :  { %1037 = vmatpush.bf16.msrb.mxu3 %v5213_v60  ;;  %v5349_v60 = vor.u32 %v7340_v54, %v5348_v53  ;;  %v5252_v25 = vld [vmem:[%s9113_s3 + $0x290] sm:$0xf]  ;;  %v7240_v41 = vld [vmem:[%s9113_s3 + $0x54] sm:$0xf] }
  0x5f   :  { %v7316_v26 = vld [vmem:[%s9113_s3 + $0x2ac] sm:$0xf0]  ;;  %v4966_v42 = vld [vmem:[%s9113_s3 + $0x70] sm:$0xf0] }
  0x60   :  { %1050 = vmatpush.bf16.msra.mxu0 %v4961_v0  ;;  %1025 = vmatpush.bf16.msrb.mxu2 %v4925_v5  ;;  %v5353_v0 = vor.u32 %v7336_v57, %v5350_v58  ;;  %v7328_v5 = vld [vmem:[%s9113_s3 + $0x314] sm:$0xf]  ;;  %v4964_v34 = vld [vmem:[%s9113_s3 + $0x50] sm:$0xf]  ;;  %v5164_v57 = vld [vmem:[%s9113_s3 + $0x1d8] sm:$0xf] }
  0x61   :  { %1063 = vmatpush.bf16.msra.mxu1 %v5217_v1  ;;  %v5316_v1 = vld [vmem:[%s9113_s3 + $0x310] sm:$0xf]  ;;  %v5321_v12 = vor.u32 %v7328_v5, %v5318_v6  ;;  %v7304_v43 = vld [vmem:[%s9113_s3 + $0x254] sm:$0xf]  ;;  %v7293_v58 = vld [vmem:[%s9113_s3 + $0x1f4] sm:$0xf0] }
  0x62   :  { %1038 = vmatpush.bf16.msrb.mxu3 %v5181_v9  ;;  %v5317_v8 = vor.u32 %v7332_v2, %v5316_v1  ;;  %v5028_v9 = vld [vmem:[%s9113_s3 + $0xd0] sm:$0xf]  ;;  %v5222_v44 = vld [vmem:[%s9113_s3 + $0x270] sm:$0xf0]  ;;  %v7353_v1 = vld [vmem:[%s9113_s3 + $0x3dc] sm:$0xf]  ;;  %v5165_v5 = vor.u32 %v7293_v58, %v5164_v57 }
  0x63   :  { %v7244_v35 = vld [vmem:[%s9113_s3 + $0x6c] sm:$0xf0]  ;;  %v7232_v53 = vld [vmem:[%s9113_s3 + $0x14] sm:$0xf]  ;;  %v5422_v2 = vld [vmem:[%s9113_s3 + $0x3f8] sm:$0xf0] }
  0x64   :  { %1051 = vmatpush.bf16.msra.mxu0 %v4929_v10  ;;  %v7260_v10 = vld [vmem:[%s9113_s3 + $0xec] sm:$0xf0]  ;;  %v4934_v54 = vld [vmem:[%s9113_s3 + $0x30] sm:$0xf0]  ;;  %v5004_v57 = vld [vmem:[%s9113_s3 + $0x98] sm:$0xf] }
  0x65   :  { %1064 = vmatpush.bf16.msra.mxu1 %v5185_v13  ;;  %v5284_v13 = vld [vmem:[%s9113_s3 + $0x2d0] sm:$0xf]  ;;  %v7296_v55 = vld [vmem:[%s9113_s3 + $0x214] sm:$0xf]  ;;  %v4937_v3 = vor.u32 %v7232_v53, %v4934_v54  ;;  %v7321_v53 = vld [vmem:[%s9113_s3 + $0x2dc] sm:$0xf] }
  0x66   :  { %v5285_v20 = vor.u32 %v7324_v14, %v5284_v13  ;;  %v5220_v39 = vld [vmem:[%s9113_s3 + $0x250] sm:$0xf]  ;;  %v5190_v56 = vld [vmem:[%s9113_s3 + $0x230] sm:$0xf0]  ;;  %v7281_v13 = vld [vmem:[%s9113_s3 + $0x19c] sm:$0xf] }
  0x67   :  { %v7308_v40 = vld [vmem:[%s9113_s3 + $0x26c] sm:$0xf0]  ;;  %v5193_v4 = vor.u32 %v7296_v55, %v5190_v56  ;;  %v5134_v14 = vld [vmem:[%s9113_s3 + $0x1b8] sm:$0xf0]  ;;  %v7253_v58 = vld [vmem:[%s9113_s3 + $0xb4] sm:$0xf0] }
  0x68   :  { %v5188_v49 = vld [vmem:[%s9113_s3 + $0x210] sm:$0xf]  ;;  %v5294_v54 = vld [vmem:[%s9113_s3 + $0x2f8] sm:$0xf0] }
  0x69   :  { %v7300_v50 = vld [vmem:[%s9113_s3 + $0x22c] sm:$0xf0] }
  0xa4   :  { %v159_v17 = vpop.f32.mrf.mxu0 }
  0xa5   :  { %v160_v18 = vadd.f32 %v159_v17, %v122_v15  ;;  %v7256_v15 = vld [vmem:[%s9113_s3 + $0xd4] sm:$0xf] }
  0xa6   :  { %v7320_v17 = vld [vmem:[%s9113_s3 + $0x2d4] sm:$0xf] }
  0xa7   :  { %v172_v19 = vpop.f32.mrf.mxu1  ;;  %v176_v27 = vmax.f32 %v160_v18, 0.0  ;;  %v5286_v18 = vld [vmem:[%s9113_s3 + $0x2f0] sm:$0xf0] }
  0xa8   :  { %v173_v23 = vadd.f32 %v172_v19, %v123_v16  ;;  %v5030_v16 = vld [vmem:[%s9113_s3 + $0xf0] sm:$0xf0]  ;;  %v5029_v19 = vor.u32 %v7260_v10, %v5028_v9  ;;  %v5289_v24 = vor.u32 %v7320_v17, %v5286_v18  ;;  %v5425_v10 = vor.u32 %v7353_v1, %v5422_v2  ;;  %v7313_v1 = vld [vmem:[%s9113_s3 + $0x29c] sm:$0xf] }
  0xa9   :  { %v8508_v31 = vpack.c.bf16 %v176_v27, %v176_v27  ;;  %v7248_v27 = vld [vmem:[%s9113_s3 + $0x94] sm:$0xf]  ;;  %v5262_v2 = vld [vmem:[%s9113_s3 + $0x2b8] sm:$0xf0] }
  0xaa   :  { %v177_v30 = vmax.f32 %v173_v23, 0.0  ;;  %v5033_v23 = vor.u32 %v7256_v15, %v5030_v16  ;;  %v7345_v15 = vld [vmem:[%s9113_s3 + $0x39c] sm:$0xf] }
  0xab   :  { %974 = vmatmul.bf16.vlgmr.msra.gmra.mxu2 %v8508_v31  ;;  %1000 = vmatmul.bf16.vlgmr.msrb.gmra.mxu0 %v8508_v31  ;;  %v5390_v16 = vld [vmem:[%s9113_s3 + $0x3b8] sm:$0xf0] }
  0xac   :  { %v8516_v36 = vpack.c.bf16 %v177_v30, %v177_v30  ;;  %v161_v45 = vpop.f32.mrf.mxu0  ;;  %1070 = vmatpush.bf16.msra.mxu2 %v5157_v32  ;;  %1096 = vmatpush.bf16.msrb.mxu0 %v5161_v37  ;;  %v5254_v30 = vld [vmem:[%s9113_s3 + $0x2b0] sm:$0xf0]  ;;  %v4997_v32 = vor.u32 %v7252_v22, %v4996_v21  ;;  %v5001_v37 = vor.u32 %v7248_v27, %v4998_v28  ;;  %v7337_v27 = vld [vmem:[%s9113_s3 + $0x35c] sm:$0xf] }
  0xad   :  { %v4932_v45 = vld [vmem:[%s9113_s3 + $0x10] sm:$0xf]  ;;  %v5137_v21 = vor.u32 %v7281_v13, %v5134_v14  ;;  %v5393_v22 = vor.u32 %v7345_v15, %v5390_v16  ;;  %v5358_v28 = vld [vmem:[%s9113_s3 + $0x378] sm:$0xf0] }
  0xae   :  { %987 = vmatmul.bf16.vlgmr.msra.gmra.mxu3 %v8516_v36  ;;  %1013 = vmatmul.bf16.vlgmr.msrb.gmra.mxu1 %v8516_v36  ;;  %v7305_v13 = vld [vmem:[%s9113_s3 + $0x25c] sm:$0xf] }
  0xaf   :  { %1083 = vmatpush.bf16.msra.mxu3 %v5413_v33  ;;  %v174_v46 = vpop.f32.mrf.mxu1  ;;  %1109 = vmatpush.bf16.msrb.mxu1 %v5417_v38  ;;  %v5253_v33 = vor.u32 %v7316_v26, %v5252_v25  ;;  %v5257_v38 = vor.u32 %v7312_v29, %v5254_v30  ;;  %v7273_v25 = vld [vmem:[%s9113_s3 + $0x15c] sm:$0xf] }
  0xb0   :  { %1071 = vmatpush.bf16.msra.mxu2 %v5125_v47  ;;  %1097 = vmatpush.bf16.msrb.mxu0 %v5129_v51  ;;  %v4965_v46 = vor.u32 %v7244_v35, %v4964_v34  ;;  %v5221_v47 = vor.u32 %v7308_v40, %v5220_v39  ;;  %v4969_v51 = vor.u32 %v7240_v41, %v4966_v42  ;;  %v5102_v26 = vld [vmem:[%s9113_s3 + $0x178] sm:$0xf0] }
  0xb1   :  { %v5105_v34 = vor.u32 %v7273_v25, %v5102_v26  ;;  %v5361_v35 = vor.u32 %v7337_v27, %v5358_v28  ;;  %v7265_v39 = vld [vmem:[%s9113_s3 + $0x11c] sm:$0xf]  ;;  %v5908_v27 = vld [vmem:[#allocation10 + $0x3c0] sm:$0xf] }
  0xb2   :  { %v5070_v40 = vld [vmem:[%s9113_s3 + $0x138] sm:$0xf0]  ;;  %v7482_v28 = vld [vmem:[#allocation10 + $0x3dc] sm:$0xf0] }
  0xb3   :  { %1084 = vmatpush.bf16.msra.mxu3 %v5381_v48  ;;  %1110 = vmatpush.bf16.msrb.mxu1 %v5385_v52  ;;  %v7236_v48 = vld [vmem:[%s9113_s3 + $0x2c] sm:$0xf0]  ;;  %v5225_v52 = vor.u32 %v7304_v43, %v5222_v44  ;;  %v7329_v41 = vld [vmem:[%s9113_s3 + $0x31c] sm:$0xf] }
  0xb4   :  { %1072 = vmatpush.bf16.msra.mxu2 %v5093_v59  ;;  %1098 = vmatpush.bf16.msrb.mxu0 %v5097_v63  ;;  %v5420_v59 = vld [vmem:[%s9113_s3 + $0x3d8] sm:$0xf]  ;;  %v4933_v62 = vor.u32 %v7236_v48, %v4932_v45  ;;  %v5189_v63 = vor.u32 %v7300_v50, %v5188_v49  ;;  %v5326_v42 = vld [vmem:[%s9113_s3 + $0x338] sm:$0xf0] }
  0xb5   :  { %v5036_v45 = vld [vmem:[%s9113_s3 + $0xd8] sm:$0xf]  ;;  %v5329_v48 = vor.u32 %v7329_v41, %v5326_v42  ;;  %v5230_v14 = vld [vmem:[%s9113_s3 + $0x278] sm:$0xf0]  ;;  %v5620_v41 = vld [vmem:[#allocation10 + $0x180] sm:$0xf] }
  0xb6   :  { %v5292_v49 = vld [vmem:[%s9113_s3 + $0x2d8] sm:$0xf]  ;;  %v7297_v25 = vld [vmem:[%s9113_s3 + $0x21c] sm:$0xf]  ;;  %v7410_v42 = vld [vmem:[#allocation10 + $0x19c] sm:$0xf0] }
  0xb7   :  { %1085 = vmatpush.bf16.msra.mxu3 %v5349_v60  ;;  %1111 = vmatpush.bf16.msrb.mxu1 %v5353_v0  ;;  %v7357_v60 = vld [vmem:[%s9113_s3 + $0x3f4] sm:$0xf0]  ;;  %v5166_v0 = vld [vmem:[%s9113_s3 + $0x1f8] sm:$0xf0] }
  0xb8   :  { %1073 = vmatpush.bf16.msra.mxu2 %v5061_v7  ;;  %1099 = vmatpush.bf16.msrb.mxu0 %v5065_v11  ;;  %v5421_v6 = vor.u32 %v7357_v60, %v5420_v59  ;;  %v5132_v7 = vld [vmem:[%s9113_s3 + $0x198] sm:$0xf]  ;;  %v5169_v9 = vor.u32 %v7289_v61, %v5166_v0  ;;  %v5297_v60 = vor.u32 %v7321_v53, %v5294_v54  ;;  %v5006_v0 = vld [vmem:[%s9113_s3 + $0xb8] sm:$0xf0]  ;;  %v5556_v53 = vld [vmem:[#allocation10 + $0x100] sm:$0xf] }
  0xb9   :  { %v5388_v11 = vld [vmem:[%s9113_s3 + $0x398] sm:$0xf]  ;;  %v5198_v26 = vld [vmem:[%s9113_s3 + $0x238] sm:$0xf0]  ;;  %v7394_v54 = vld [vmem:[#allocation10 + $0x11c] sm:$0xf0] }
  0xba   :  { %v7325_v50 = vld [vmem:[%s9113_s3 + $0x2f4] sm:$0xf0] }
  0xbb   :  { %1086 = vmatpush.bf16.msra.mxu3 %v5317_v8  ;;  %1112 = vmatpush.bf16.msrb.mxu1 %v5321_v12  ;;  %v7285_v8 = vld [vmem:[%s9113_s3 + $0x1b4] sm:$0xf0]  ;;  %v5293_v56 = vor.u32 %v7325_v50, %v5292_v49  ;;  %v5812_v50 = vld [vmem:[#allocation10 + $0x300] sm:$0xf] }
  0xbc   :  { %1026 = vmatmul.bf16.vlgmr.msrb.gmra.mxu2 %v8508_v31  ;;  %1052 = vmatmul.bf16.vlgmr.msra.gmra.mxu0 %v8508_v31  ;;  %v7349_v12 = vld [vmem:[%s9113_s3 + $0x3b4] sm:$0xf0]  ;;  %v5133_v17 = vor.u32 %v7285_v8, %v5132_v7  ;;  %v5265_v8 = vor.u32 %v7313_v1, %v5262_v2  ;;  %v5748_v2 = vld [vmem:[#allocation10 + $0x280] sm:$0xf] }
  0xbd   :  { %1074 = vmatpush.bf16.msra.mxu2 %v5029_v19  ;;  %1100 = vmatpush.bf16.msrb.mxu0 %v5033_v23  ;;  %v5389_v18 = vor.u32 %v7349_v12, %v5388_v11  ;;  %v5100_v19 = vld [vmem:[%s9113_s3 + $0x158] sm:$0xf]  ;;  %v7241_v11 = vld [vmem:[%s9113_s3 + $0x5c] sm:$0xf] }
  0xbe   :  { %1039 = vmatmul.bf16.vlgmr.msrb.gmra.mxu3 %v8516_v36  ;;  %1065 = vmatmul.bf16.vlgmr.msra.gmra.mxu1 %v8516_v36  ;;  %v5356_v23 = vld [vmem:[%s9113_s3 + $0x358] sm:$0xf]  ;;  %v4974_v12 = vld [vmem:[%s9113_s3 + $0x78] sm:$0xf0] }
  0xbf   :  { %1087 = vmatpush.bf16.msra.mxu3 %v5285_v20  ;;  %1113 = vmatpush.bf16.msrb.mxu1 %v5289_v24  ;;  %v7277_v20 = vld [vmem:[%s9113_s3 + $0x174] sm:$0xf0] }
  0xc0   :  { %v7341_v24 = vld [vmem:[%s9113_s3 + $0x374] sm:$0xf0]  ;;  %v5101_v29 = vor.u32 %v7277_v20, %v5100_v19  ;;  %v4977_v20 = vor.u32 %v7241_v11, %v4974_v12  ;;  %v5460_v11 = vld [vmem:[#allocation10 + $0x40] sm:$0xf] }
  0xc1   :  { %1075 = vmatpush.bf16.msra.mxu2 %v4997_v32  ;;  %1101 = vmatpush.bf16.msrb.mxu0 %v5001_v37  ;;  %v5357_v30 = vor.u32 %v7341_v24, %v5356_v23  ;;  %v5068_v32 = vld [vmem:[%s9113_s3 + $0x118] sm:$0xf]  ;;  %v7233_v23 = vld [vmem:[%s9113_s3 + $0x1c] sm:$0xf]  ;;  %v7370_v12 = vld [vmem:[#allocation10 + $0x5c] sm:$0xf0] }
  0xc2   :  { %v5324_v37 = vld [vmem:[%s9113_s3 + $0x318] sm:$0xf]  ;;  %v4942_v24 = vld [vmem:[%s9113_s3 + $0x38] sm:$0xf0] }
  0xc3   :  { %1088 = vmatpush.bf16.msra.mxu3 %v5253_v33  ;;  %1114 = vmatpush.bf16.msrb.mxu1 %v5257_v38  ;;  %v7269_v33 = vld [vmem:[%s9113_s3 + $0x134] sm:$0xf0] }
  0xc4   :  { %v7333_v38 = vld [vmem:[%s9113_s3 + $0x334] sm:$0xf0]  ;;  %v5069_v43 = vor.u32 %v7269_v33, %v5068_v32 }
  0xc5   :  { %1076 = vmatpush.bf16.msra.mxu2 %v4965_v46  ;;  %1102 = vmatpush.bf16.msrb.mxu0 %v4969_v51  ;;  %v5325_v44 = vor.u32 %v7333_v38, %v5324_v37  ;;  %v7261_v46 = vld [vmem:[%s9113_s3 + $0xf4] sm:$0xf0]  ;;  %v7257_v51 = vld [vmem:[%s9113_s3 + $0xdc] sm:$0xf]  ;;  %v5909_v37 = vor.u32 %v7482_v28, %v5908_v27  ;;  %v5876_v38 = vld [vmem:[#allocation10 + $0x380] sm:$0xf] }
  0xc6   :  { %v5037_v55 = vor.u32 %v7261_v46, %v5036_v45  ;;  %v5260_v61 = vld [vmem:[%s9113_s3 + $0x298] sm:$0xf]  ;;  %v5621_v45 = vor.u32 %v7410_v42, %v5620_v41  ;;  %v7466_v46 = vld [vmem:[#allocation10 + $0x35c] sm:$0xf0] }
  0xc7   :  { %1089 = vmatpush.bf16.msra.mxu3 %v5221_v47  ;;  %1115 = vmatpush.bf16.msrb.mxu1 %v5225_v52  ;;  %v5073_v47 = vor.u32 %v7265_v39, %v5070_v40  ;;  %v5038_v52 = vld [vmem:[%s9113_s3 + $0xf8] sm:$0xf0]  ;;  %v5196_v19 = vld [vmem:[%s9113_s3 + $0x218] sm:$0xf]  ;;  %v7474_v40 = vld [vmem:[#allocation10 + $0x39c] sm:$0xf0] }
  0xc8   :  { %v5041_v59 = vor.u32 %v7257_v51, %v5038_v52  ;;  %v7458_v51 = vld [vmem:[#allocation10 + $0x31c] sm:$0xf0] }
  0xc9   :  { %1077 = vmatpush.bf16.msra.mxu2 %v4933_v62  ;;  %1103 = vmatpush.bf16.msrb.mxu0 %v4937_v3  ;;  %v7317_v62 = vld [vmem:[%s9113_s3 + $0x2b4] sm:$0xf0]  ;;  %v5005_v3 = vor.u32 %v7253_v58, %v5004_v57  ;;  %v5813_v58 = vor.u32 %v7458_v51, %v5812_v50  ;;  %v7730_v28 = vld [vmem:[#allocation10 + $0xb9c] sm:$0xf0] }
  0xca   :  { %v6164_v42 = vld [vmem:[#allocation10 + $0x5c0] sm:$0xf] }
  0xcb   :  { %1090 = vmatpush.bf16.msra.mxu3 %v5189_v63  ;;  %1116 = vmatpush.bf16.msrb.mxu1 %v5193_v4  ;;  %v7249_v63 = vld [vmem:[%s9113_s3 + $0x9c] sm:$0xf]  ;;  %v5261_v4 = vor.u32 %v7317_v62, %v5260_v61  ;;  %v5557_v61 = vor.u32 %v7394_v54, %v5556_v53  ;;  %v7386_v62 = vld [vmem:[#allocation10 + $0xdc] sm:$0xf0] }
  0xcc   :  { %1078 = vmatmul.bf16.vlgmr.msra.gmra.mxu2 %v8508_v31  ;;  %1104 = vmatmul.bf16.vlgmr.msrb.gmra.mxu0 %v8508_v31  ;;  %v5009_v7 = vor.u32 %v7249_v63, %v5006_v0  ;;  %v7602_v63 = vld [vmem:[#allocation10 + $0x79c] sm:$0xf0] }
  0xcd   :  { %1122 = vmatpush.bf16.msrb.mxu2 %v5165_v5  ;;  %1148 = vmatpush.bf16.msra.mxu0 %v5169_v9  ;;  %v4972_v5 = vld [vmem:[%s9113_s3 + $0x58] sm:$0xf]  ;;  %v6132_v54 = vld [vmem:[#allocation10 + $0x580] sm:$0xf] }
  0xce   :  { %1091 = vmatmul.bf16.vlgmr.msra.gmra.mxu3 %v8516_v36  ;;  %1117 = vmatmul.bf16.vlgmr.msrb.gmra.mxu1 %v8516_v36  ;;  %v5228_v9 = vld [vmem:[%s9113_s3 + $0x258] sm:$0xf] }
  0xcf   :  { %1135 = vmatpush.bf16.msrb.mxu3 %v5421_v6  ;;  %1161 = vmatpush.bf16.msra.mxu1 %v5425_v10  ;;  %v7245_v6 = vld [vmem:[%s9113_s3 + $0x74] sm:$0xf0] }
  0xd0   :  { %v7309_v10 = vld [vmem:[%s9113_s3 + $0x274] sm:$0xf0]  ;;  %v4973_v15 = vor.u32 %v7245_v6, %v4972_v5  ;;  %v5492_v5 = vld [vmem:[#allocation10 + $0x80] sm:$0xf] }
  0xd1   :  { %1123 = vmatpush.bf16.msrb.mxu2 %v5133_v17  ;;  %1149 = vmatpush.bf16.msra.mxu0 %v5137_v21  ;;  %v5229_v16 = vor.u32 %v7309_v10, %v5228_v9  ;;  %v4940_v17 = vld [vmem:[%s9113_s3 + $0x18] sm:$0xf]  ;;  %v5233_v21 = vor.u32 %v7305_v13, %v5230_v14  ;;  %v7378_v6 = vld [vmem:[#allocation10 + $0x9c] sm:$0xf0] }
  0xd2   :  { %v5493_v9 = vor.u32 %v7378_v6, %v5492_v5  ;;  %v7434_v10 = vld [vmem:[#allocation10 + $0x25c] sm:$0xf0] }
  0xd3   :  { %1136 = vmatpush.bf16.msrb.mxu3 %v5389_v18  ;;  %1162 = vmatpush.bf16.msra.mxu1 %v5393_v22  ;;  %v7237_v18 = vld [vmem:[%s9113_s3 + $0x34] sm:$0xf0]  ;;  %v5684_v14 = vld [vmem:[#allocation10 + $0x200] sm:$0xf] }
  0xd4   :  { %v7301_v22 = vld [vmem:[%s9113_s3 + $0x234] sm:$0xf0]  ;;  %v4941_v32 = vor.u32 %v7237_v18, %v4940_v17  ;;  %v6932_v17 = vld [vmem:[#allocation10 + $0xbc0] sm:$0xf]  ;;  %s8039_s3 = smov [#allocation13]  }
  0xd5   :  { %1124 = vmatpush.bf16.msrb.mxu2 %v5101_v29  ;;  %1150 = vmatpush.bf16.msra.mxu0 %v5105_v34  ;;  %v5652_v29 = vld [vmem:[#allocation10 + $0x1c0] sm:$0xf]  ;;  %v5197_v33 = vor.u32 %v7301_v22, %v5196_v19  ;;  %v4945_v34 = vor.u32 %v7233_v23, %v4942_v24  ;;  %s4881_s23 = sshll.u32 %s8039_s3, 4  ;;  %s4882_s23 = int_to_ptr.vmem [resolvable:$true] %s4881_s23 }
  0xd6   :  { %v5428_v18 = vld [vmem:[#allocation10] sm:$0xf] }
  0xd7   :  { %1137 = vmatpush.bf16.msrb.mxu3 %v5357_v30  ;;  %1163 = vmatpush.bf16.msra.mxu1 %v5361_v35  ;;  %v7418_v30 = vld [vmem:[#allocation10 + $0x1dc] sm:$0xf0]  ;;  %v5201_v35 = vor.u32 %v7297_v25, %v5198_v26 }
  0xd8   :  { %v5653_v39 = vor.u32 %v7418_v30, %v5652_v29  ;;  %v7362_v19 = vld [vmem:[#allocation10 + $0x1c] sm:$0xf0] }
  0xd9   :  { %1125 = vmatpush.bf16.msrb.mxu2 %v5069_v43  ;;  %1151 = vmatpush.bf16.msra.mxu0 %v5073_v47  ;;  %v5877_v43 = vor.u32 %v7474_v40, %v5876_v38  ;;  %v5588_v47 = vld [vmem:[#allocation10 + $0x140] sm:$0xf]  ;;  %v5429_v24 = vor.u32 %v7362_v19, %v5428_v18 }
  0xda   :  { %v7674_v22 = vld [vmem:[#allocation10 + $0x9dc] sm:$0xf0] }
  0xdb   :  { %1138 = vmatpush.bf16.msrb.mxu3 %v5325_v44  ;;  %1164 = vmatpush.bf16.msra.mxu1 %v5329_v48  ;;  %v5844_v44 = vld [vmem:[#allocation10 + $0x340] sm:$0xf] }
  0xdc   :  { %v7402_v48 = vld [vmem:[#allocation10 + $0x15c] sm:$0xf0]  ;;  %v5845_v49 = vor.u32 %v7466_v46, %v5844_v44 }
  0xdd   :  { %1126 = vmatpush.bf16.msrb.mxu2 %v5037_v55  ;;  %1152 = vmatpush.bf16.msra.mxu0 %v5041_v59  ;;  %v5589_v52 = vor.u32 %v7402_v48, %v5588_v47  ;;  %v6420_v55 = vld [vmem:[#allocation10 + $0x7c0] sm:$0xf] }
  0xde   :  { %v5780_v59 = vld [vmem:[#allocation10 + $0x2c0] sm:$0xf] }
  0xdf   :  { %1139 = vmatpush.bf16.msrb.mxu3 %v5293_v56  ;;  %1165 = vmatpush.bf16.msra.mxu1 %v5297_v60  ;;  %v7610_v56 = vld [vmem:[#allocation10 + $0x7dc] sm:$0xf0] }
  0xe0   :  { %v6421_v57 = vor.u32 %v7610_v56, %v6420_v55  ;;  %v7450_v60 = vld [vmem:[#allocation10 + $0x2dc] sm:$0xf0] }
  0xe1   :  { %1127 = vmatpush.bf16.msrb.mxu2 %v5005_v3  ;;  %1153 = vmatpush.bf16.msra.mxu0 %v5009_v7  ;;  %v5781_v1 = vor.u32 %v7450_v60, %v5780_v59  ;;  %v6900_v26 = vld [vmem:[#allocation10 + $0xb80] sm:$0xf] }
  0xe2   :  { %v6644_v29 = vld [vmem:[#allocation10 + $0x980] sm:$0xf] }
  0xe3   :  { %1140 = vmatpush.bf16.msrb.mxu3 %v5261_v4  ;;  %1166 = vmatpush.bf16.msra.mxu1 %v5265_v8  ;;  %v7442_v4 = vld [vmem:[#allocation10 + $0x29c] sm:$0xf0] }
  0xe4   :  { %v5749_v7 = vor.u32 %v7442_v4, %v5748_v2  ;;  %v5716_v8 = vld [vmem:[#allocation10 + $0x240] sm:$0xf] }
  0xe5   :  { %1128 = vmatpush.bf16.msrb.mxu2 %v4973_v15  ;;  %1154 = vmatpush.bf16.msra.mxu0 %v4977_v20  ;;  %v5717_v13 = vor.u32 %v7434_v10, %v5716_v8  ;;  %v7426_v15 = vld [vmem:[#allocation10 + $0x21c] sm:$0xf0] }
  0xe6   :  { %v7738_v20 = vld [vmem:[#allocation10 + $0xbdc] sm:$0xf0]  ;;  %v5685_v23 = vor.u32 %v7426_v15, %v5684_v14 }
  0xe7   :  { %1141 = vmatpush.bf16.msrb.mxu3 %v5229_v16  ;;  %1167 = vmatpush.bf16.msra.mxu1 %v5233_v21  ;;  %v5461_v16 = vor.u32 %v7370_v12, %v5460_v11  ;;  %v6676_v21 = vld [vmem:[#allocation10 + $0x9c0] sm:$0xf]  ;;  %v6933_v25 = vor.u32 %v7738_v20, %v6932_v17 }
  0xe8   :  { %v6677_v27 = vor.u32 %v7674_v22, %v6676_v21  ;;  %v7666_v30 = vld [vmem:[#allocation10 + $0x99c] sm:$0xf0] }
  0xe9   :  { %1129 = vmatpush.bf16.msrb.mxu2 %v4941_v32  ;;  %1155 = vmatpush.bf16.msra.mxu0 %v4945_v34  ;;  %v6901_v32 = vor.u32 %v7730_v28, %v6900_v26  ;;  %v6645_v34 = vor.u32 %v7666_v30, %v6644_v29  ;;  %v7658_v38 = vld [vmem:[#allocation10 + $0x95c] sm:$0xf0] }
  0xea   :  { %v6836_v40 = vld [vmem:[#allocation10 + $0xb00] sm:$0xf] }
  0xeb   :  { %1142 = vmatpush.bf16.msrb.mxu3 %v5197_v33  ;;  %1168 = vmatpush.bf16.msra.mxu1 %v5201_v35  ;;  %v6868_v33 = vld [vmem:[#allocation10 + $0xb40] sm:$0xf] }
  0xec   :  { %1130 = vmatmul.bf16.vlgmr.msrb.gmra.mxu2 %v8508_v31  ;;  %1156 = vmatmul.bf16.vlgmr.msra.gmra.mxu0 %v8508_v31  ;;  %v5524_v31 = vld [vmem:[#allocation10 + $0xc0] sm:$0xf] }
  0xed   :  { %3965 = vmatpush.bf16.msra.mxu2 %v5653_v39  ;;  %v5525_v3 = vor.u32 %v7386_v62, %v5524_v31  ;;  %v7722_v35 = vld [vmem:[#allocation10 + $0xb5c] sm:$0xf0] }
  0xee   :  { %1143 = vmatmul.bf16.vlgmr.msrb.gmra.mxu3 %v8516_v36  ;;  %1169 = vmatmul.bf16.vlgmr.msra.gmra.mxu1 %v8516_v36  ;;  %v6388_v36 = vld [vmem:[#allocation10 + $0x780] sm:$0xf]  ;;  %v6869_v39 = vor.u32 %v7722_v35, %v6868_v33 }
  0xef   :  { %3978 = vmatpush.bf16.msra.mxu3 %v5909_v37  ;;  %4004 = vmatpush.bf16.msrb.mxu1 %v6421_v57  ;;  %v6389_v0 = vor.u32 %v7602_v63, %v6388_v36  ;;  %v6612_v37 = vld [vmem:[#allocation10 + $0x940] sm:$0xf] }
  0xf0   :  { %v6613_v41 = vor.u32 %v7658_v38, %v6612_v37  ;;  %v7714_v44 = vld [vmem:[#allocation10 + $0xb1c] sm:$0xf0] }
  0xf1   :  { %3966 = vmatpush.bf16.msra.mxu2 %v5621_v45  ;;  %v6580_v46 = vld [vmem:[#allocation10 + $0x900] sm:$0xf]  ;;  %v6837_v51 = vor.u32 %v7714_v44, %v6836_v40 }
  0xf2   :  { %v7650_v47 = vld [vmem:[#allocation10 + $0x91c] sm:$0xf0] }
  0xf3   :  { %3979 = vmatpush.bf16.msra.mxu3 %v5877_v43  ;;  %4005 = vmatpush.bf16.msrb.mxu1 %v6389_v0  ;;  %v7546_v43 = vld [vmem:[#allocation10 + $0x5dc] sm:$0xf0]  ;;  %v6581_v53 = vor.u32 %v7650_v47, %v6580_v46 }
  0xf4   :  { %v6165_v45 = vor.u32 %v7546_v43, %v6164_v42  ;;  %v6356_v48 = vld [vmem:[#allocation10 + $0x740] sm:$0xf]  ;;  %v8888_v43 = vld [vmem:[#allocation8] sm:$0xff] }
  0xf5   :  { %3967 = vmatpush.bf16.msra.mxu2 %v5589_v52  ;;  %v6804_v52 = vld [vmem:[#allocation10 + $0xac0] sm:$0xf]  ;;  %v311_v47 = vperm.slane %v8888_v43, 1 }
  0xf6   :  { %3991 = vmatpush.bf16.msrb.mxu0 %v6165_v45  ;;  %v7538_v55 = vld [vmem:[#allocation10 + $0x59c] sm:$0xf0] }
  0xf7   :  { %3980 = vmatpush.bf16.msra.mxu3 %v5845_v49  ;;  %v7594_v49 = vld [vmem:[#allocation10 + $0x75c] sm:$0xf0]  ;;  %v6133_v57 = vor.u32 %v7538_v55, %v6132_v54 }
  0xf8   :  { %v6357_v50 = vor.u32 %v7594_v49, %v6356_v48  ;;  %v7706_v56 = vld [vmem:[#allocation10 + $0xadc] sm:$0xf0] }
  0xf9   :  { %3968 = vmatpush.bf16.msra.mxu2 %v5557_v61  ;;  %v7642_v59 = vld [vmem:[#allocation10 + $0x8dc] sm:$0xf0]  ;;  %v6805_v62 = vor.u32 %v7706_v56, %v6804_v52 }
  0xfa   :  { %4006 = vmatpush.bf16.msrb.mxu1 %v6357_v50  ;;  %v6324_v60 = vld [vmem:[#allocation10 + $0x700] sm:$0xf]  ;;  %3992 = vmatpush.bf16.msrb.mxu0 %v6133_v57 }
  0xfb   :  { %3981 = vmatpush.bf16.msra.mxu3 %v5813_v58  ;;  %v6548_v58 = vld [vmem:[#allocation10 + $0x8c0] sm:$0xf] }
  0xfc   :  { %v7586_v61 = vld [vmem:[#allocation10 + $0x71c] sm:$0xf0]  ;;  %v6549_v63 = vor.u32 %v7642_v59, %v6548_v58  ;;  %v310_v58 = vperm.slane %v8888_v43, 0  ;;  %v7542_v59 = vld [vmem:[#allocation10 + $0x5c4] sm:$0xf] }
  0xfd   :  { %3969 = vmatpush.bf16.msra.mxu2 %v5525_v3  ;;  %v6325_v31 = vor.u32 %v7586_v61, %v6324_v60  ;;  %v6772_v36 = vld [vmem:[#allocation10 + $0xa80] sm:$0xf]  ;;  %v6166_v60 = vld [vmem:[#allocation10 + $0x5e0] sm:$0xf0] }
  0xfe   :  { %v6100_v0 = vld [vmem:[#allocation10 + $0x540] sm:$0xf] }
  0xff   :  { %3982 = vmatpush.bf16.msra.mxu3 %v5781_v1  ;;  %v7530_v1 = vld [vmem:[#allocation10 + $0x55c] sm:$0xf0]  ;;  %4007 = vmatpush.bf16.msrb.mxu1 %v6325_v31 }
 0x100   :  { %v7698_v2 = vld [vmem:[#allocation10 + $0xa9c] sm:$0xf0]  ;;  %v6101_v3 = vor.u32 %v7530_v1, %v6100_v0 }
 0x101   :  { %3970 = vmatpush.bf16.msra.mxu2 %v5493_v9  ;;  %v6516_v4 = vld [vmem:[#allocation10 + $0x880] sm:$0xf]  ;;  %v6773_v9 = vor.u32 %v7698_v2, %v6772_v36 }
 0x102   :  { %v7634_v5 = vld [vmem:[#allocation10 + $0x89c] sm:$0xf0]  ;;  %3993 = vmatpush.bf16.msrb.mxu0 %v6101_v3 }
 0x103   :  { %3983 = vmatpush.bf16.msra.mxu3 %v5749_v7  ;;  %v6292_v6 = vld [vmem:[#allocation10 + $0x6c0] sm:$0xf]  ;;  %v6517_v11 = vor.u32 %v7634_v5, %v6516_v4  ;;  %v6169_v4 = vor.u32 %v7542_v59, %v6166_v60  ;;  %v7534_v5 = vld [vmem:[#allocation10 + $0x584] sm:$0xf] }
 0x104   :  { %v7578_v7 = vld [vmem:[#allocation10 + $0x6dc] sm:$0xf0] }
 0x105   :  { %3971 = vmatpush.bf16.msra.mxu2 %v5461_v16  ;;  %v6293_v8 = vor.u32 %v7578_v7, %v6292_v6  ;;  %v6740_v10 = vld [vmem:[#allocation10 + $0xa40] sm:$0xf] }
 0x106   :  { %v6068_v12 = vld [vmem:[#allocation10 + $0x500] sm:$0xf] }
 0x107   :  { %3984 = vmatpush.bf16.msra.mxu3 %v5717_v13  ;;  %v7522_v13 = vld [vmem:[#allocation10 + $0x51c] sm:$0xf0]  ;;  %4008 = vmatpush.bf16.msrb.mxu1 %v6293_v8 }
 0x108   :  { %v7690_v14 = vld [vmem:[#allocation10 + $0xa5c] sm:$0xf0]  ;;  %v6069_v15 = vor.u32 %v7522_v13, %v6068_v12 }
 0x109   :  { %3972 = vmatpush.bf16.msra.mxu2 %v5429_v24  ;;  %v6484_v16 = vld [vmem:[#allocation10 + $0x840] sm:$0xf]  ;;  %v6741_v21 = vor.u32 %v7690_v14, %v6740_v10 }
 0x10a   :  { %v7626_v17 = vld [vmem:[#allocation10 + $0x85c] sm:$0xf0]  ;;  %3994 = vmatpush.bf16.msrb.mxu0 %v6069_v15 }
 0x10b   :  { %3985 = vmatpush.bf16.msra.mxu3 %v5685_v23  ;;  %v6260_v18 = vld [vmem:[#allocation10 + $0x680] sm:$0xf]  ;;  %v6485_v23 = vor.u32 %v7626_v17, %v6484_v16  ;;  %v7478_v16 = vld [vmem:[#allocation10 + $0x3c4] sm:$0xf] }
 0x10c   :  { %v7570_v19 = vld [vmem:[#allocation10 + $0x69c] sm:$0xf0]  ;;  %v5910_v17 = vld [vmem:[#allocation10 + $0x3e0] sm:$0xf0] }
 0x10d   :  { %4017 = vmatpush.bf16.msrb.mxu2 %v6677_v27  ;;  %v6261_v20 = vor.u32 %v7570_v19, %v6260_v18  ;;  %v6708_v22 = vld [vmem:[#allocation10 + $0xa00] sm:$0xf] }
 0x10e   :  { %v6036_v24 = vld [vmem:[#allocation10 + $0x4c0] sm:$0xf] }
 0x10f   :  { %4030 = vmatpush.bf16.msrb.mxu3 %v6933_v25  ;;  %v7514_v25 = vld [vmem:[#allocation10 + $0x4dc] sm:$0xf0]  ;;  %4009 = vmatpush.bf16.msrb.mxu1 %v6261_v20 }
 0x110   :  { %v7682_v26 = vld [vmem:[#allocation10 + $0xa1c] sm:$0xf0]  ;;  %v6037_v27 = vor.u32 %v7514_v25, %v6036_v24  ;;  %v313_v24 = vperm.slane %v8888_v43, 3  ;;  %v5913_v25 = vor.u32 %v7478_v16, %v5910_v17  ;;  %v7446_v16 = vld [vmem:[#allocation10 + $0x2c4] sm:$0xf] }
 0x111   :  { %4018 = vmatpush.bf16.msrb.mxu2 %v6645_v34  ;;  %v6452_v28 = vld [vmem:[#allocation10 + $0x800] sm:$0xf]  ;;  %v6709_v34 = vor.u32 %v7682_v26, %v6708_v22  ;;  %v6102_v22 = vld [vmem:[#allocation10 + $0x560] sm:$0xf0] }
 0x112   :  { %v7618_v29 = vld [vmem:[#allocation10 + $0x81c] sm:$0xf0]  ;;  %3995 = vmatpush.bf16.msrb.mxu0 %v6037_v27 }
 0x113   :  { %4031 = vmatpush.bf16.msrb.mxu3 %v6901_v32  ;;  %v6228_v30 = vld [vmem:[#allocation10 + $0x640] sm:$0xf]  ;;  %v6453_v35 = vor.u32 %v7618_v29, %v6452_v28 }
 0x114   :  { %v7562_v32 = vld [vmem:[#allocation10 + $0x65c] sm:$0xf0] }
 0x115   :  { %4019 = vmatpush.bf16.msrb.mxu2 %v6613_v41  ;;  %v6229_v33 = vor.u32 %v7562_v32, %v6228_v30  ;;  %v6004_v37 = vld [vmem:[#allocation10 + $0x480] sm:$0xf]  ;;  %v7470_v30 = vld [vmem:[#allocation10 + $0x384] sm:$0xf] }
 0x116   :  { %v7506_v38 = vld [vmem:[#allocation10 + $0x49c] sm:$0xf0]  ;;  %v5878_v32 = vld [vmem:[#allocation10 + $0x3a0] sm:$0xf0] }
 0x117   :  { %4032 = vmatpush.bf16.msrb.mxu3 %v6869_v39  ;;  %4010 = vmatpush.bf16.msrb.mxu1 %v6229_v33  ;;  %v6005_v39 = vor.u32 %v7506_v38, %v6004_v37  ;;  %v6196_v40 = vld [vmem:[#allocation10 + $0x600] sm:$0xf]  ;;  %v7518_v37 = vld [vmem:[#allocation10 + $0x504] sm:$0xf] }
 0x118   :  { %v7554_v41 = vld [vmem:[#allocation10 + $0x61c] sm:$0xf0] }
 0x119   :  { %4020 = vmatpush.bf16.msrb.mxu2 %v6581_v53  ;;  %3996 = vmatpush.bf16.msrb.mxu0 %v6005_v39  ;;  %v6197_v42 = vor.u32 %v7554_v41, %v6196_v40  ;;  %v5972_v44 = vld [vmem:[#allocation10 + $0x440] sm:$0xf]  ;;  %v6070_v39 = vld [vmem:[#allocation10 + $0x520] sm:$0xf0] }
 0x11a   :  { %v7498_v45 = vld [vmem:[#allocation10 + $0x45c] sm:$0xf0] }
 0x11b   :  { %4033 = vmatpush.bf16.msrb.mxu3 %v6837_v51  ;;  %4011 = vmatpush.bf16.msrb.mxu1 %v6197_v42  ;;  %v5973_v46 = vor.u32 %v7498_v45, %v5972_v44  ;;  %v5940_v48 = vld [vmem:[#allocation10 + $0x400] sm:$0xf]  ;;  %v5881_v45 = vor.u32 %v7470_v30, %v5878_v32 }
 0x11c   :  { %v7490_v49 = vld [vmem:[#allocation10 + $0x41c] sm:$0xf0] }
 0x11d   :  { %4021 = vmatpush.bf16.msrb.mxu2 %v6549_v63  ;;  %3997 = vmatpush.bf16.msrb.mxu0 %v5973_v46  ;;  %v5941_v50 = vor.u32 %v7490_v49, %v5940_v48  ;;  %v7188_v51 = vld [vmem:[#allocation10 + $0xdc0] sm:$0xf]  ;;  %v7462_v48 = vld [vmem:[#allocation10 + $0x344] sm:$0xf] }
 0x11e   :  { %v7802_v52 = vld [vmem:[#allocation10 + $0xddc] sm:$0xf0]  ;;  %v5846_v49 = vld [vmem:[#allocation10 + $0x360] sm:$0xf0] }
 0x11f   :  { %4034 = vmatpush.bf16.msrb.mxu3 %v6805_v62  ;;  %v7189_v54 = vor.u32 %v7802_v52, %v7188_v51  ;;  %v7156_v61 = vld [vmem:[#allocation10 + $0xd80] sm:$0xf]  ;;  %v6073_v51 = vor.u32 %v7518_v37, %v6070_v39  ;;  %v7510_v52 = vld [vmem:[#allocation10 + $0x4c4] sm:$0xf]  ;;  %v5849_v59 = vor.u32 %v7462_v48, %v5846_v49 }
 0x120   :  { %v7794_v31 = vld [vmem:[#allocation10 + $0xd9c] sm:$0xf0]  ;;  %v5750_v39 = vld [vmem:[#allocation10 + $0x2a0] sm:$0xf0] }
 0x121   :  { %4022 = vmatpush.bf16.msrb.mxu2 %v6517_v11  ;;  %3998 = vmatpush.bf16.msrb.mxu0 %v5941_v50  ;;  %v7157_v36 = vor.u32 %v7794_v31, %v7156_v61  ;;  %v8892_v0 = vld [vmem:[#allocation10 + $0xe00] sm:$0x33] }
 0x122   :  { %v3024_v6 = vunpack.c.l.b16 %v8892_v0  ;;  %v7124_v10 = vld [vmem:[#allocation10 + $0xd40] sm:$0xf]  ;;  %v7454_v31 = vld [vmem:[#allocation10 + $0x304] sm:$0xf] }
 0x123   :  { %4035 = vmatpush.bf16.msrb.mxu3 %v6773_v9  ;;  %v6134_v9 = vld [vmem:[#allocation10 + $0x5a0] sm:$0xf0]  ;;  %v7786_v11 = vld [vmem:[#allocation10 + $0xd5c] sm:$0xf0] }
 0x124   :  { %v7125_v14 = vor.u32 %v7786_v11, %v7124_v10  ;;  %v3480_v15 = vpack.c.b16 %v3024_v6, %v3024_v6  ;;  %v6137_v19 = vor.u32 %v7534_v5, %v6134_v9  ;;  %v7092_v26 = vld [vmem:[#allocation10 + $0xd00] sm:$0xf]  ;;  %v7406_v6 = vld [vmem:[#allocation10 + $0x184] sm:$0xf] }
 0x125   :  { %4023 = vmatpush.bf16.msrb.mxu2 %v6485_v23  ;;  %4043 = vmatpush.bf16.msra.mxu0 %v7189_v54  ;;  %v7778_v27 = vld [vmem:[#allocation10 + $0xd1c] sm:$0xf0]  ;;  %v7414_v54 = vld [vmem:[#allocation10 + $0x1c4] sm:$0xf] }
 0x126   :  { %v3942_v20 = vsel %vm3940_vm2, %v3480_v15, 0  ;;  %v7093_v33 = vor.u32 %v7778_v27, %v7092_v26  ;;  %v7060_v40 = vld [vmem:[#allocation10 + $0xcc0] sm:$0xf]  ;;  %v5622_v10 = vld [vmem:[#allocation10 + $0x1a0] sm:$0xf0] }
 0x127   :  { %4036 = vmatpush.bf16.msrb.mxu3 %v6741_v21  ;;  %v7526_v21 = vld [vmem:[#allocation10 + $0x544] sm:$0xf]  ;;  %4063 = vmatpush.bf16.msra.mxu1 %v3942_v20  ;;  %v7770_v41 = vld [vmem:[#allocation10 + $0xcdc] sm:$0xf0] }
 0x128   :  { %v1001_v53 = vpop.f32.mrf.mxu0  ;;  %v7061_v46 = vor.u32 %v7770_v41, %v7060_v40  ;;  %v6996_v11 = vld [vmem:[#allocation10 + $0xc40] sm:$0xf]  ;;  %v5974_v20 = vld [vmem:[#allocation10 + $0x460] sm:$0xf0] }
 0x129   :  { %4024 = vmatpush.bf16.msrb.mxu2 %v6453_v35  ;;  %v1002_v55 = vadd.f32 %v1001_v53, %v311_v47  ;;  %4044 = vmatpush.bf16.msra.mxu0 %v7157_v36  ;;  %v6105_v35 = vor.u32 %v7526_v21, %v6102_v22  ;;  %v312_v47 = vperm.slane %v8888_v43, 2  ;;  %v6038_v53 = vld [vmem:[#allocation10 + $0x4e0] sm:$0xf0]  ;;  %v6964_v26 = vld [vmem:[#allocation10 + $0xc00] sm:$0xf] }
 0x12a   :  { %v7746_v27 = vld [vmem:[#allocation10 + $0xc1c] sm:$0xf0]  ;;  %v7390_v48 = vld [vmem:[#allocation10 + $0x104] sm:$0xf] }
 0x12b   :  { %4037 = vmatpush.bf16.msrb.mxu3 %v6709_v34  ;;  %v1014_v56 = vpop.f32.mrf.mxu1  ;;  %v6965_v32 = vor.u32 %v7746_v27, %v6964_v26  ;;  %v5558_v49 = vld [vmem:[#allocation10 + $0x120] sm:$0xf0] }
 0x12c   :  { %v1015_v57 = vadd.f32 %v1014_v56, %v1002_v55  ;;  %v5654_v55 = vld [vmem:[#allocation10 + $0x1e0] sm:$0xf0]  ;;  %v7028_v56 = vld [vmem:[#allocation10 + $0xc80] sm:$0xf] }
 0x12d   :  { %4045 = vmatpush.bf16.msra.mxu0 %v7125_v14  ;;  %v5657_v5 = vor.u32 %v7414_v54, %v5654_v55  ;;  %v5718_v54 = vld [vmem:[#allocation10 + $0x260] sm:$0xf0] }
 0x12e   :  { %vm1175_vm1 = vcmp.gt.f32.partialorder %v1015_v57, 0.0  ;;  %v1183_v62 = vmul.f32 0.2, %v1015_v57  ;;  %v975_v63 = vpop.f32.mrf.mxu2  ;;  %v7790_v26 = vld [vmem:[#allocation10 + $0xd84] sm:$0xf] }
 0x12f   :  { %v976_v2 = vadd.f32 %v975_v63, %v310_v58  ;;  %v7158_v27 = vld [vmem:[#allocation10 + $0xda0] sm:$0xf0] }
 0x130   :  { %v1191_v1 = vsel %vm1175_vm1, %v1015_v57, %v1183_v62  ;;  %v1003_v8 = vpop.f32.mrf.mxu0  ;;  %v7762_v57 = vld [vmem:[#allocation10 + $0xc9c] sm:$0xf0]  ;;  %v5814_v62 = vld [vmem:[#allocation10 + $0x320] sm:$0xf0]  ;;  %vm4874_vm1 = vmor %vm4873_vm0, %vm4872_vm15 }
 0x131   :  { %v988_v3 = vpop.f32.mrf.mxu3  ;;  %v8895_v7 = vpack.c.bf16 %v1191_v1, %v1191_v1  ;;  %4046 = vmatpush.bf16.msra.mxu0 %v7093_v33  ;;  %v7029_v60 = vor.u32 %v7762_v57, %v7028_v56  ;;  %v5817_v15 = vor.u32 %v7454_v31, %v5814_v62  ;;  %v7606_v33 = vld [vmem:[#allocation10 + $0x7c4] sm:$0xf]  ;;  %v314_v62 = vperm.slane %v8888_v43, 4 }
 0x132   :  { %v989_v12 = vadd.f32 %v988_v3, %v976_v2  ;;  %v6041_v2 = vor.u32 %v7510_v52, %v6038_v53  ;;  %v7502_v3 = vld [vmem:[#allocation10 + $0x484] sm:$0xf] }
 0x133   :  { %v1016_v13 = vpop.f32.mrf.mxu1  ;;  %3986 = vmatmul.bf16.vlgmr.msra.gmra.mxu3 %v8895_v7  ;;  %v6390_v52 = vld [vmem:[#allocation10 + $0x7a0] sm:$0xf0] }
 0x134   :  { %vm1174_vm3 = vcmp.gt.f32.partialorder %v989_v12, 0.0  ;;  %v1182_v18 = vmul.f32 0.2, %v989_v12  ;;  %4095 = vmatpush.bf16.msra.mxu3 %v6169_v4  ;;  %v6006_v4 = vld [vmem:[#allocation10 + $0x4a0] sm:$0xf0] }
 0x135   :  { %4047 = vmatpush.bf16.msra.mxu0 %v7061_v46  ;;  %v6009_v22 = vor.u32 %v7502_v3, %v6006_v4  ;;  %v7430_v53 = vld [vmem:[#allocation10 + $0x244] sm:$0xf] }
 0x136   :  { %v1190_v23 = vsel %vm1174_vm3, %v989_v12, %v1182_v18  ;;  %v977_v29 = vpop.f32.mrf.mxu2  ;;  %v7754_v12 = vld [vmem:[#allocation10 + $0xc5c] sm:$0xf0]  ;;  %v5782_v18 = vld [vmem:[#allocation10 + $0x2e0] sm:$0xf0] }
 0x137   :  { %v8900_v28 = vpack.c.bf16 %v1190_v23, %v1190_v23  ;;  %v6997_v17 = vor.u32 %v7754_v12, %v6996_v11  ;;  %v5625_v23 = vor.u32 %v7406_v6, %v5622_v10  ;;  %v5785_v30 = vor.u32 %v7446_v16, %v5782_v18  ;;  %v5526_v31 = vld [vmem:[#allocation10 + $0xe0] sm:$0xf0] }
 0x138   :  { %4096 = vmatpush.bf16.msra.mxu3 %v6137_v19  ;;  %v7494_v19 = vld [vmem:[#allocation10 + $0x444] sm:$0xf] }
 0x139   :  { %v990_v34 = vpop.f32.mrf.mxu3  ;;  %v1053_v38 = vpop.f32.mrf.mxu0  ;;  %3973 = vmatmul.bf16.vlgmr.msra.gmra.mxu2 %v8900_v28  ;;  %4048 = vmatpush.bf16.msra.mxu0 %v7029_v60  ;;  %v7422_v3 = vld [vmem:[#allocation10 + $0x204] sm:$0xf] }
 0x13a   :  { %v1054_v42 = vadd.f32 %v1053_v38, %v313_v24  ;;  %4082 = vmatpush.bf16.msra.mxu2 %v5913_v25  ;;  %v7398_v24 = vld [vmem:[#allocation10 + $0x144] sm:$0xf] }
 0x13b   :  { %v1066_v44 = vpop.f32.mrf.mxu1  ;;  %v5590_v25 = vld [vmem:[#allocation10 + $0x160] sm:$0xf0] }
 0x13c   :  { %v1067_v50 = vadd.f32 %v1066_v44, %v1054_v42  ;;  %4097 = vmatpush.bf16.msra.mxu3 %v6105_v35  ;;  %v6422_v34 = vld [vmem:[#allocation10 + $0x7e0] sm:$0xf0]  ;;  %v315_v42 = vperm.slane %v8888_v43, 5  ;;  %v5977_v44 = vor.u32 %v7494_v19, %v5974_v20  ;;  %v5593_v46 = vor.u32 %v7398_v24, %v5590_v25 }
 0x13d   :  { %4049 = vmatpush.bf16.msra.mxu0 %v6997_v17  ;;  %v7438_v38 = vld [vmem:[#allocation10 + $0x284] sm:$0xf]  ;;  %v6425_v40 = vor.u32 %v7606_v33, %v6422_v34 }
 0x13e   :  { %vm1177_vm4 = vcmp.gt.f32.partialorder %v1067_v50, 0.0  ;;  %v1185_v58 = vmul.f32 0.2, %v1067_v50  ;;  %4083 = vmatpush.bf16.msra.mxu2 %v5881_v45  ;;  %v7486_v45 = vld [vmem:[#allocation10 + $0x404] sm:$0xf] }
 0x13f   :  { %v1027_v61 = vpop.f32.mrf.mxu2  ;;  %v5686_v4 = vld [vmem:[#allocation10 + $0x220] sm:$0xf0] }
 0x140   :  { %v1193_v36 = vsel %vm1177_vm4, %v1067_v50, %v1185_v58  ;;  %v1028_v63 = vadd.f32 %v1027_v61, %v312_v47  ;;  %4098 = vmatpush.bf16.msra.mxu3 %v6073_v51  ;;  %v5942_v47 = vld [vmem:[#allocation10 + $0x420] sm:$0xf0]  ;;  %v5753_v50 = vor.u32 %v7438_v38, %v5750_v39  ;;  %v5689_v17 = vor.u32 %v7422_v3, %v5686_v4 }
 0x141   :  { %v1040_v1 = vpop.f32.mrf.mxu3  ;;  %v8904_v8 = vpack.c.bf16 %v1193_v36, %v1193_v36  ;;  %v1055_v9 = vpop.f32.mrf.mxu0  ;;  %4050 = vmatpush.bf16.msra.mxu0 %v6965_v32  ;;  %v7598_v51 = vld [vmem:[#allocation10 + $0x784] sm:$0xf]  ;;  %v5945_v58 = vor.u32 %v7486_v45, %v5942_v47  ;;  %v5721_v36 = vor.u32 %v7430_v53, %v5718_v54  ;;  %v7161_v39 = vor.u32 %v7790_v26, %v7158_v27 }
 0x142   :  { %v1041_v13 = vadd.f32 %v1040_v1, %v1028_v63  ;;  %4084 = vmatpush.bf16.msra.mxu2 %v5849_v59  ;;  %v6393_v55 = vor.u32 %v7598_v51, %v6390_v52  ;;  %v5561_v59 = vor.u32 %v7390_v48, %v5558_v49  ;;  %v7382_v61 = vld [vmem:[#allocation10 + $0xc4] sm:$0xf] }
 0x143   :  { %v1068_v14 = vpop.f32.mrf.mxu1  ;;  %4012 = vmatmul.bf16.vlgmr.msrb.gmra.mxu1 %v8904_v8  ;;  %v7590_v63 = vld [vmem:[#allocation10 + $0x744] sm:$0xf]  ;;  %v5529_v10 = vor.u32 %v7382_v61, %v5526_v31 }
 0x144   :  { %vm1176_vm5 = vcmp.gt.f32.partialorder %v1041_v13, 0.0  ;;  %v1184_v21 = vmul.f32 0.2, %v1041_v13  ;;  %4099 = vmatpush.bf16.msra.mxu3 %v6041_v2  ;;  %4069 = vmatpush.bf16.msrb.mxu1 %v5657_v5  ;;  %v6358_v1 = vld [vmem:[#allocation10 + $0x760] sm:$0xf0] }
 0x145   :  { %v6361_v5 = vor.u32 %v7590_v63, %v6358_v1  ;;  %v7798_v6 = vld [vmem:[#allocation10 + $0xdc4] sm:$0xf] }
 0x146   :  { %v1192_v29 = vsel %vm1176_vm5, %v1041_v13, %v1184_v21  ;;  %4085 = vmatpush.bf16.msra.mxu2 %v5817_v15  ;;  %v7190_v9 = vld [vmem:[#allocation10 + $0xde0] sm:$0xf0] }
 0x147   :  { %v8907_v35 = vpack.c.bf16 %v1192_v29, %v1192_v29  ;;  %v1029_v37 = vpop.f32.mrf.mxu2  ;;  %v7374_v11 = vld [vmem:[#allocation10 + $0x84] sm:$0xf]  ;;  %v7193_v19 = vor.u32 %v7798_v6, %v7190_v9 }
 0x148   :  { %4100 = vmatpush.bf16.msra.mxu3 %v6009_v22  ;;  %4070 = vmatpush.bf16.msrb.mxu1 %v5625_v23  ;;  %v5494_v15 = vld [vmem:[#allocation10 + $0xa0] sm:$0xf0] }
 0x149   :  { %v1042_v41 = vpop.f32.mrf.mxu3  ;;  %3999 = vmatmul.bf16.vlgmr.msrb.gmra.mxu0 %v8907_v35  ;;  %v1105_v56 = vpop.f32.mrf.mxu0  ;;  %v7582_v20 = vld [vmem:[#allocation10 + $0x704] sm:$0xf] }
 0x14a   :  { %4086 = vmatpush.bf16.msra.mxu2 %v5785_v30  ;;  %4108 = vmatpush.bf16.msrb.mxu0 %v6425_v40  ;;  %v1106_v60 = vadd.f32 %v1105_v56, %v315_v42  ;;  %v6326_v21 = vld [vmem:[#allocation10 + $0x720] sm:$0xf0]  ;;  %v5497_v30 = vor.u32 %v7374_v11, %v5494_v15 }
 0x14b   :  { %v1118_v57 = vpop.f32.mrf.mxu1  ;;  %v7734_v29 = vld [vmem:[#allocation10 + $0xbc4] sm:$0xf]  ;;  %v6329_v32 = vor.u32 %v7582_v20, %v6326_v21  ;;  %v317_v21 = vperm.slane %v8888_v43, 7 }
 0x14c   :  { %4101 = vmatpush.bf16.msra.mxu3 %v5977_v44  ;;  %4071 = vmatpush.bf16.msrb.mxu1 %v5593_v46  ;;  %v1119_v2 = vadd.f32 %v1118_v57, %v1106_v60  ;;  %v6934_v33 = vld [vmem:[#allocation10 + $0xbe0] sm:$0xf0] }
 0x14d   :  { %v7366_v34 = vld [vmem:[#allocation10 + $0x44] sm:$0xf]  ;;  %v6937_v44 = vor.u32 %v7734_v29, %v6934_v33 }
 0x14e   :  { %4087 = vmatpush.bf16.msra.mxu2 %v5753_v50  ;;  %4109 = vmatpush.bf16.msrb.mxu0 %v6393_v55  ;;  %vm1179_vm6 = vcmp.gt.f32.partialorder %v1119_v2, 0.0  ;;  %v1187_v12 = vmul.f32 0.2, %v1119_v2  ;;  %v5462_v37 = vld [vmem:[#allocation10 + $0x60] sm:$0xf0] }
 0x14f   :  { %v1079_v13 = vpop.f32.mrf.mxu2  ;;  %v7574_v40 = vld [vmem:[#allocation10 + $0x6c4] sm:$0xf]  ;;  %v5465_v48 = vor.u32 %v7366_v34, %v5462_v37  ;;  %v316_v34 = vperm.slane %v8888_v43, 6 }
 0x150   :  { %4102 = vmatpush.bf16.msra.mxu3 %v5945_v58  ;;  %4072 = vmatpush.bf16.msrb.mxu1 %v5561_v59  ;;  %v1080_v16 = vadd.f32 %v1079_v13, %v314_v62  ;;  %v1195_v18 = vsel %vm1179_vm6, %v1119_v2, %v1187_v12  ;;  %v6294_v41 = vld [vmem:[#allocation10 + $0x6e0] sm:$0xf0] }
 0x151   :  { %v1092_v14 = vpop.f32.mrf.mxu3  ;;  %v8912_v22 = vpack.c.bf16 %v1195_v18, %v1195_v18  ;;  %v1107_v24 = vpop.f32.mrf.mxu0  ;;  %v7782_v45 = vld [vmem:[#allocation10 + $0xd44] sm:$0xf]  ;;  %v6297_v55 = vor.u32 %v7574_v40, %v6294_v41 }
 0x152   :  { %4088 = vmatpush.bf16.msra.mxu2 %v5721_v36  ;;  %4110 = vmatpush.bf16.msrb.mxu0 %v6361_v5  ;;  %v1093_v23 = vadd.f32 %v1092_v14, %v1080_v16  ;;  %v7126_v46 = vld [vmem:[#allocation10 + $0xd60] sm:$0xf0] }
 0x153   :  { %v1120_v25 = vpop.f32.mrf.mxu1  ;;  %4038 = vmatmul.bf16.vlgmr.msrb.gmra.mxu3 %v8912_v22  ;;  %v7726_v47 = vld [vmem:[#allocation10 + $0xb84] sm:$0xf]  ;;  %v7129_v56 = vor.u32 %v7782_v45, %v7126_v46  ;;  %v6428_v45 = vld [vmem:[#allocation10 + $0x7c8] sm:$0xf] }
 0x154   :  { %4073 = vmatpush.bf16.msrb.mxu1 %v5529_v10  ;;  %vm1178_vm7 = vcmp.gt.f32.partialorder %v1093_v23, 0.0  ;;  %v1186_v38 = vmul.f32 0.2, %v1093_v23  ;;  %4147 = vmatpush.bf16.msrb.mxu3 %v7193_v19  ;;  %v6902_v52 = vld [vmem:[#allocation10 + $0xba0] sm:$0xf0] }
 0x155   :  { %v7358_v53 = vld [vmem:[#allocation10 + $0x4] sm:$0xf]  ;;  %v6905_v59 = vor.u32 %v7726_v47, %v6902_v52  ;;  %v7611_v46 = vld [vmem:[#allocation10 + $0x7e4] sm:$0xf0] }
 0x156   :  { %4089 = vmatpush.bf16.msra.mxu2 %v5689_v17  ;;  %4111 = vmatpush.bf16.msrb.mxu0 %v6329_v32  ;;  %v1194_v42 = vsel %vm1178_vm7, %v1093_v23, %v1186_v38  ;;  %v5430_v54 = vld [vmem:[#allocation10 + $0x20] sm:$0xf0] }
 0x157   :  { %v8915_v49 = vpack.c.bf16 %v1194_v42, %v1194_v42  ;;  %v1081_v50 = vpop.f32.mrf.mxu2  ;;  %v7566_v57 = vld [vmem:[#allocation10 + $0x684] sm:$0xf]  ;;  %v5433_v31 = vor.u32 %v7358_v53, %v5430_v54 }
 0x158   :  { %4074 = vmatpush.bf16.msrb.mxu1 %v5497_v30  ;;  %4148 = vmatpush.bf16.msrb.mxu3 %v7161_v39  ;;  %v6262_v58 = vld [vmem:[#allocation10 + $0x6a0] sm:$0xf0] }
 0x159   :  { %v1094_v51 = vpop.f32.mrf.mxu3  ;;  %4025 = vmatmul.bf16.vlgmr.msrb.gmra.mxu2 %v8915_v49  ;;  %v7774_v60 = vld [vmem:[#allocation10 + $0xd04] sm:$0xf]  ;;  %v6265_v63 = vor.u32 %v7566_v57, %v6262_v58  ;;  %v3025_v58 = vunpack.c.h.b16 %v8892_v0 }
 0x15a   :  { %4134 = vmatpush.bf16.msrb.mxu2 %v6937_v44  ;;  %v7094_v61 = vld [vmem:[#allocation10 + $0xd20] sm:$0xf0]  ;;  %4112 = vmatpush.bf16.msrb.mxu0 %v6297_v55 }
 0x15b   :  { %v7718_v62 = vld [vmem:[#allocation10 + $0xb44] sm:$0xf]  ;;  %v7097_v1 = vor.u32 %v7774_v60, %v7094_v61 }
 0x15c   :  { %4075 = vmatpush.bf16.msrb.mxu1 %v5465_v48  ;;  %v6870_v36 = vld [vmem:[#allocation10 + $0xb60] sm:$0xf0]  ;;  %4149 = vmatpush.bf16.msrb.mxu3 %v7129_v56  ;;  %v6429_v56 = vor.u32 %v7611_v46, %v6428_v45  ;;  %v6076_v46 = vld [vmem:[#allocation10 + $0x508] sm:$0xf] }
 0x15d   :  { %v7558_v2 = vld [vmem:[#allocation10 + $0x644] sm:$0xf]  ;;  %v6873_v4 = vor.u32 %v7718_v62, %v6870_v36 }
 0x15e   :  { %v6230_v3 = vld [vmem:[#allocation10 + $0x660] sm:$0xf0]  ;;  %4135 = vmatpush.bf16.msrb.mxu2 %v6905_v59  ;;  %4113 = vmatpush.bf16.msrb.mxu0 %v6265_v63  ;;  %v6396_v63 = vld [vmem:[#allocation10 + $0x788] sm:$0xf] }
 0x15f   :  { %v7766_v5 = vld [vmem:[#allocation10 + $0xcc4] sm:$0xf]  ;;  %v6233_v11 = vor.u32 %v7558_v2, %v6230_v3 }
 0x160   :  { %v7062_v6 = vld [vmem:[#allocation10 + $0xce0] sm:$0xf0]  ;;  %4076 = vmatpush.bf16.msrb.mxu1 %v5433_v31  ;;  %4150 = vmatpush.bf16.msrb.mxu3 %v7097_v1  ;;  %v7603_v1 = vld [vmem:[#allocation10 + $0x7a4] sm:$0xf0] }
 0x161   :  { %v7710_v9 = vld [vmem:[#allocation10 + $0xb04] sm:$0xf]  ;;  %v7065_v12 = vor.u32 %v7766_v5, %v7062_v6  ;;  %v7547_v6 = vld [vmem:[#allocation10 + $0x5e4] sm:$0xf0] }
 0x162   :  { %v6838_v10 = vld [vmem:[#allocation10 + $0xb20] sm:$0xf0]  ;;  %4136 = vmatpush.bf16.msrb.mxu2 %v6873_v4  ;;  %4114 = vmatpush.bf16.msrb.mxu0 %v6233_v11  ;;  %v6172_v4 = vld [vmem:[#allocation10 + $0x5c8] sm:$0xf]  ;;  %v3481_v11 = vpack.c.b16 %v3025_v58, %v3025_v58 }
 0x163   :  { %v7550_v13 = vld [vmem:[#allocation10 + $0x604] sm:$0xf]  ;;  %v6841_v15 = vor.u32 %v7710_v9, %v6838_v10  ;;  %4103 = vmatmul.bf16.vlgmr.msra.gmra.mxu3 %v8907_v35  ;;  %v6397_v9 = vor.u32 %v7603_v1, %v6396_v63  ;;  %v7515_v58 = vld [vmem:[#allocation10 + $0x4e4] sm:$0xf0] }
 0x164   :  { %v6198_v14 = vld [vmem:[#allocation10 + $0x620] sm:$0xf0]  ;;  %4151 = vmatpush.bf16.msrb.mxu3 %v7065_v12  ;;  %v6236_v63 = vld [vmem:[#allocation10 + $0x648] sm:$0xf] }
 0x165   :  { %v7758_v16 = vld [vmem:[#allocation10 + $0xc84] sm:$0xf]  ;;  %v6201_v20 = vor.u32 %v7550_v13, %v6198_v14  ;;  %v7563_v1 = vld [vmem:[#allocation10 + $0x664] sm:$0xf0] }
 0x166   :  { %v7030_v17 = vld [vmem:[#allocation10 + $0xca0] sm:$0xf0]  ;;  %4137 = vmatpush.bf16.msrb.mxu2 %v6841_v15  ;;  %v6364_v15 = vld [vmem:[#allocation10 + $0x748] sm:$0xf] }
 0x167   :  { %v7702_v18 = vld [vmem:[#allocation10 + $0xac4] sm:$0xf]  ;;  %v7033_v23 = vor.u32 %v7758_v16, %v7030_v17  ;;  %4115 = vmatpush.bf16.msrb.mxu0 %v6201_v20  ;;  %v7595_v16 = vld [vmem:[#allocation10 + $0x764] sm:$0xf0]  ;;  %v6173_v20 = vor.u32 %v7547_v6, %v6172_v4 }
 0x168   :  { %v6806_v19 = vld [vmem:[#allocation10 + $0xae0] sm:$0xf0]  ;;  %v5628_v4 = vld [vmem:[#allocation10 + $0x188] sm:$0xf] }
 0x169   :  { %v6809_v24 = vor.u32 %v7702_v18, %v6806_v19  ;;  %v7750_v25 = vld [vmem:[#allocation10 + $0xc44] sm:$0xf]  ;;  %v1157_v27 = vpop.f32.mrf.mxu0  ;;  %4152 = vmatpush.bf16.msrb.mxu3 %v7033_v23  ;;  %4090 = vmatmul.bf16.vlgmr.msra.gmra.mxu2 %v8895_v7  ;;  %v7539_v23 = vld [vmem:[#allocation10 + $0x5a4] sm:$0xf0] }
 0x16a   :  { %v6998_v26 = vld [vmem:[#allocation10 + $0xc60] sm:$0xf0]  ;;  %v1158_v33 = vadd.f32 %v1157_v27, %v317_v21  ;;  %v6140_v21 = vld [vmem:[#allocation10 + $0x588] sm:$0xf]  ;;  %v3945_v27 = vsel %vm3940_vm2, %v3481_v11, 0  ;;  %v6237_v11 = vor.u32 %v7563_v1, %v6236_v63 }
 0x16b   :  { %v1170_v29 = vpop.f32.mrf.mxu1  ;;  %v7694_v30 = vld [vmem:[#allocation10 + $0xa84] sm:$0xf]  ;;  %v7001_v37 = vor.u32 %v7750_v25, %v6998_v26  ;;  %4138 = vmatpush.bf16.msrb.mxu2 %v6809_v24  ;;  %v6365_v25 = vor.u32 %v7595_v16, %v6364_v15  ;;  %v7411_v6 = vld [vmem:[#allocation10 + $0x1a4] sm:$0xf0]  ;;  %v7399_v63 = vld [vmem:[#allocation10 + $0x14c] sm:$0xf] }
 0x16c   :  { %v6774_v32 = vld [vmem:[#allocation10 + $0xaa0] sm:$0xf0]  ;;  %v1171_v39 = vadd.f32 %v1170_v29, %v1158_v33  ;;  %v6141_v33 = vor.u32 %v7539_v23, %v6140_v21  ;;  %v7555_v15 = vld [vmem:[#allocation10 + $0x624] sm:$0xf0]  ;;  %v5629_v16 = vor.u32 %v7411_v6, %v5628_v4  ;;  %v5598_v1 = vld [vmem:[#allocation10 + $0x168] sm:$0xf0] }
 0x16d   :  { %v7670_v38 = vld [vmem:[#allocation10 + $0x9c4] sm:$0xf]  ;;  %v6777_v40 = vor.u32 %v7694_v30, %v6774_v32  ;;  %4153 = vmatpush.bf16.msrb.mxu3 %v7001_v37  ;;  %v6332_v30 = vld [vmem:[#allocation10 + $0x708] sm:$0xf] }
 0x16e   :  { %v6678_v41 = vld [vmem:[#allocation10 + $0x9e0] sm:$0xf0]  ;;  %vm1181_vm8 = vcmp.gt.f32.partialorder %v1171_v39, 0.0  ;;  %v1189_v48 = vmul.f32 0.2, %v1171_v39 }
 0x16f   :  { %v7742_v42 = vld [vmem:[#allocation10 + $0xc04] sm:$0xf]  ;;  %v1131_v50 = vpop.f32.mrf.mxu2  ;;  %v6681_v54 = vor.u32 %v7670_v38, %v6678_v41  ;;  %4139 = vmatpush.bf16.msrb.mxu2 %v6777_v40  ;;  %v7587_v32 = vld [vmem:[#allocation10 + $0x724] sm:$0xf0] }
 0x170   :  { %v6966_v44 = vld [vmem:[#allocation10 + $0xc20] sm:$0xf0]  ;;  %v1132_v53 = vadd.f32 %v1131_v50, %v316_v34  ;;  %v1197_v55 = vsel %vm1181_vm8, %v1171_v39, %v1189_v48  ;;  %v6108_v34 = vld [vmem:[#allocation10 + $0x548] sm:$0xf]  ;;  %v6333_v39 = vor.u32 %v7587_v32, %v6332_v30 }
 0x171   :  { %v7686_v47 = vld [vmem:[#allocation10 + $0xa44] sm:$0xf]  ;;  %v1144_v51 = vpop.f32.mrf.mxu3  ;;  %v6969_v43 = vor.u32 %v7742_v42, %v6966_v44  ;;  %v8923_v59 = vpack.c.bf16 %v1197_v55, %v1197_v55  ;;  %v1159_v61 = vpop.f32.mrf.mxu0  ;;  %v7531_v37 = vld [vmem:[#allocation10 + $0x564] sm:$0xf0] }
 0x172   :  { %v6742_v52 = vld [vmem:[#allocation10 + $0xa60] sm:$0xf0]  ;;  %v1145_v60 = vadd.f32 %v1144_v51, %v1132_v53  ;;  %v6300_v42 = vld [vmem:[#allocation10 + $0x6c8] sm:$0xf]  ;;  %v6109_v45 = vor.u32 %v7531_v37, %v6108_v34  ;;  %v5662_v34 = vld [vmem:[#allocation10 + $0x1e8] sm:$0xf0] }
 0x173   :  { %v7662_v57 = vld [vmem:[#allocation10 + $0x984] sm:$0xf]  ;;  %v1172_v31 = vpop.f32.mrf.mxu1  ;;  %v6745_v62 = vor.u32 %v7686_v47, %v6742_v52  ;;  %7218 = vmatmul.msk.bf16.vlgmr.msra.gmra.mxu1 %vm3936_vm9, %v8923_v59  ;;  %4154 = vmatpush.bf16.msrb.mxu3 %v6969_v43  ;;  %v7579_v44 = vld [vmem:[#allocation10 + $0x6e4] sm:$0xf0] }
 0x174   :  { %v6646_v36 = vld [vmem:[#allocation10 + $0x9a0] sm:$0xf0]  ;;  %vm1180_vm10 = vcmp.gt.f32.partialorder %v1145_v60, 0.0  ;;  %v1188_v5 = vmul.f32 0.2, %v1145_v60  ;;  %4121 = vmatpush.bf16.msra.mxu1 %v6681_v54  ;;  %v6301_v50 = vor.u32 %v7579_v44, %v6300_v42 }
 0x175   :  { %v7678_v2 = vld [vmem:[#allocation10 + $0xa04] sm:$0xf]  ;;  %v6649_v0 = vor.u32 %v7662_v57, %v6646_v36  ;;  %4140 = vmatpush.bf16.msrb.mxu2 %v6745_v62  ;;  %v7523_v47 = vld [vmem:[#allocation10 + $0x524] sm:$0xf0] }
 0x176   :  { %v6710_v3 = vld [vmem:[#allocation10 + $0xa20] sm:$0xf0]  ;;  %v1196_v12 = vsel %vm1180_vm10, %v1145_v60, %v1188_v5  ;;  %v6268_v53 = vld [vmem:[#allocation10 + $0x688] sm:$0xf]  ;;  %v6077_v43 = vor.u32 %v7523_v47, %v6076_v46 }
 0x177   :  { %4212 = vmatpush.bf16.msra.mxu3 %v6429_v56  ;;  %v7654_v10 = vld [vmem:[#allocation10 + $0x944] sm:$0xf]  ;;  %v6713_v13 = vor.u32 %v7678_v2, %v6710_v3  ;;  %v8927_v17 = vpack.c.bf16 %v1196_v12, %v1196_v12  ;;  %v1133_v18 = vpop.f32.mrf.mxu2  ;;  %v7571_v54 = vld [vmem:[#allocation10 + $0x6a4] sm:$0xf0] }
 0x178   :  { %v6614_v14 = vld [vmem:[#allocation10 + $0x960] sm:$0xf0]  ;;  %4122 = vmatpush.bf16.msra.mxu1 %v6649_v0  ;;  %v5660_v55 = vld [vmem:[#allocation10 + $0x1c8] sm:$0xf]  ;;  %v6269_v31 = vor.u32 %v7571_v54, %v6268_v53 }
 0x179   :  { %v1146_v19 = vpop.f32.mrf.mxu3  ;;  %v6617_v24 = vor.u32 %v7654_v10, %v6614_v14  ;;  %v7646_v26 = vld [vmem:[#allocation10 + $0x904] sm:$0xf]  ;;  %4051 = vmatmul.bf16.vlgmr.msra.gmra.mxu0 %v8927_v17  ;;  %4141 = vmatpush.bf16.msrb.mxu2 %v6713_v13  ;;  %v7419_v56 = vld [vmem:[#allocation10 + $0x1e4] sm:$0xf0] }
 0x17a   :  { %v6582_v29 = vld [vmem:[#allocation10 + $0x920] sm:$0xf0]  ;;  %4155 = vmatmul.bf16.vlgmr.msrb.gmra.mxu3 %v8927_v17  ;;  %4167 = vmatpush.bf16.msra.mxu0 %v3945_v27  ;;  %v6044_v57 = vld [vmem:[#allocation10 + $0x4c8] sm:$0xf]  ;;  %v5661_v2 = vor.u32 %v7419_v56, %v5660_v55 }
 0x17b   :  { %4213 = vmatpush.bf16.msra.mxu3 %v6397_v9  ;;  %v6585_v38 = vor.u32 %v7646_v26, %v6582_v29  ;;  %v7638_v40 = vld [vmem:[#allocation10 + $0x8c4] sm:$0xf]  ;;  %v8934_v60 = vld [vmem:[#allocation10 + $0xe08] sm:$0x33]  ;;  %v6045_v3 = vor.u32 %v7515_v58, %v6044_v57 }
 0x17c   :  { %4123 = vmatpush.bf16.msra.mxu1 %v6617_v24  ;;  %4142 = vmatmul.bf16.vlgmr.msrb.gmra.mxu2 %v8912_v22  ;;  %v6550_v41 = vld [vmem:[#allocation10 + $0x8e0] sm:$0xf0]  ;;  %v3026_v5 = vunpack.c.l.b16 %v8934_v60  ;;  %v6012_v0 = vld [vmem:[#allocation10 + $0x488] sm:$0xf] }
 0x17d   :  { %4199 = vmatpush.bf16.msra.mxu2 %v6173_v20  ;;  %v6553_v48 = vor.u32 %v7638_v40, %v6550_v41  ;;  %v7630_v51 = vld [vmem:[#allocation10 + $0x884] sm:$0xf]  ;;  %v7507_v9 = vld [vmem:[#allocation10 + $0x4a4] sm:$0xf0] }
 0x17e   :  { %v6518_v52 = vld [vmem:[#allocation10 + $0x8a0] sm:$0xf0]  ;;  %v6204_v14 = vld [vmem:[#allocation10 + $0x608] sm:$0xf]  ;;  %v6013_v18 = vor.u32 %v7507_v9, %v6012_v0  ;;  %v3482_v23 = vpack.c.b16 %v3026_v5, %v3026_v5  ;;  %v5601_v9 = vor.u32 %v7399_v63, %v5598_v1 }
 0x17f   :  { %4214 = vmatpush.bf16.msra.mxu3 %v6365_v25  ;;  %v6521_v61 = vor.u32 %v7630_v51, %v6518_v52  ;;  %v7622_v62 = vld [vmem:[#allocation10 + $0x844] sm:$0xf]  ;;  %v5916_v19 = vld [vmem:[#allocation10 + $0x3c8] sm:$0xf]  ;;  %v6205_v29 = vor.u32 %v7555_v15, %v6204_v14  ;;  %v7407_v51 = vld [vmem:[#allocation10 + $0x18c] sm:$0xf] }
 0x180   :  { %4124 = vmatpush.bf16.msra.mxu1 %v6585_v38  ;;  %v6486_v36 = vld [vmem:[#allocation10 + $0x860] sm:$0xf0]  ;;  %v7483_v20 = vld [vmem:[#allocation10 + $0x3e4] sm:$0xf0]  ;;  %v5630_v52 = vld [vmem:[#allocation10 + $0x1a8] sm:$0xf0] }
 0x181   :  { %4200 = vmatpush.bf16.msra.mxu2 %v6141_v33  ;;  %v6489_v10 = vor.u32 %v7622_v62, %v6486_v36  ;;  %v7614_v12 = vld [vmem:[#allocation10 + $0x804] sm:$0xf]  ;;  %v5596_v21 = vld [vmem:[#allocation10 + $0x148] sm:$0xf]  ;;  %v5917_v30 = vor.u32 %v7483_v20, %v5916_v19  ;;  %v7415_v33 = vld [vmem:[#allocation10 + $0x1cc] sm:$0xf] }
 0x182   :  { %v6454_v13 = vld [vmem:[#allocation10 + $0x820] sm:$0xf0]  ;;  %v7403_v24 = vld [vmem:[#allocation10 + $0x164] sm:$0xf0]  ;;  %v5665_v46 = vor.u32 %v7415_v33, %v5662_v34  ;;  %v5566_v14 = vld [vmem:[#allocation10 + $0x128] sm:$0xf0] }
 0x183   :  { %4215 = vmatpush.bf16.msra.mxu3 %v6333_v39  ;;  %4077 = vmatmul.bf16.vlgmr.msrb.gmra.mxu1 %v8900_v28  ;;  %v5980_v25 = vld [vmem:[#allocation10 + $0x448] sm:$0xf]  ;;  %v6457_v27 = vor.u32 %v7614_v12, %v6454_v13  ;;  %v5597_v37 = vor.u32 %v7403_v24, %v5596_v21  ;;  %v3948_v39 = vsel %vm3940_vm2, %v3482_v23, 0  ;;  %v7391_v13 = vld [vmem:[#allocation10 + $0x10c] sm:$0xf] }
 0x184   :  { %4125 = vmatpush.bf16.msra.mxu1 %v6553_v48  ;;  %v7499_v26 = vld [vmem:[#allocation10 + $0x464] sm:$0xf0]  ;;  %v5569_v23 = vor.u32 %v7391_v13, %v5566_v14  ;;  %v7671_v14 = vld [vmem:[#allocation10 + $0x9cc] sm:$0xf] }
 0x185   :  { %4201 = vmatpush.bf16.msra.mxu2 %v6109_v45  ;;  %v5884_v32 = vld [vmem:[#allocation10 + $0x388] sm:$0xf]  ;;  %v5981_v38 = vor.u32 %v7499_v26, %v5980_v25 }
 0x186   :  { %v7475_v40 = vld [vmem:[#allocation10 + $0x3a4] sm:$0xf0] }
 0x187   :  { %4216 = vmatpush.bf16.msra.mxu3 %v6301_v50  ;;  %v5564_v41 = vld [vmem:[#allocation10 + $0x108] sm:$0xf]  ;;  %v5885_v50 = vor.u32 %v7475_v40, %v5884_v32 }
 0x188   :  { %4126 = vmatpush.bf16.msra.mxu1 %v6521_v61  ;;  %v7395_v42 = vld [vmem:[#allocation10 + $0x124] sm:$0xf0]  ;;  %v5633_v61 = vor.u32 %v7407_v51, %v5630_v52 }
 0x189   :  { %4202 = vmatpush.bf16.msra.mxu2 %v6077_v43  ;;  %4116 = vmatmul.bf16.vlgmr.msrb.gmra.mxu0 %v8904_v8  ;;  %v5948_v44 = vld [vmem:[#allocation10 + $0x408] sm:$0xf]  ;;  %v5565_v53 = vor.u32 %v7395_v42, %v5564_v41 }
 0x18a   :  { %4173 = vmatpush.bf16.msrb.mxu0 %v5661_v2  ;;  %v7491_v45 = vld [vmem:[#allocation10 + $0x424] sm:$0xf0] }
 0x18b   :  { %4217 = vmatpush.bf16.msra.mxu3 %v6269_v31  ;;  %v7196_v47 = vld [vmem:[#allocation10 + $0xdc8] sm:$0xf]  ;;  %v5949_v54 = vor.u32 %v7491_v45, %v5948_v44 }
 0x18c   :  { %4127 = vmatpush.bf16.msra.mxu1 %v6489_v10  ;;  %v7803_v48 = vld [vmem:[#allocation10 + $0xde4] sm:$0xf0] }
 0x18d   :  { %4203 = vmatpush.bf16.msra.mxu2 %v6045_v3  ;;  %v5852_v43 = vld [vmem:[#allocation10 + $0x348] sm:$0xf]  ;;  %v7197_v56 = vor.u32 %v7803_v48, %v7196_v47  ;;  %v5502_v47 = vld [vmem:[#allocation10 + $0xa8] sm:$0xf0] }
 0x18e   :  { %4174 = vmatpush.bf16.msrb.mxu0 %v5629_v16  ;;  %v7467_v55 = vld [vmem:[#allocation10 + $0x364] sm:$0xf0] }
 0x18f   :  { %4218 = vmatpush.bf16.msra.mxu3 %v6237_v11  ;;  %v5532_v57 = vld [vmem:[#allocation10 + $0xc8] sm:$0xf]  ;;  %v5853_v36 = vor.u32 %v7467_v55, %v5852_v43 }
 0x190   :  { %4128 = vmatpush.bf16.msra.mxu1 %v6457_v27  ;;  %v7387_v58 = vld [vmem:[#allocation10 + $0xe4] sm:$0xf0]  ;;  %v7383_v27 = vld [vmem:[#allocation10 + $0xcc] sm:$0xf] }
 0x191   :  { %4204 = vmatpush.bf16.msra.mxu2 %v6013_v18  ;;  %v7164_v31 = vld [vmem:[#allocation10 + $0xd88] sm:$0xf]  ;;  %v5533_v2 = vor.u32 %v7387_v58, %v5532_v57 }
 0x192   :  { %4175 = vmatpush.bf16.msrb.mxu0 %v5597_v37  ;;  %v7795_v62 = vld [vmem:[#allocation10 + $0xda4] sm:$0xf0] }
 0x193   :  { %4219 = vmatpush.bf16.msra.mxu3 %v6205_v29  ;;  %4129 = vmatmul.bf16.vlgmr.msra.gmra.mxu1 %v8915_v49  ;;  %v5820_v3 = vld [vmem:[#allocation10 + $0x308] sm:$0xf]  ;;  %v7165_v5 = vor.u32 %v7795_v62, %v7164_v31  ;;  %v5534_v29 = vld [vmem:[#allocation10 + $0xe8] sm:$0xf0] }
 0x194   :  { %4186 = vmatpush.bf16.msrb.mxu1 %v5917_v30  ;;  %v7459_v4 = vld [vmem:[#allocation10 + $0x324] sm:$0xf0]  ;;  %v5537_v40 = vor.u32 %v7383_v27, %v5534_v29  ;;  %v5470_v31 = vld [vmem:[#allocation10 + $0x68] sm:$0xf0] }
 0x195   :  { %4205 = vmatpush.bf16.msra.mxu2 %v5981_v38  ;;  %v5500_v6 = vld [vmem:[#allocation10 + $0x88] sm:$0xf]  ;;  %v5821_v12 = vor.u32 %v7459_v4, %v5820_v3  ;;  %v7607_v29 = vld [vmem:[#allocation10 + $0x7cc] sm:$0xf] }
 0x196   :  { %4220 = vmatmul.bf16.vlgmr.msra.gmra.mxu3 %v8904_v8  ;;  %4176 = vmatpush.bf16.msrb.mxu0 %v5565_v53  ;;  %v7379_v0 = vld [vmem:[#allocation10 + $0xa4] sm:$0xf0] }
 0x197   :  { %4271 = vmatpush.bf16.msrb.mxu3 %v3948_v39  ;;  %v7132_v10 = vld [vmem:[#allocation10 + $0xd48] sm:$0xf]  ;;  %v5501_v15 = vor.u32 %v7379_v0, %v5500_v6 }
 0x198   :  { %4187 = vmatpush.bf16.msrb.mxu1 %v5885_v50  ;;  %v7787_v11 = vld [vmem:[#allocation10 + $0xd64] sm:$0xf0] }
 0x199   :  { %4206 = vmatpush.bf16.msra.mxu2 %v5949_v54  ;;  %7219 = vmatmul.msk.bf16.vlgmr.msra.gmra.mxu0 %vm3936_vm9, %v8923_v59  ;;  %v5788_v16 = vld [vmem:[#allocation10 + $0x2c8] sm:$0xf]  ;;  %v7133_v19 = vor.u32 %v7787_v11, %v7132_v10  ;;  %v7359_v11 = vld [vmem:[#allocation10 + $0xc] sm:$0xf] }
 0x19a   :  { %4177 = vmatpush.bf16.msrb.mxu0 %v5533_v2  ;;  %v7451_v18 = vld [vmem:[#allocation10 + $0x2e4] sm:$0xf0] }
 0x19b   :  { %4277 = vmatpush.bf16.msra.mxu3 %v5665_v46  ;;  %v5468_v20 = vld [vmem:[#allocation10 + $0x48] sm:$0xf]  ;;  %v5789_v26 = vor.u32 %v7451_v18, %v5788_v16  ;;  %v7375_v46 = vld [vmem:[#allocation10 + $0x8c] sm:$0xf] }
 0x19c   :  { %4188 = vmatpush.bf16.msrb.mxu1 %v5853_v36  ;;  %4207 = vmatmul.bf16.vlgmr.msra.gmra.mxu2 %v8907_v35  ;;  %v7371_v21 = vld [vmem:[#allocation10 + $0x64] sm:$0xf0]  ;;  %v5505_v43 = vor.u32 %v7375_v46, %v5502_v47  ;;  %v7599_v46 = vld [vmem:[#allocation10 + $0x78c] sm:$0xf] }
 0x19d   :  { %4251 = vmatpush.bf16.msrb.mxu2 %v7197_v56  ;;  %v7100_v24 = vld [vmem:[#allocation10 + $0xd08] sm:$0xf]  ;;  %v5469_v30 = vor.u32 %v7371_v21, %v5468_v20  ;;  %v6398_v47 = vld [vmem:[#allocation10 + $0x7a8] sm:$0xf0] }
 0x19e   :  { %v7779_v25 = vld [vmem:[#allocation10 + $0xd24] sm:$0xf0]  ;;  %4178 = vmatpush.bf16.msrb.mxu0 %v5501_v15  ;;  %v6686_v15 = vld [vmem:[#allocation10 + $0x9e8] sm:$0xf0] }
 0x19f   :  { %4278 = vmatpush.bf16.msra.mxu3 %v5633_v61  ;;  %v5756_v32 = vld [vmem:[#allocation10 + $0x288] sm:$0xf]  ;;  %v7101_v34 = vor.u32 %v7779_v25, %v7100_v24  ;;  %v7367_v61 = vld [vmem:[#allocation10 + $0x4c] sm:$0xf]  ;;  %v6689_v27 = vor.u32 %v7671_v14, %v6686_v15 }
 0x1a0   :  { %4189 = vmatpush.bf16.msrb.mxu1 %v5821_v12  ;;  %v7443_v33 = vld [vmem:[#allocation10 + $0x2a4] sm:$0xf0]  ;;  %v5438_v12 = vld [vmem:[#allocation10 + $0x28] sm:$0xf0] }
 0x1a1   :  { %4252 = vmatpush.bf16.msrb.mxu2 %v7165_v5  ;;  %v5436_v37 = vld [vmem:[#allocation10 + $0x8] sm:$0xf]  ;;  %v5757_v45 = vor.u32 %v7443_v33, %v5756_v32  ;;  %v5473_v5 = vor.u32 %v7367_v61, %v5470_v31  ;;  %v7663_v33 = vld [vmem:[#allocation10 + $0x98c] sm:$0xf] }
 0x1a2   :  { %v7363_v38 = vld [vmem:[#allocation10 + $0x24] sm:$0xf0]  ;;  %4179 = vmatpush.bf16.msrb.mxu0 %v5469_v30  ;;  %v6430_v30 = vld [vmem:[#allocation10 + $0x7e8] sm:$0xf0] }
 0x1a3   :  { %4279 = vmatpush.bf16.msra.mxu3 %v5601_v9  ;;  %v6684_v39 = vld [vmem:[#allocation10 + $0x9c8] sm:$0xf]  ;;  %v5437_v48 = vor.u32 %v7363_v38, %v5436_v37  ;;  %v6366_v61 = vld [vmem:[#allocation10 + $0x768] sm:$0xf0] }
 0x1a4   :  { %v7675_v41 = vld [vmem:[#allocation10 + $0x9e4] sm:$0xf0]  ;;  %4190 = vmatpush.bf16.msrb.mxu1 %v5789_v26  ;;  %v7639_v14 = vld [vmem:[#allocation10 + $0x8cc] sm:$0xf] }
 0x1a5   :  { %4253 = vmatpush.bf16.msrb.mxu2 %v7133_v19  ;;  %v7068_v42 = vld [vmem:[#allocation10 + $0xcc8] sm:$0xf]  ;;  %v6685_v52 = vor.u32 %v7675_v41, %v6684_v39  ;;  %v6433_v41 = vor.u32 %v7607_v29, %v6430_v30  ;;  %v6558_v15 = vld [vmem:[#allocation10 + $0x8e8] sm:$0xf0] }
 0x1a6   :  { %v7771_v44 = vld [vmem:[#allocation10 + $0xce4] sm:$0xf0]  ;;  %7220 = vmatmul.msk.bf16.vlgmr.msrb.gmra.mxu3 %vm3936_vm9, %v8923_v59  ;;  %4180 = vmatpush.bf16.msrb.mxu0 %v5437_v48  ;;  %v5918_v29 = vld [vmem:[#allocation10 + $0x3e8] sm:$0xf0] }
 0x1a7   :  { %4280 = vmatpush.bf16.msra.mxu3 %v5569_v23  ;;  %v5724_v50 = vld [vmem:[#allocation10 + $0x248] sm:$0xf]  ;;  %v7069_v53 = vor.u32 %v7771_v44, %v7068_v42  ;;  %v5441_v23 = vor.u32 %v7359_v11, %v5438_v12  ;;  %v7583_v11 = vld [vmem:[#allocation10 + $0x70c] sm:$0xf] }
 0x1a8   :  { %v7435_v51 = vld [vmem:[#allocation10 + $0x264] sm:$0xf0]  ;;  %4191 = vmatpush.bf16.msrb.mxu1 %v5757_v45  ;;  %v6334_v12 = vld [vmem:[#allocation10 + $0x728] sm:$0xf0] }
 0x1a9   :  { %4254 = vmatpush.bf16.msrb.mxu2 %v7101_v34  ;;  %v6652_v54 = vld [vmem:[#allocation10 + $0x988] sm:$0xf]  ;;  %v5725_v58 = vor.u32 %v7435_v51, %v5724_v50  ;;  %4181 = vmatmul.bf16.vlgmr.msrb.gmra.mxu0 %v8900_v28  ;;  %v6654_v34 = vld [vmem:[#allocation10 + $0x9a8] sm:$0xf0] }
 0x1aa   :  { %v7667_v55 = vld [vmem:[#allocation10 + $0x9a4] sm:$0xf0]  ;;  %4225 = vmatpush.bf16.msra.mxu0 %v6685_v52  ;;  %v6657_v45 = vor.u32 %v7663_v33, %v6654_v34  ;;  %v7655_v50 = vld [vmem:[#allocation10 + $0x94c] sm:$0xf] }
 0x1ab   :  { %4281 = vmatpush.bf16.msra.mxu3 %v5537_v40  ;;  %v7036_v56 = vld [vmem:[#allocation10 + $0xc88] sm:$0xf]  ;;  %v6653_v63 = vor.u32 %v7667_v55, %v6652_v54  ;;  %v6622_v51 = vld [vmem:[#allocation10 + $0x968] sm:$0xf0] }
 0x1ac   :  { %v7763_v57 = vld [vmem:[#allocation10 + $0xca4] sm:$0xf0]  ;;  %4192 = vmatpush.bf16.msrb.mxu1 %v5725_v58  ;;  %v7591_v58 = vld [vmem:[#allocation10 + $0x74c] sm:$0xf] }
 0x1ad   :  { %v5692_v62 = vld [vmem:[#allocation10 + $0x208] sm:$0xf]  ;;  %4255 = vmatpush.bf16.msrb.mxu2 %v7069_v53  ;;  %v7037_v1 = vor.u32 %v7763_v57, %v7036_v56  ;;  %v6625_v57 = vor.u32 %v7655_v50, %v6622_v51  ;;  %v7575_v30 = vld [vmem:[#allocation10 + $0x6cc] sm:$0xf] }
 0x1ae   :  { %v7427_v36 = vld [vmem:[#allocation10 + $0x224] sm:$0xf0]  ;;  %4226 = vmatpush.bf16.msra.mxu0 %v6653_v63  ;;  %v6590_v63 = vld [vmem:[#allocation10 + $0x928] sm:$0xf0] }
 0x1af   :  { %v6940_v2 = vld [vmem:[#allocation10 + $0xbc8] sm:$0xf]  ;;  %4282 = vmatpush.bf16.msra.mxu3 %v5505_v43  ;;  %v5693_v10 = vor.u32 %v7427_v36, %v5692_v62  ;;  %v6401_v43 = vor.u32 %v7599_v46, %v6398_v47  ;;  %v7647_v36 = vld [vmem:[#allocation10 + $0x90c] sm:$0xf] }
 0x1b0   :  { %v7739_v3 = vld [vmem:[#allocation10 + $0xbe4] sm:$0xf0]  ;;  %v7471_v47 = vld [vmem:[#allocation10 + $0x38c] sm:$0xf] }
 0x1b1   :  { %v6620_v4 = vld [vmem:[#allocation10 + $0x948] sm:$0xf]  ;;  %v6941_v13 = vor.u32 %v7739_v3, %v6940_v2  ;;  %4256 = vmatpush.bf16.msrb.mxu2 %v7037_v1  ;;  %4193 = vmatpush.bf16.msrb.mxu1 %v5693_v10  ;;  %v8950_v1 = vld [vmem:[#allocation11] sm:$0xff]  ;;  %v5886_v50 = vld [vmem:[#allocation10 + $0x3a8] sm:$0xf0] }
 0x1b2   :  { %v7659_v6 = vld [vmem:[#allocation10 + $0x964] sm:$0xf0]  ;;  %v1660_v10 = vperm.slane %v8950_v1, 0  ;;  %v7567_v51 = vld [vmem:[#allocation10 + $0x68c] sm:$0xf] }
 0x1b3   :  { %v7004_v0 = vld [vmem:[#allocation10 + $0xc48] sm:$0xf]  ;;  %v6621_v16 = vor.u32 %v7659_v6, %v6620_v4  ;;  %4283 = vmatpush.bf16.msra.mxu3 %v5473_v5  ;;  %v6369_v5 = vor.u32 %v7591_v58, %v6366_v61 }
 0x1b4   :  { %v7755_v9 = vld [vmem:[#allocation10 + $0xc64] sm:$0xf0]  ;;  %4194 = vmatmul.bf16.vlgmr.msrb.gmra.mxu1 %v8895_v7 }
 0x1b5   :  { %v7005_v18 = vor.u32 %v7755_v9, %v7004_v0  ;;  %v6908_v19 = vld [vmem:[#allocation10 + $0xb88] sm:$0xf]  ;;  %4238 = vmatpush.bf16.msra.mxu1 %v6941_v13  ;;  %4227 = vmatpush.bf16.msra.mxu0 %v6621_v16  ;;  %v6593_v9 = vor.u32 %v7647_v36, %v6590_v63  ;;  %v7463_v36 = vld [vmem:[#allocation10 + $0x34c] sm:$0xf] }
 0x1b6   :  { %v7731_v20 = vld [vmem:[#allocation10 + $0xba4] sm:$0xf0]  ;;  %v3987_v62 = vpop.f32.mrf.mxu3 }
 0x1b7   :  { %v6588_v21 = vld [vmem:[#allocation10 + $0x908] sm:$0xf]  ;;  %v6909_v32 = vor.u32 %v7731_v20, %v6908_v19  ;;  %4257 = vmatpush.bf16.msrb.mxu2 %v7005_v18  ;;  %4284 = vmatpush.bf16.msra.mxu3 %v5441_v23 }
 0x1b8   :  { %v7651_v24 = vld [vmem:[#allocation10 + $0x924] sm:$0xf0] }
 0x1b9   :  { %v6972_v25 = vld [vmem:[#allocation10 + $0xc08] sm:$0xf]  ;;  %v6589_v37 = vor.u32 %v7651_v24, %v6588_v21  ;;  %4239 = vmatpush.bf16.msra.mxu1 %v6909_v32  ;;  %v6337_v21 = vor.u32 %v7583_v11, %v6334_v12  ;;  %v6302_v32 = vld [vmem:[#allocation10 + $0x6e8] sm:$0xf0] }
 0x1ba   :  { %v7747_v26 = vld [vmem:[#allocation10 + $0xc24] sm:$0xf0]  ;;  %4285 = vmatmul.bf16.vlgmr.msra.gmra.mxu3 %v8900_v28  ;;  %v6305_v46 = vor.u32 %v7575_v30, %v6302_v32  ;;  %v5892_v32 = vld [vmem:[#allocation10 + $0x390] sm:$0xf] }
 0x1bb   :  { %v6973_v38 = vor.u32 %v7747_v26, %v6972_v25  ;;  %v6876_v39 = vld [vmem:[#allocation10 + $0xb48] sm:$0xf]  ;;  %4329 = vmatpush.bf16.msrb.mxu3 %v6689_v27  ;;  %4228 = vmatpush.bf16.msra.mxu0 %v6589_v37  ;;  %v7479_v25 = vld [vmem:[#allocation10 + $0x3cc] sm:$0xf]  ;;  %v6561_v27 = vor.u32 %v7639_v14, %v6558_v15  ;;  %v7484_v14 = vld [vmem:[#allocation10 + $0x3ec] sm:$0xf0] }
 0x1bc   :  { %v7723_v40 = vld [vmem:[#allocation10 + $0xb64] sm:$0xf0]  ;;  %v3974_v20 = vpop.f32.mrf.mxu2  ;;  %v7631_v37 = vld [vmem:[#allocation10 + $0x88c] sm:$0xf] }
 0x1bd   :  { %v6556_v42 = vld [vmem:[#allocation10 + $0x8c8] sm:$0xf]  ;;  %v6877_v48 = vor.u32 %v7723_v40, %v6876_v39  ;;  %4258 = vmatpush.bf16.msrb.mxu2 %v6973_v38  ;;  %v3975_v26 = vadd.f32 %v3974_v20, %v1660_v10  ;;  %v6526_v38 = vld [vmem:[#allocation10 + $0x8a8] sm:$0xf0]  ;;  %v3027_v10 = vunpack.c.h.b16 %v8934_v60 }
 0x1be   :  { %v7643_v44 = vld [vmem:[#allocation10 + $0x8e4] sm:$0xf0]  ;;  %v3989_v34 = vpop.f32.mrf.mxu3  ;;  %v6142_v20 = vld [vmem:[#allocation10 + $0x5a8] sm:$0xf0] }
 0x1bf   :  { %v6557_v52 = vor.u32 %v7643_v44, %v6556_v42  ;;  %v6844_v53 = vld [vmem:[#allocation10 + $0xb08] sm:$0xf]  ;;  %4330 = vmatpush.bf16.msrb.mxu3 %v6657_v45  ;;  %4240 = vmatpush.bf16.msra.mxu1 %v6877_v48  ;;  %v3988_v42 = vadd.f32 %v3987_v62, %v3975_v26  ;;  %v5921_v44 = vor.u32 %v7479_v25, %v5918_v29  ;;  %v6174_v62 = vld [vmem:[#allocation10 + $0x5e8] sm:$0xf0] }
 0x1c0   :  { %v7715_v54 = vld [vmem:[#allocation10 + $0xb24] sm:$0xf0]  ;;  %4259 = vmatmul.bf16.vlgmr.msrb.gmra.mxu2 %v8927_v17  ;;  %v4013_v45 = vpop.f32.mrf.mxu1  ;;  %v6529_v48 = vor.u32 %v7631_v37, %v6526_v38  ;;  %v7551_v25 = vld [vmem:[#allocation10 + $0x60c] sm:$0xf]  ;;  %v3483_v29 = vpack.c.b16 %v3027_v10, %v3027_v10 }
 0x1c1   :  { %4316 = vmatpush.bf16.msra.mxu2 %v6433_v41  ;;  %v6524_v55 = vld [vmem:[#allocation10 + $0x888] sm:$0xf]  ;;  %v6845_v31 = vor.u32 %v7715_v54, %v6844_v53  ;;  %4229 = vmatpush.bf16.msra.mxu0 %v6557_v52  ;;  %v6270_v52 = vld [vmem:[#allocation10 + $0x6a8] sm:$0xf0] }
 0x1c2   :  { %v7635_v56 = vld [vmem:[#allocation10 + $0x8a4] sm:$0xf0]  ;;  %v7623_v54 = vld [vmem:[#allocation10 + $0x84c] sm:$0xf]  ;;  %v6273_v61 = vor.u32 %v7567_v51, %v6270_v52  ;;  %v7468_v51 = vld [vmem:[#allocation10 + $0x36c] sm:$0xf0] }
 0x1c3   :  { %v6525_v2 = vor.u32 %v7635_v56, %v6524_v55  ;;  %v6812_v3 = vld [vmem:[#allocation10 + $0xac8] sm:$0xf]  ;;  %4331 = vmatpush.bf16.msrb.mxu3 %v6625_v57  ;;  %4241 = vmatpush.bf16.msra.mxu1 %v6845_v31  ;;  %v5889_v57 = vor.u32 %v7471_v47, %v5886_v50  ;;  %v7543_v31 = vld [vmem:[#allocation10 + $0x5cc] sm:$0xf]  ;;  %v3951_v47 = vsel %vm3940_vm2, %v3483_v29, 0 }
 0x1c4   :  { %v7707_v4 = vld [vmem:[#allocation10 + $0xae4] sm:$0xf0]  ;;  %v3976_v58 = vpop.f32.mrf.mxu2  ;;  %v6177_v12 = vor.u32 %v7543_v31, %v6174_v62  ;;  %v6206_v26 = vld [vmem:[#allocation10 + $0x628] sm:$0xf0]  ;;  %v5860_v50 = vld [vmem:[#allocation10 + $0x350] sm:$0xf] }
 0x1c5   :  { %4317 = vmatpush.bf16.msra.mxu2 %v6401_v43  ;;  %v6492_v6 = vld [vmem:[#allocation10 + $0x848] sm:$0xf]  ;;  %v6813_v13 = vor.u32 %v7707_v4, %v6812_v3  ;;  %4230 = vmatpush.bf16.msra.mxu0 %v6525_v2  ;;  %v6494_v43 = vld [vmem:[#allocation10 + $0x868] sm:$0xf0]  ;;  %v6209_v37 = vor.u32 %v7551_v25, %v6206_v26  ;;  %v7412_v58 = vld [vmem:[#allocation10 + $0x1ac] sm:$0xf0] }
 0x1c6   :  { %v7627_v0 = vld [vmem:[#allocation10 + $0x864] sm:$0xf0]  ;;  %v6497_v63 = vor.u32 %v7623_v54, %v6494_v43  ;;  %v5854_v2 = vld [vmem:[#allocation10 + $0x368] sm:$0xf0]  ;;  %v5828_v62 = vld [vmem:[#allocation10 + $0x310] sm:$0xf] }
 0x1c7   :  { %v6493_v16 = vor.u32 %v7627_v0, %v6492_v6  ;;  %v6780_v18 = vld [vmem:[#allocation10 + $0xa88] sm:$0xf]  ;;  %4332 = vmatpush.bf16.msrb.mxu3 %v6593_v9  ;;  %4242 = vmatpush.bf16.msra.mxu1 %v6813_v13  ;;  %v7559_v3 = vld [vmem:[#allocation10 + $0x64c] sm:$0xf]  ;;  %v4000_v6 = vpop.f32.mrf.mxu0  ;;  %v5924_v13 = vld [vmem:[#allocation10 + $0x3d0] sm:$0xf]  ;;  %v5857_v15 = vor.u32 %v7463_v36, %v5854_v2 }
 0x1c8   :  { %v7699_v19 = vld [vmem:[#allocation10 + $0xaa4] sm:$0xf0]  ;;  %v6238_v4 = vld [vmem:[#allocation10 + $0x668] sm:$0xf0]  ;;  %v4001_v11 = vadd.f32 %v4000_v6, %v3988_v42  ;;  %v5925_v60 = vor.u32 %v7484_v14, %v5924_v13  ;;  %v5668_v42 = vld [vmem:[#allocation10 + $0x1d0] sm:$0xf] }
 0x1c9   :  { %4318 = vmatpush.bf16.msra.mxu2 %v6369_v5  ;;  %v6460_v23 = vld [vmem:[#allocation10 + $0x808] sm:$0xf]  ;;  %v6781_v33 = vor.u32 %v7699_v19, %v6780_v18  ;;  %4231 = vmatpush.bf16.msra.mxu0 %v6493_v16  ;;  %v7615_v0 = vld [vmem:[#allocation10 + $0x80c] sm:$0xf]  ;;  %v4015_v16 = vpop.f32.mrf.mxu1  ;;  %v6241_v18 = vor.u32 %v7559_v3, %v6238_v4  ;;  %v7460_v36 = vld [vmem:[#allocation10 + $0x32c] sm:$0xf0] }
 0x1ca   :  { %v7619_v24 = vld [vmem:[#allocation10 + $0x824] sm:$0xf0]  ;;  %v6462_v9 = vld [vmem:[#allocation10 + $0x828] sm:$0xf0]  ;;  %v5829_v10 = vor.u32 %v7460_v36, %v5828_v62  ;;  %v7452_v13 = vld [vmem:[#allocation10 + $0x2ec] sm:$0xf0] }
 0x1cb   :  { %v6461_v39 = vor.u32 %v7619_v24, %v6460_v23  ;;  %v6748_v40 = vld [vmem:[#allocation10 + $0xa48] sm:$0xf]  ;;  %4333 = vmatpush.bf16.msrb.mxu3 %v6561_v27  ;;  %4243 = vmatpush.bf16.msra.mxu1 %v6781_v33  ;;  %v7535_v19 = vld [vmem:[#allocation10 + $0x58c] sm:$0xf]  ;;  %v6465_v23 = vor.u32 %v7615_v0, %v6462_v9  ;;  %v8955_v27 = vadd.f32 %v4013_v45, %v4001_v11  ;;  %v7476_v33 = vld [vmem:[#allocation10 + $0x3ac] sm:$0xf0] }
 0x1cc   :  { %v7691_v41 = vld [vmem:[#allocation10 + $0xa64] sm:$0xf0]  ;;  %v5822_v24 = vld [vmem:[#allocation10 + $0x328] sm:$0xf0]  ;;  %v6145_v30 = vor.u32 %v7535_v19, %v6142_v20  ;;  %v5604_v0 = vld [vmem:[#allocation10 + $0x150] sm:$0xf] }
 0x1cd   :  { %4319 = vmatpush.bf16.msra.mxu2 %v6337_v21  ;;  %v6749_v53 = vor.u32 %v7691_v41, %v6748_v40  ;;  %4232 = vmatpush.bf16.msra.mxu0 %v6461_v39  ;;  %v6716_v55 = vld [vmem:[#allocation10 + $0xa08] sm:$0xf]  ;;  %v7455_v21 = vld [vmem:[#allocation10 + $0x30c] sm:$0xf]  ;;  %v7404_v9 = vld [vmem:[#allocation10 + $0x16c] sm:$0xf0] }
 0x1ce   :  { %v7683_v56 = vld [vmem:[#allocation10 + $0xa24] sm:$0xf0]  ;;  %v5825_v34 = vor.u32 %v7455_v21, %v5822_v24  ;;  %v7527_v38 = vld [vmem:[#allocation10 + $0x54c] sm:$0xf]  ;;  %v7396_v24 = vld [vmem:[#allocation10 + $0x12c] sm:$0xf0] }
 0x1cf   :  { %4334 = vmatpush.bf16.msrb.mxu3 %v6529_v48  ;;  %4244 = vmatpush.bf16.msra.mxu1 %v6749_v53  ;;  %v6717_v5 = vor.u32 %v7683_v56, %v6716_v55  ;;  %v6110_v39 = vld [vmem:[#allocation10 + $0x568] sm:$0xf0]  ;;  %v4002_v45 = vpop.f32.mrf.mxu0  ;;  %v7380_v36 = vld [vmem:[#allocation10 + $0xac] sm:$0xf0] }
 0x1d0   :  { %4233 = vmatmul.bf16.vlgmr.msra.gmra.mxu0 %v8915_v49  ;;  %v7447_v40 = vld [vmem:[#allocation10 + $0x2cc] sm:$0xf]  ;;  %v6113_v48 = vor.u32 %v7527_v38, %v6110_v39  ;;  %v5540_v45 = vld [vmem:[#allocation10 + $0xd0] sm:$0xf] }
 0x1d1   :  { %4290 = vmatpush.bf16.msrb.mxu0 %v5921_v44  ;;  %4320 = vmatpush.bf16.msra.mxu2 %v6305_v46  ;;  %v5790_v41 = vld [vmem:[#allocation10 + $0x2e8] sm:$0xf0]  ;;  %v7420_v44 = vld [vmem:[#allocation10 + $0x1ec] sm:$0xf0]  ;;  %v5893_v46 = vor.u32 %v7476_v33, %v5892_v32 }
 0x1d2   :  { %v5793_v52 = vor.u32 %v7447_v40, %v5790_v41  ;;  %v5669_v53 = vor.u32 %v7420_v44, %v5668_v42  ;;  %v7519_v54 = vld [vmem:[#allocation10 + $0x50c] sm:$0xf]  ;;  %v7444_v32 = vld [vmem:[#allocation10 + $0x2ac] sm:$0xf0] }
 0x1d3   :  { %4335 = vmatpush.bf16.msrb.mxu3 %v6497_v63  ;;  %4245 = vmatpush.bf16.msra.mxu1 %v6717_v5  ;;  %v6078_v43 = vld [vmem:[#allocation10 + $0x528] sm:$0xf0] }
 0x1d4   :  { %v7439_v55 = vld [vmem:[#allocation10 + $0x28c] sm:$0xf]  ;;  %v6081_v31 = vor.u32 %v7519_v54, %v6078_v43 }
 0x1d5   :  { %4291 = vmatpush.bf16.msrb.mxu0 %v5889_v57  ;;  %4321 = vmatpush.bf16.msra.mxu2 %v6273_v61  ;;  %v5758_v56 = vld [vmem:[#allocation10 + $0x2a8] sm:$0xf0]  ;;  %v5636_v57 = vld [vmem:[#allocation10 + $0x190] sm:$0xf]  ;;  %v5861_v61 = vor.u32 %v7468_v51, %v5860_v50 }
 0x1d6   :  { %4246 = vmatmul.bf16.vlgmr.msra.gmra.mxu1 %v8912_v22  ;;  %v5761_v63 = vor.u32 %v7439_v55, %v5758_v56  ;;  %v5637_v2 = vor.u32 %v7412_v58, %v5636_v57  ;;  %v7511_v3 = vld [vmem:[#allocation10 + $0x4cc] sm:$0xf]  ;;  %v4039_v20 = vpop.f32.mrf.mxu3  ;;  %v5732_v50 = vld [vmem:[#allocation10 + $0x250] sm:$0xf] }
 0x1d7   :  { %4303 = vmatpush.bf16.msrb.mxu1 %v6177_v12  ;;  %4336 = vmatpush.bf16.msrb.mxu3 %v6465_v23  ;;  %v6046_v4 = vld [vmem:[#allocation10 + $0x4e8] sm:$0xf0]  ;;  %v5796_v12 = vld [vmem:[#allocation10 + $0x2d0] sm:$0xf] }
 0x1d8   :  { %v7431_v5 = vld [vmem:[#allocation10 + $0x24c] sm:$0xf]  ;;  %v6049_v11 = vor.u32 %v7511_v3, %v6046_v4  ;;  %v5572_v23 = vld [vmem:[#allocation10 + $0x110] sm:$0xf]  ;;  %v5797_v25 = vor.u32 %v7452_v13, %v5796_v12 }
 0x1d9   :  { %4292 = vmatpush.bf16.msrb.mxu0 %v5857_v15  ;;  %4322 = vmatpush.bf16.msra.mxu2 %v6241_v18  ;;  %v5726_v6 = vld [vmem:[#allocation10 + $0x268] sm:$0xf0]  ;;  %v5605_v15 = vor.u32 %v7404_v9, %v5604_v0  ;;  %v7436_v51 = vld [vmem:[#allocation10 + $0x26c] sm:$0xf0] }
 0x1da   :  { %4337 = vmatmul.bf16.vlgmr.msrb.gmra.mxu3 %v8915_v49  ;;  %v5729_v14 = vor.u32 %v7431_v5, %v5726_v6  ;;  %v7503_v16 = vld [vmem:[#allocation10 + $0x48c] sm:$0xf]  ;;  %v7428_v3 = vld [vmem:[#allocation10 + $0x22c] sm:$0xf0] }
 0x1db   :  { %4394 = vmatpush.bf16.msra.mxu3 %v5925_v60  ;;  %4304 = vmatpush.bf16.msrb.mxu1 %v6145_v30  ;;  %v6014_v18 = vld [vmem:[#allocation10 + $0x4a8] sm:$0xf0]  ;;  %v5764_v30 = vld [vmem:[#allocation10 + $0x290] sm:$0xf] }
 0x1dc   :  { %v7423_v19 = vld [vmem:[#allocation10 + $0x20c] sm:$0xf]  ;;  %v6017_v29 = vor.u32 %v7503_v16, %v6014_v18  ;;  %v4026_v41 = vpop.f32.mrf.mxu2  ;;  %v5765_v42 = vor.u32 %v7444_v32, %v5764_v30  ;;  %v6948_v5 = vld [vmem:[#allocation10 + $0xbd0] sm:$0xf] }
 0x1dd   :  { %4293 = vmatpush.bf16.msrb.mxu0 %v5825_v34  ;;  %4323 = vmatpush.bf16.msra.mxu2 %v6209_v37  ;;  %v5694_v21 = vld [vmem:[#allocation10 + $0x228] sm:$0xf0]  ;;  %v5573_v34 = vor.u32 %v7396_v24, %v5572_v23  ;;  %v7740_v6 = vld [vmem:[#allocation10 + $0xbec] sm:$0xf0] }
 0x1de   :  { %v7735_v26 = vld [vmem:[#allocation10 + $0xbcc] sm:$0xf]  ;;  %v5697_v33 = vor.u32 %v7423_v19, %v5694_v21  ;;  %v4041_v54 = vpop.f32.mrf.mxu3  ;;  %v5476_v16 = vld [vmem:[#allocation10 + $0x50] sm:$0xf]  ;;  %v6949_v19 = vor.u32 %v7740_v6, %v6948_v5 }
 0x1df   :  { %4395 = vmatpush.bf16.msra.mxu3 %v5893_v46  ;;  %4305 = vmatpush.bf16.msrb.mxu1 %v6113_v48  ;;  %v6942_v60 = vld [vmem:[#allocation10 + $0xbe8] sm:$0xf0]  ;;  %v7388_v46 = vld [vmem:[#allocation10 + $0xec] sm:$0xf0] }
 0x1e0   :  { %4324 = vmatmul.bf16.vlgmr.msra.gmra.mxu2 %v8904_v8  ;;  %v7495_v37 = vld [vmem:[#allocation10 + $0x44c] sm:$0xf]  ;;  %v6945_v39 = vor.u32 %v7735_v26, %v6942_v60  ;;  %v5541_v55 = vor.u32 %v7388_v46, %v5540_v45  ;;  %v7372_v18 = vld [vmem:[#allocation10 + $0x6c] sm:$0xf0] }
 0x1e1   :  { %4375 = vmatpush.bf16.msrb.mxu2 %v3951_v47  ;;  %4294 = vmatpush.bf16.msrb.mxu0 %v5793_v52  ;;  %v5982_v38 = vld [vmem:[#allocation10 + $0x468] sm:$0xf0]  ;;  %v4027_v47 = vadd.f32 %v4026_v41, %v8955_v27  ;;  %v5508_v27 = vld [vmem:[#allocation10 + $0x90] sm:$0xf]  ;;  %v5477_v26 = vor.u32 %v7372_v18, %v5476_v16 }
 0x1e2   :  { %v7727_v40 = vld [vmem:[#allocation10 + $0xb8c] sm:$0xf]  ;;  %v5985_v48 = vor.u32 %v7495_v37, %v5982_v38  ;;  %v5509_v9 = vor.u32 %v7380_v36, %v5508_v27  ;;  %v6916_v21 = vld [vmem:[#allocation10 + $0xb90] sm:$0xf] }
 0x1e3   :  { %4396 = vmatpush.bf16.msra.mxu3 %v5861_v61  ;;  %4306 = vmatpush.bf16.msrb.mxu1 %v6081_v31  ;;  %v6910_v44 = vld [vmem:[#allocation10 + $0xba8] sm:$0xf0]  ;;  %v8962_v61 = vadd.f32 %v4039_v20, %v4027_v47  ;;  %v5733_v31 = vor.u32 %v7436_v51, %v5732_v50  ;;  %v7732_v23 = vld [vmem:[#allocation10 + $0xbac] sm:$0xf0] }
 0x1e4   :  { %v7487_v52 = vld [vmem:[#allocation10 + $0x40c] sm:$0xf]  ;;  %v6913_v43 = vor.u32 %v7727_v40, %v6910_v44  ;;  %v4028_v13 = vpop.f32.mrf.mxu2  ;;  %v6917_v37 = vor.u32 %v7732_v23, %v6916_v21  ;;  %v6692_v38 = vld [vmem:[#allocation10 + $0x9d0] sm:$0xf] }
 0x1e5   :  { %4381 = vmatpush.bf16.msra.mxu2 %v5669_v53  ;;  %4295 = vmatpush.bf16.msrb.mxu0 %v5761_v63  ;;  %v5950_v53 = vld [vmem:[#allocation10 + $0x428] sm:$0xf0]  ;;  %v6884_v41 = vld [vmem:[#allocation10 + $0xb50] sm:$0xf] }
 0x1e6   :  { %v7799_v56 = vld [vmem:[#allocation10 + $0xdcc] sm:$0xf]  ;;  %v5953_v63 = vor.u32 %v7487_v52, %v5950_v53  ;;  %v8967_v24 = vpop.f32.mrf.mxu3  ;;  %v6660_v54 = vld [vmem:[#allocation10 + $0x990] sm:$0xf] }
 0x1e7   :  { %4397 = vmatpush.bf16.msra.mxu3 %v5829_v10  ;;  %4307 = vmatpush.bf16.msrb.mxu1 %v6049_v11  ;;  %v7198_v57 = vld [vmem:[#allocation10 + $0xde8] sm:$0xf0]  ;;  %v6628_v5 = vld [vmem:[#allocation10 + $0x950] sm:$0xf] }
 0x1e8   :  { %v7719_v58 = vld [vmem:[#allocation10 + $0xb4c] sm:$0xf]  ;;  %v7201_v4 = vor.u32 %v7799_v56, %v7198_v57  ;;  %v6852_v57 = vld [vmem:[#allocation10 + $0xb10] sm:$0xf] }
 0x1e9   :  { %4382 = vmatpush.bf16.msra.mxu2 %v5637_v2  ;;  %4296 = vmatpush.bf16.msrb.mxu0 %v5729_v14  ;;  %v6878_v62 = vld [vmem:[#allocation10 + $0xb68] sm:$0xf0]  ;;  %v5700_v2 = vld [vmem:[#allocation10 + $0x210] sm:$0xf] }
 0x1ea   :  { %v6881_v0 = vor.u32 %v7719_v58, %v6878_v62  ;;  %v7791_v10 = vld [vmem:[#allocation10 + $0xd8c] sm:$0xf]  ;;  %v5701_v14 = vor.u32 %v7428_v3, %v5700_v2  ;;  %v7716_v58 = vld [vmem:[#allocation10 + $0xb2c] sm:$0xf0] }
 0x1eb   :  { %4398 = vmatpush.bf16.msra.mxu3 %v5797_v25  ;;  %4308 = vmatpush.bf16.msrb.mxu1 %v6017_v29  ;;  %v7166_v11 = vld [vmem:[#allocation10 + $0xda8] sm:$0xf0]  ;;  %v7660_v6 = vld [vmem:[#allocation10 + $0x96c] sm:$0xf0] }
 0x1ec   :  { %v7711_v12 = vld [vmem:[#allocation10 + $0xb0c] sm:$0xf]  ;;  %v7169_v20 = vor.u32 %v7791_v10, %v7166_v11  ;;  %v7708_v10 = vld [vmem:[#allocation10 + $0xaec] sm:$0xf0]  ;;  %v6629_v16 = vor.u32 %v7660_v6, %v6628_v5 }
 0x1ed   :  { %4383 = vmatpush.bf16.msra.mxu2 %v5605_v15  ;;  %4297 = vmatpush.bf16.msrb.mxu0 %v5697_v33  ;;  %v6846_v15 = vld [vmem:[#allocation10 + $0xb28] sm:$0xf0]  ;;  %v5444_v33 = vld [vmem:[#allocation10 + $0x10] sm:$0xf] }
 0x1ee   :  { %v6849_v25 = vor.u32 %v7711_v12, %v6846_v15  ;;  %v7783_v60 = vld [vmem:[#allocation10 + $0xd4c] sm:$0xf]  ;;  %v6724_v5 = vld [vmem:[#allocation10 + $0xa10] sm:$0xf] }
 0x1ef   :  { %4399 = vmatpush.bf16.msra.mxu3 %v5765_v42  ;;  %4309 = vmatpush.bf16.msrb.mxu1 %v5985_v48  ;;  %v7134_v29 = vld [vmem:[#allocation10 + $0xd68] sm:$0xf0]  ;;  %v7724_v42 = vld [vmem:[#allocation10 + $0xb6c] sm:$0xf0]  ;;  %v8971_v48 = vpop.f32.mrf.mxu2 }
 0x1f0   :  { %4298 = vmatmul.bf16.vlgmr.msrb.gmra.mxu0 %v8895_v7  ;;  %7221 = vmatmul.msk.bf16.vlgmr.msrb.gmra.mxu2 %vm3936_vm9, %v8923_v59  ;;  %v7703_v30 = vld [vmem:[#allocation10 + $0xacc] sm:$0xf]  ;;  %v7137_v40 = vor.u32 %v7783_v60, %v7134_v29  ;;  %v6885_v53 = vor.u32 %v7724_v42, %v6884_v41  ;;  %v7652_v60 = vld [vmem:[#allocation10 + $0x92c] sm:$0xf0] }
 0x1f1   :  { %4384 = vmatpush.bf16.msra.mxu2 %v5573_v34  ;;  %4342 = vmatpush.bf16.msra.mxu0 %v6945_v39  ;;  %v6814_v32 = vld [vmem:[#allocation10 + $0xae8] sm:$0xf0]  ;;  %v7364_v34 = vld [vmem:[#allocation10 + $0x2c] sm:$0xf0] }
 0x1f2   :  { %v7676_v39 = vld [vmem:[#allocation10 + $0x9ec] sm:$0xf0]  ;;  %v6817_v44 = vor.u32 %v7703_v30, %v6814_v32  ;;  %v5445_v45 = vor.u32 %v7364_v34, %v5444_v33  ;;  %v7775_v46 = vld [vmem:[#allocation10 + $0xd0c] sm:$0xf] }
 0x1f3   :  { %4400 = vmatpush.bf16.msra.mxu3 %v5733_v31  ;;  %4310 = vmatpush.bf16.msrb.mxu1 %v5953_v63  ;;  %v7102_v47 = vld [vmem:[#allocation10 + $0xd28] sm:$0xf0]  ;;  %v6693_v50 = vor.u32 %v7676_v39, %v6692_v38  ;;  %v4106_v31 = vpop.f32.mrf.mxu3  ;;  %v6788_v32 = vld [vmem:[#allocation10 + $0xa90] sm:$0xf] }
 0x1f4   :  { %v7695_v51 = vld [vmem:[#allocation10 + $0xa8c] sm:$0xf]  ;;  %v7105_v56 = vor.u32 %v7775_v46, %v7102_v47  ;;  %v7700_v33 = vld [vmem:[#allocation10 + $0xaac] sm:$0xf0] }
 0x1f5   :  { %4343 = vmatpush.bf16.msra.mxu0 %v6913_v43  ;;  %4385 = vmatpush.bf16.msra.mxu2 %v5541_v55  ;;  %v6782_v52 = vld [vmem:[#allocation10 + $0xaa8] sm:$0xf0]  ;;  %v7668_v43 = vld [vmem:[#allocation10 + $0x9ac] sm:$0xf0]  ;;  %v4065_v55 = vpop.f32.mrf.mxu1  ;;  %v6789_v42 = vor.u32 %v7700_v33, %v6788_v32  ;;  %v6150_v32 = vld [vmem:[#allocation10 + $0x5b0] sm:$0xf0] }
 0x1f6   :  { %4311 = vmatmul.bf16.vlgmr.msrb.gmra.mxu1 %v8907_v35  ;;  %v6785_v62 = vor.u32 %v7695_v51, %v6782_v52  ;;  %v7767_v27 = vld [vmem:[#allocation10 + $0xccc] sm:$0xf]  ;;  %v6661_v63 = vor.u32 %v7668_v43, %v6660_v54  ;;  %v7644_v46 = vld [vmem:[#allocation10 + $0x8ec] sm:$0xf0] }
 0x1f7   :  { %4355 = vmatpush.bf16.msra.mxu1 %v7201_v4  ;;  %4401 = vmatpush.bf16.msra.mxu3 %v5701_v14  ;;  %v7070_v36 = vld [vmem:[#allocation10 + $0xce8] sm:$0xf0]  ;;  %v6853_v4 = vor.u32 %v7716_v58, %v6852_v57  ;;  %v4052_v14 = vpop.f32.mrf.mxu0  ;;  %v4093_v15 = vpop.f32.mrf.mxu2  ;;  %v7692_v51 = vld [vmem:[#allocation10 + $0xa6c] sm:$0xf0] }
 0x1f8   :  { %v7687_v2 = vld [vmem:[#allocation10 + $0xa4c] sm:$0xf]  ;;  %v4053_v21 = vadd.f32 %v4052_v14, %v8962_v61  ;;  %v6148_v61 = vld [vmem:[#allocation10 + $0x590] sm:$0xf] }
 0x1f9   :  { %4344 = vmatpush.bf16.msra.mxu0 %v6881_v0  ;;  %4386 = vmatpush.bf16.msra.mxu2 %v5509_v9  ;;  %v6750_v3 = vld [vmem:[#allocation10 + $0xa68] sm:$0xf0]  ;;  %v7073_v0 = vor.u32 %v7767_v27, %v7070_v36  ;;  %v6820_v9 = vld [vmem:[#allocation10 + $0xad0] sm:$0xf] }
 0x1fa   :  { %4402 = vmatmul.bf16.vlgmr.msra.gmra.mxu3 %v8895_v7  ;;  %v6753_v11 = vor.u32 %v7687_v2, %v6750_v3  ;;  %v7759_v12 = vld [vmem:[#allocation10 + $0xc8c] sm:$0xf]  ;;  %v6821_v23 = vor.u32 %v7708_v10, %v6820_v9  ;;  %v8975_v34 = vadd.f32 %v4065_v55, %v4053_v21  ;;  %v6436_v58 = vld [vmem:[#allocation10 + $0x7d0] sm:$0xf]  ;;  %v7544_v10 = vld [vmem:[#allocation10 + $0x5d4] sm:$0xf] }
 0x1fb   :  { %4446 = vmatpush.bf16.msrb.mxu3 %v6949_v19  ;;  %4356 = vmatpush.bf16.msra.mxu1 %v7169_v20  ;;  %v7038_v13 = vld [vmem:[#allocation10 + $0xca8] sm:$0xf0]  ;;  %v6180_v20 = vld [vmem:[#allocation10 + $0x5d0] sm:$0xf] }
 0x1fc   :  { %v7679_v18 = vld [vmem:[#allocation10 + $0xa0c] sm:$0xf]  ;;  %v7041_v30 = vor.u32 %v7759_v12, %v7038_v13  ;;  %v7612_v31 = vld [vmem:[#allocation10 + $0x7ec] sm:$0xf0] }
 0x1fd   :  { %4345 = vmatpush.bf16.msra.mxu0 %v6849_v25  ;;  %4387 = vmatpush.bf16.msra.mxu2 %v5477_v26  ;;  %v6718_v19 = vld [vmem:[#allocation10 + $0xa28] sm:$0xf0]  ;;  %v7548_v25 = vld [vmem:[#allocation10 + $0x5ec] sm:$0xf0]  ;;  %v4067_v29 = vpop.f32.mrf.mxu1  ;;  %v8977_v52 = vpop.f32.mrf.mxu3  ;;  %v6437_v9 = vor.u32 %v7612_v31, %v6436_v58 }
 0x1fe   :  { %v6596_v26 = vld [vmem:[#allocation10 + $0x910] sm:$0xf]  ;;  %v7751_v38 = vld [vmem:[#allocation10 + $0xc4c] sm:$0xf] }
 0x1ff   :  { %4447 = vmatpush.bf16.msrb.mxu3 %v6917_v37  ;;  %4357 = vmatpush.bf16.msra.mxu1 %v7137_v40  ;;  %v6721_v37 = vor.u32 %v7679_v18, %v6718_v19  ;;  %v7006_v39 = vld [vmem:[#allocation10 + $0xc68] sm:$0xf0]  ;;  %v6181_v40 = vor.u32 %v7548_v25, %v6180_v20  ;;  %v6597_v41 = vor.u32 %v7652_v60, %v6596_v26  ;;  %v4054_v55 = vpop.f32.mrf.mxu0  ;;  %v7532_v36 = vld [vmem:[#allocation10 + $0x56c] sm:$0xf0] }
 0x200   :  { %v7009_v47 = vor.u32 %v7751_v38, %v7006_v39  ;;  %v7743_v54 = vld [vmem:[#allocation10 + $0xc0c] sm:$0xf]  ;;  %v7636_v2 = vld [vmem:[#allocation10 + $0x8ac] sm:$0xf0] }
 0x201   :  { %4346 = vmatpush.bf16.msra.mxu0 %v6817_v44  ;;  %4388 = vmatpush.bf16.msra.mxu2 %v5445_v45  ;;  %v7540_v44 = vld [vmem:[#allocation10 + $0x5ac] sm:$0xf0]  ;;  %v6974_v43 = vld [vmem:[#allocation10 + $0xc28] sm:$0xf0] }
 0x202   :  { %v6564_v45 = vld [vmem:[#allocation10 + $0x8d0] sm:$0xf] }
 0x203   :  { %4448 = vmatpush.bf16.msrb.mxu3 %v6885_v53  ;;  %4358 = vmatpush.bf16.msra.mxu1 %v7105_v56  ;;  %v1661_v53 = vperm.slane %v8950_v1, 1  ;;  %v6149_v56 = vor.u32 %v7540_v44, %v6148_v61  ;;  %v6565_v57 = vor.u32 %v7644_v46, %v6564_v45  ;;  %v8981_v1 = vpop.f32.mrf.mxu2  ;;  %v7684_v6 = vld [vmem:[#allocation10 + $0xa2c] sm:$0xf0] }
 0x204   :  { %4389 = vmatmul.bf16.vlgmr.msra.gmra.mxu2 %v8900_v28  ;;  %v6404_v14 = vld [vmem:[#allocation10 + $0x790] sm:$0xf]  ;;  %v6725_v19 = vor.u32 %v7684_v6, %v6724_v5 }
 0x205   :  { %4433 = vmatpush.bf16.msrb.mxu2 %v6693_v50  ;;  %4347 = vmatpush.bf16.msra.mxu0 %v6785_v62  ;;  %v6756_v50 = vld [vmem:[#allocation10 + $0xa50] sm:$0xf]  ;;  %v4078_v3 = vpop.f32.mrf.mxu1  ;;  %v4158_v26 = vpop.f32.mrf.mxu3 }
 0x206   :  { %v6116_v62 = vld [vmem:[#allocation10 + $0x550] sm:$0xf]  ;;  %v6757_v27 = vor.u32 %v7692_v51, %v6756_v50  ;;  %v5926_v50 = vld [vmem:[#allocation10 + $0x3f0] sm:$0xf0] }
 0x207   :  { %4449 = vmatpush.bf16.msrb.mxu3 %v6853_v4  ;;  %4359 = vmatpush.bf16.msra.mxu1 %v7073_v0  ;;  %v6977_v4 = vor.u32 %v7743_v54, %v6974_v43  ;;  %v4079_v0 = vadd.f32 %v4078_v3, %v1661_v53  ;;  %v6117_v12 = vor.u32 %v7532_v36, %v6116_v62  ;;  %v7604_v15 = vld [vmem:[#allocation10 + $0x7ac] sm:$0xf0]  ;;  %v4117_v33 = vpop.f32.mrf.mxu0  ;;  %v7528_v53 = vld [vmem:[#allocation10 + $0x554] sm:$0xf] }
 0x208   :  { %v7524_v20 = vld [vmem:[#allocation10 + $0x52c] sm:$0xf0]  ;;  %v6405_v29 = vor.u32 %v7604_v15, %v6404_v14  ;;  %v6118_v54 = vld [vmem:[#allocation10 + $0x570] sm:$0xf0] }
 0x209   :  { %4434 = vmatpush.bf16.msrb.mxu2 %v6661_v63  ;;  %4348 = vmatpush.bf16.msra.mxu0 %v6753_v11  ;;  %v6532_v63 = vld [vmem:[#allocation10 + $0x890] sm:$0xf]  ;;  %v6182_v11 = vld [vmem:[#allocation10 + $0x5f0] sm:$0xf0]  ;;  %v4092_v18 = vadd.f32 %v8971_v48, %v4079_v0 }
 0x20a   :  { %v6533_v13 = vor.u32 %v7636_v2, %v6532_v63  ;;  %v6500_v21 = vld [vmem:[#allocation10 + $0x850] sm:$0xf]  ;;  %v6185_v25 = vor.u32 %v7544_v10, %v6182_v11  ;;  %v7472_v36 = vld [vmem:[#allocation10 + $0x394] sm:$0xf] }
 0x20b   :  { %4450 = vmatpush.bf16.msrb.mxu3 %v6821_v23  ;;  %4360 = vmatpush.bf16.msra.mxu1 %v7041_v30  ;;  %v7628_v23 = vld [vmem:[#allocation10 + $0x86c] sm:$0xf0]  ;;  %v4105_v60 = vadd.f32 %v8967_v24, %v4092_v18  ;;  %v7536_v30 = vld [vmem:[#allocation10 + $0x594] sm:$0xf]  ;;  %v4145_v24 = vpop.f32.mrf.mxu2 }
 0x20c   :  { %v6501_v38 = vor.u32 %v7628_v23, %v6500_v21  ;;  %v6372_v48 = vld [vmem:[#allocation10 + $0x750] sm:$0xf]  ;;  %v6153_v46 = vor.u32 %v7536_v30, %v6150_v32  ;;  %v5894_v63 = vld [vmem:[#allocation10 + $0x3b0] sm:$0xf0] }
 0x20d   :  { %4435 = vmatpush.bf16.msrb.mxu2 %v6629_v16  ;;  %4349 = vmatpush.bf16.msra.mxu0 %v6721_v37  ;;  %v6084_v16 = vld [vmem:[#allocation10 + $0x510] sm:$0xf]  ;;  %v4080_v45 = vpop.f32.mrf.mxu1  ;;  %v7520_v3 = vld [vmem:[#allocation10 + $0x514] sm:$0xf]  ;;  %v5897_v10 = vor.u32 %v7472_v36, %v5894_v63 }
 0x20e   :  { %v6085_v37 = vor.u32 %v7524_v20, %v6084_v16  ;;  %v7596_v39 = vld [vmem:[#allocation10 + $0x76c] sm:$0xf0]  ;;  %v7464_v16 = vld [vmem:[#allocation10 + $0x354] sm:$0xf] }
 0x20f   :  { %4451 = vmatpush.bf16.msrb.mxu3 %v6789_v42  ;;  %4361 = vmatpush.bf16.msra.mxu1 %v7009_v47  ;;  %v7516_v61 = vld [vmem:[#allocation10 + $0x4ec] sm:$0xf0]  ;;  %v7480_v47 = vld [vmem:[#allocation10 + $0x3d4] sm:$0xf]  ;;  %v6373_v51 = vor.u32 %v7596_v39, %v6372_v48  ;;  %v4119_v5 = vpop.f32.mrf.mxu0 }
 0x210   :  { %4350 = vmatmul.bf16.vlgmr.msra.gmra.mxu0 %v8912_v22  ;;  %v6468_v42 = vld [vmem:[#allocation10 + $0x810] sm:$0xf]  ;;  %v5929_v58 = vor.u32 %v7480_v47, %v5926_v50  ;;  %v5862_v18 = vld [vmem:[#allocation10 + $0x370] sm:$0xf0] }
 0x211   :  { %4407 = vmatpush.bf16.msrb.mxu0 %v6181_v40  ;;  %4436 = vmatpush.bf16.msrb.mxu2 %v6597_v41  ;;  %v6052_v40 = vld [vmem:[#allocation10 + $0x4d0] sm:$0xf]  ;;  %v4118_v41 = vadd.f32 %v4117_v33, %v4105_v60  ;;  %v7512_v23 = vld [vmem:[#allocation10 + $0x4d4] sm:$0xf]  ;;  %v5865_v32 = vor.u32 %v7464_v16, %v5862_v18 }
 0x212   :  { %v7620_v44 = vld [vmem:[#allocation10 + $0x82c] sm:$0xf0]  ;;  %v6053_v43 = vor.u32 %v7516_v61, %v6052_v40  ;;  %v5830_v40 = vld [vmem:[#allocation10 + $0x330] sm:$0xf0] }
 0x213   :  { %4452 = vmatpush.bf16.msrb.mxu3 %v6757_v27  ;;  %4362 = vmatpush.bf16.msra.mxu1 %v6977_v4  ;;  %v6469_v55 = vor.u32 %v7620_v44, %v6468_v42  ;;  %v6020_v31 = vld [vmem:[#allocation10 + $0x490] sm:$0xf]  ;;  %v6121_v27 = vor.u32 %v7528_v53, %v6118_v54  ;;  %v6086_v4 = vld [vmem:[#allocation10 + $0x530] sm:$0xf0] }
 0x214   :  { %v7508_v62 = vld [vmem:[#allocation10 + $0x4ac] sm:$0xf0]  ;;  %v6089_v15 = vor.u32 %v7520_v3, %v6086_v4  ;;  %v7504_v44 = vld [vmem:[#allocation10 + $0x494] sm:$0xf] }
 0x215   :  { %4408 = vmatpush.bf16.msrb.mxu0 %v6149_v56  ;;  %4437 = vmatpush.bf16.msrb.mxu2 %v6565_v57  ;;  %v6340_v56 = vld [vmem:[#allocation10 + $0x710] sm:$0xf]  ;;  %v6021_v6 = vor.u32 %v7508_v62, %v6020_v31  ;;  %v4130_v14 = vpop.f32.mrf.mxu1  ;;  %v6022_v45 = vld [vmem:[#allocation10 + $0x4b0] sm:$0xf0] }
 0x216   :  { %4363 = vmatmul.bf16.vlgmr.msra.gmra.mxu1 %v8927_v17  ;;  %v7588_v57 = vld [vmem:[#allocation10 + $0x72c] sm:$0xf0]  ;;  %v5798_v31 = vld [vmem:[#allocation10 + $0x2f0] sm:$0xf0] }
 0x217   :  { %4420 = vmatpush.bf16.msrb.mxu1 %v6437_v9  ;;  %4453 = vmatpush.bf16.msrb.mxu3 %v6725_v19  ;;  %v6341_v2 = vor.u32 %v7588_v57, %v6340_v56  ;;  %v6308_v0 = vld [vmem:[#allocation10 + $0x6d0] sm:$0xf]  ;;  %v4131_v19 = vadd.f32 %v4130_v14, %v4118_v41  ;;  %v4169_v24 = vpop.f32.mrf.mxu0  ;;  %v7496_v36 = vld [vmem:[#allocation10 + $0x454] sm:$0xf] }
 0x218   :  { %v7580_v9 = vld [vmem:[#allocation10 + $0x6ec] sm:$0xf0]  ;;  %v5990_v63 = vld [vmem:[#allocation10 + $0x470] sm:$0xf0] }
 0x219   :  { %4409 = vmatpush.bf16.msrb.mxu0 %v6117_v12  ;;  %4438 = vmatpush.bf16.msrb.mxu2 %v6533_v13  ;;  %v5988_v11 = vld [vmem:[#allocation10 + $0x450] sm:$0xf]  ;;  %v4797_v13 = vsub.f32 0.0, %v8975_v34  ;;  %v6309_v20 = vor.u32 %v7580_v9, %v6308_v0  ;;  %v4144_v34 = vadd.f32 %v8981_v1, %v4131_v19  ;;  %v8993_v1 = vpop.f32.mrf.mxu3  ;;  %v7416_v16 = vld [vmem:[#allocation10 + $0x1d4] sm:$0xf] }
 0x21a   :  { %4454 = vmatmul.bf16.vlgmr.msrb.gmra.mxu3 %v8912_v22  ;;  %v7500_v12 = vld [vmem:[#allocation10 + $0x46c] sm:$0xf0]  ;;  %v7488_v18 = vld [vmem:[#allocation10 + $0x414] sm:$0xf] }
 0x21b   :  { %4511 = vmatpush.bf16.msra.mxu3 %v6185_v25  ;;  %4421 = vmatpush.bf16.msrb.mxu1 %v6405_v29  ;;  %v6276_v21 = vld [vmem:[#allocation10 + $0x690] sm:$0xf]  ;;  %v6054_v25 = vld [vmem:[#allocation10 + $0x4f0] sm:$0xf0]  ;;  %v5989_v26 = vor.u32 %v7500_v12, %v5988_v11  ;;  %v4805_v48 = vmul.f32 1.442695, %v4797_v13  ;;  %v4157_v61 = vadd.f32 %v8977_v52, %v4144_v34  ;;  %v6025_v52 = vor.u32 %v7504_v44, %v6022_v45 }
 0x21c   :  { %v7572_v60 = vld [vmem:[#allocation10 + $0x6ac] sm:$0xf0]  ;;  %v6057_v39 = vor.u32 %v7512_v23, %v6054_v25  ;;  %v7440_v12 = vld [vmem:[#allocation10 + $0x294] sm:$0xf] }
 0x21d   :  { %4410 = vmatpush.bf16.msrb.mxu0 %v6085_v37  ;;  %4439 = vmatpush.bf16.msrb.mxu2 %v6501_v38  ;;  %v5956_v29 = vld [vmem:[#allocation10 + $0x410] sm:$0xf]  ;;  %v7456_v38 = vld [vmem:[#allocation10 + $0x314] sm:$0xf]  ;;  %v6277_v42 = vor.u32 %v7572_v60, %v6276_v21  ;;  %7817 = vpow2.f32 %v4805_v48  ;;  %v4132_v56 = vpop.f32.mrf.mxu1 }
 0x21e   :  { %v7492_v30 = vld [vmem:[#allocation10 + $0x42c] sm:$0xf0]  ;;  %v5833_v54 = vor.u32 %v7456_v38, %v5830_v40  ;;  %v5766_v13 = vld [vmem:[#allocation10 + $0x2b0] sm:$0xf0] }
 0x21f   :  { %4512 = vmatpush.bf16.msra.mxu3 %v6153_v46  ;;  %4422 = vmatpush.bf16.msrb.mxu1 %v6373_v51  ;;  %v7204_v33 = vld [vmem:[#allocation10 + $0xdd0] sm:$0xf]  ;;  %v5957_v46 = vor.u32 %v7492_v30, %v5956_v29  ;;  %v4170_v51 = vadd.f32 %v4169_v24, %v4157_v61  ;;  %v8996_v14 = vpop.f32.mrf.mxu2  ;;  %v5958_v19 = vld [vmem:[#allocation10 + $0x430] sm:$0xf0]  ;;  %v4171_v21 = vpop.f32.mrf.mxu0  ;;  %v5769_v30 = vor.u32 %v7440_v12, %v5766_v13 }
 0x220   :  { %v7804_v37 = vld [vmem:[#allocation10 + $0xdec] sm:$0xf0]  ;;  %v5670_v25 = vld [vmem:[#allocation10 + $0x1f0] sm:$0xf0] }
 0x221   :  { %4411 = vmatpush.bf16.msrb.mxu0 %v6053_v43  ;;  %4440 = vmatpush.bf16.msrb.mxu2 %v6469_v55  ;;  %v8990_v41 = vld [vmem:[#allocation10 + $0xe10] sm:$0x33]  ;;  %v7205_v53 = vor.u32 %v7804_v37, %v7204_v33  ;;  %v4798_v62 = vsub.f32 0.0, %v4170_v51  ;;  %v4223_v23 = vpop.f32.mrf.mxu3  ;;  %v5961_v33 = vor.u32 %v7488_v18, %v5958_v19  ;;  %v5673_v40 = vor.u32 %v7416_v16, %v5670_v25 }
 0x222   :  { %v6244_v47 = vld [vmem:[#allocation10 + $0x650] sm:$0xf]  ;;  %v3028_v55 = vunpack.c.l.b16 %v8990_v41  ;;  %v7206_v60 = vld [vmem:[#allocation10 + $0xdf0] sm:$0xf0] }
 0x223   :  { %4513 = vmatpush.bf16.msra.mxu3 %v6121_v27  ;;  %4423 = vmatpush.bf16.msrb.mxu1 %v6341_v2  ;;  %v7564_v50 = vld [vmem:[#allocation10 + $0x66c] sm:$0xf0]  ;;  %v4807_v4 = vmul.f32 1.442695, %v4798_v62  ;;  %v7432_v38 = vld [vmem:[#allocation10 + $0x254] sm:$0xf] }
 0x224   :  { %4441 = vmatmul.bf16.vlgmr.msrb.gmra.mxu2 %v8915_v49  ;;  %v7172_v43 = vld [vmem:[#allocation10 + $0xd90] sm:$0xf]  ;;  %v6245_v27 = vor.u32 %v7564_v50, %v6244_v47  ;;  %v3484_v9 = vpack.c.b16 %v3028_v55, %v3028_v55  ;;  %v5734_v48 = vld [vmem:[#allocation10 + $0x270] sm:$0xf0] }
 0x225   :  { %4498 = vmatpush.bf16.msra.mxu2 %v5929_v58  ;;  %4412 = vmatpush.bf16.msrb.mxu0 %v6021_v6  ;;  %v7796_v57 = vld [vmem:[#allocation10 + $0xdac] sm:$0xf0]  ;;  %v7448_v58 = vld [vmem:[#allocation10 + $0x2d4] sm:$0xf]  ;;  %7819 = vpow2.f32 %v4807_v4  ;;  %v5737_v50 = vor.u32 %v7432_v38, %v5734_v48 }
 0x226   :  { %v6212_v2 = vld [vmem:[#allocation10 + $0x610] sm:$0xf]  ;;  %v7173_v5 = vor.u32 %v7796_v57, %v7172_v43  ;;  %v5801_v6 = vor.u32 %v7448_v58, %v5798_v31  ;;  %v3954_v34 = vsel %vm3940_vm2, %v3484_v9, 0  ;;  %v5638_v44 = vld [vmem:[#allocation10 + $0x1b0] sm:$0xf0] }
 0x227   :  { %4514 = vmatpush.bf16.msra.mxu3 %v6089_v15  ;;  %4424 = vmatpush.bf16.msrb.mxu1 %v6309_v20  ;;  %v7556_v3 = vld [vmem:[#allocation10 + $0x62c] sm:$0xf0]  ;;  %v7818_v20 = vpop.eup %7817  ;;  %v7792_v45 = vld [vmem:[#allocation10 + $0xd94] sm:$0xf]  ;;  %v4210_v56 = vpop.f32.mrf.mxu2 }
 0x228   :  { %v7140_v0 = vld [vmem:[#allocation10 + $0xd50] sm:$0xf]  ;;  %v6213_v15 = vor.u32 %v7556_v3, %v6212_v2  ;;  %v7174_v24 = vld [vmem:[#allocation10 + $0xdb0] sm:$0xf0] }
 0x229   :  { %4499 = vmatpush.bf16.msra.mxu2 %v5897_v10  ;;  %4413 = vmatpush.bf16.msrb.mxu0 %v5989_v26  ;;  %v5993_v10 = vor.u32 %v7496_v36, %v5990_v63  ;;  %v7788_v11 = vld [vmem:[#allocation10 + $0xd6c] sm:$0xf0]  ;;  %v7800_v26 = vld [vmem:[#allocation10 + $0xdd4] sm:$0xf]  ;;  %v7177_v57 = vor.u32 %v7792_v45, %v7174_v24  ;;  %v9001_v36 = vpop.f32.mrf.mxu3 }
 0x22a   :  { %v7141_v29 = vor.u32 %v7788_v11, %v7140_v0  ;;  %v7780_v37 = vld [vmem:[#allocation10 + $0xd2c] sm:$0xf0]  ;;  %v7209_v61 = vor.u32 %v7800_v26, %v7206_v60  ;;  %v7424_v43 = vld [vmem:[#allocation10 + $0x214] sm:$0xf] }
 0x22b   :  { %4515 = vmatpush.bf16.msra.mxu3 %v6057_v39  ;;  %4425 = vmatpush.bf16.msrb.mxu1 %v6277_v42  ;;  %v4821_v39 = vadd.f32 1.0, %v7818_v20  ;;  %v7408_v42 = vld [vmem:[#allocation10 + $0x194] sm:$0xf]  ;;  %v7076_v51 = vld [vmem:[#allocation10 + $0xcd0] sm:$0xf] }
 0x22c   :  { %v5702_v55 = vld [vmem:[#allocation10 + $0x230] sm:$0xf0]  ;;  %v7764_v11 = vld [vmem:[#allocation10 + $0xcac] sm:$0xf0] }
 0x22d   :  { %4500 = vmatpush.bf16.msra.mxu2 %v5865_v32  ;;  %4414 = vmatpush.bf16.msrb.mxu0 %v5957_v46  ;;  %v7108_v32 = vld [vmem:[#allocation10 + $0xd10] sm:$0xf]  ;;  %v7820_v46 = vpop.eup %7819  ;;  %7821 = vrcp.f32 %v4821_v39  ;;  %v7736_v58 = vld [vmem:[#allocation10 + $0xbd4] sm:$0xf] }
 0x22e   :  { %v7109_v47 = vor.u32 %v7780_v37, %v7108_v32  ;;  %v6950_v31 = vld [vmem:[#allocation10 + $0xbf0] sm:$0xf0] }
 0x22f   :  { %4516 = vmatpush.bf16.msra.mxu3 %v6025_v52  ;;  %4426 = vmatpush.bf16.msrb.mxu1 %v6245_v27  ;;  %v5641_v52 = vor.u32 %v7408_v42, %v5638_v44  ;;  %v7400_v62 = vld [vmem:[#allocation10 + $0x154] sm:$0xf]  ;;  %v4182_v27 = vpop.f32.mrf.mxu0  ;;  %v6953_v9 = vor.u32 %v7736_v58, %v6950_v31 }
 0x230   :  { %4415 = vmatmul.bf16.vlgmr.msrb.gmra.mxu0 %v8907_v35  ;;  %v5606_v63 = vld [vmem:[#allocation10 + $0x170] sm:$0xf0] }
 0x231   :  { %4459 = vmatpush.bf16.msra.mxu0 %v7205_v53  ;;  %4501 = vmatpush.bf16.msra.mxu2 %v5833_v54  ;;  %v7772_v53 = vld [vmem:[#allocation10 + $0xcec] sm:$0xf0]  ;;  %v4822_v54 = vadd.f32 1.0, %v7820_v46  ;;  %v7784_v2 = vld [vmem:[#allocation10 + $0xd54] sm:$0xf]  ;;  %v5609_v12 = vor.u32 %v7400_v62, %v5606_v63  ;;  %v4195_v37 = vpop.f32.mrf.mxu1  ;;  %v4275_v44 = vpop.f32.mrf.mxu3 }
 0x232   :  { %v7142_v3 = vld [vmem:[#allocation10 + $0xd70] sm:$0xf0]  ;;  %v7077_v4 = vor.u32 %v7772_v53, %v7076_v51  ;;  %v6980_v53 = vld [vmem:[#allocation10 + $0xc10] sm:$0xf]  ;;  %v6444_v44 = vld [vmem:[#allocation10 + $0x7d8] sm:$0xf] }
 0x233   :  { %4517 = vmatpush.bf16.msra.mxu3 %v5993_v10  ;;  %4427 = vmatpush.bf16.msrb.mxu1 %v6213_v15  ;;  %7823 = vrcp.f32 %v4822_v54  ;;  %v7044_v10 = vld [vmem:[#allocation10 + $0xc90] sm:$0xf]  ;;  %v7145_v13 = vor.u32 %v7784_v2, %v7142_v3  ;;  %v7728_v15 = vld [vmem:[#allocation10 + $0xb94] sm:$0xf]  ;;  %v7822_v23 = vpop.eup %7821 }
 0x234   :  { %v6918_v16 = vld [vmem:[#allocation10 + $0xbb0] sm:$0xf0]  ;;  %v7045_v25 = vor.u32 %v7764_v11, %v7044_v10 }
 0x235   :  { %4460 = vmatpush.bf16.msra.mxu0 %v7173_v5  ;;  %4502 = vmatpush.bf16.msra.mxu2 %v5801_v6  ;;  %v5705_v5 = vor.u32 %v7424_v43, %v5702_v55  ;;  %v9003_v6 = vld [vmem:[#allocation11] sm:$0xff]  ;;  %v7392_v18 = vld [vmem:[#allocation10 + $0x114] sm:$0xf]  ;;  %v7748_v55 = vld [vmem:[#allocation10 + $0xc2c] sm:$0xf0] }
 0x236   :  { %4428 = vmatmul.bf16.vlgmr.msrb.gmra.mxu1 %v8904_v8  ;;  %v1662_v0 = vperm.slane %v9003_v6, 2  ;;  %v5574_v19 = vld [vmem:[#allocation10 + $0x130] sm:$0xf0] }
 0x237   :  { %4479 = vmatpush.bf16.msra.mxu1 %v3954_v34  ;;  %4518 = vmatpush.bf16.msra.mxu3 %v5961_v33  ;;  %v7776_v20 = vld [vmem:[#allocation10 + $0xd14] sm:$0xf]  ;;  %v7756_v34 = vld [vmem:[#allocation10 + $0xc6c] sm:$0xf0]  ;;  %v5577_v38 = vor.u32 %v7392_v18, %v5574_v19  ;;  %v4184_v42 = vpop.f32.mrf.mxu0 }
 0x238   :  { %v7110_v21 = vld [vmem:[#allocation10 + $0xd30] sm:$0xf0]  ;;  %v4183_v60 = vadd.f32 %v4182_v27, %v1662_v0 }
 0x239   :  { %4461 = vmatpush.bf16.msra.mxu0 %v7141_v29  ;;  %4503 = vmatpush.bf16.msra.mxu2 %v5769_v30  ;;  %v7824_v26 = vpop.eup %7823  ;;  %v6921_v29 = vor.u32 %v7728_v15, %v6918_v16  ;;  %v7012_v30 = vld [vmem:[#allocation10 + $0xc50] sm:$0xf]  ;;  %v7720_v32 = vld [vmem:[#allocation10 + $0xb54] sm:$0xf]  ;;  %v7113_v48 = vor.u32 %v7776_v20, %v7110_v21 }
 0x23a   :  { %4519 = vmatmul.bf16.vlgmr.msra.gmra.mxu3 %v8907_v35  ;;  %v4838_v33 = vmin.f32 %v7824_v26, 1.0  ;;  %v6886_v39 = vld [vmem:[#allocation10 + $0xb70] sm:$0xf0]  ;;  %v7013_v51 = vor.u32 %v7756_v34, %v7012_v30 }
 0x23b   :  { %4485 = vmatpush.bf16.msrb.mxu1 %v5673_v40  ;;  %4563 = vmatpush.bf16.msrb.mxu3 %v7209_v61  ;;  %v7384_v40 = vld [vmem:[#allocation10 + $0xd4] sm:$0xf]  ;;  %v4196_v61 = vadd.f32 %v4195_v37, %v4183_v60  ;;  %v6889_v43 = vor.u32 %v7720_v32, %v6886_v39 }
 0x23c   :  { %v5542_v45 = vld [vmem:[#allocation10 + $0xf0] sm:$0xf0] }
 0x23d   :  { %4462 = vmatpush.bf16.msra.mxu0 %v7109_v47  ;;  %4504 = vmatpush.bf16.msra.mxu2 %v5737_v50  ;;  %v7768_v24 = vld [vmem:[#allocation10 + $0xcd4] sm:$0xf]  ;;  %v4837_v47 = vmin.f32 %v7822_v23, 1.0  ;;  %v4853_v50 = vrot.slane %v4838_v33, 6  ;;  %v4209_v54 = vadd.f32 %v8996_v14, %v4196_v61  ;;  %v9017_v23 = vpop.f32.mrf.mxu3 }
 0x23e   :  { %v7078_v46 = vld [vmem:[#allocation10 + $0xcf0] sm:$0xf0] }
 0x23f   :  { %4486 = vmatpush.bf16.msrb.mxu1 %v5641_v52  ;;  %4564 = vmatpush.bf16.msrb.mxu3 %v7177_v57  ;;  %v7608_v56 = vld [vmem:[#allocation10 + $0x7d4] sm:$0xf]  ;;  %v5545_v57 = vor.u32 %v7384_v40, %v5542_v45  ;;  %v7081_v58 = vor.u32 %v7768_v24, %v7078_v46  ;;  %v9010_v63 = vsel %vm3940_vm2, %v4837_v47, %v4853_v50  ;;  %v7613_v45 = vld [vmem:[#allocation10 + $0x7f4] sm:$0xf0] }
 0x240   :  { %v6438_v52 = vld [vmem:[#allocation10 + $0x7f0] sm:$0xf0]  ;;  %v9013_v14 = vadd.f32 %v8993_v1, %v4209_v54 }
 0x241   :  { %4463 = vmatpush.bf16.msra.mxu0 %v7077_v4  ;;  %4505 = vmatpush.bf16.msra.mxu2 %v5705_v5  ;;  %v7712_v31 = vld [vmem:[#allocation10 + $0xb14] sm:$0xf]  ;;  %v6981_v5 = vor.u32 %v7748_v55, %v6980_v53  ;;  %v6441_v0 = vor.u32 %v7608_v56, %v6438_v52 }
 0x242   :  { %v6854_v62 = vld [vmem:[#allocation10 + $0xb30] sm:$0xf0] }
 0x243   :  { %4487 = vmatpush.bf16.msrb.mxu1 %v5609_v12  ;;  %4565 = vmatpush.bf16.msrb.mxu3 %v7145_v13  ;;  %v7376_v27 = vld [vmem:[#allocation10 + $0x94] sm:$0xf]  ;;  %v4197_v12 = vpop.f32.mrf.mxu1  ;;  %v9019_v34 = vpop.f32.mrf.mxu2 }
 0x244   :  { %4506 = vmatmul.bf16.vlgmr.msra.gmra.mxu2 %v8895_v7  ;;  %v5510_v2 = vld [vmem:[#allocation10 + $0xb0] sm:$0xf0]  ;;  %v6188_v12 = vld [vmem:[#allocation10 + $0x5d8] sm:$0xf] }
 0x245   :  { %4550 = vmatpush.bf16.msrb.mxu2 %v6953_v9  ;;  %4464 = vmatpush.bf16.msra.mxu0 %v7045_v25  ;;  %v7760_v3 = vld [vmem:[#allocation10 + $0xc94] sm:$0xf]  ;;  %v6857_v9 = vor.u32 %v7712_v31, %v6854_v62  ;;  %v5513_v13 = vor.u32 %v7376_v27, %v5510_v2  ;;  %v6412_v31 = vld [vmem:[#allocation10 + $0x798] sm:$0xf] }
 0x246   :  { %v7046_v4 = vld [vmem:[#allocation10 + $0xcb0] sm:$0xf0]  ;;  %7222 = vmatmul.msk.bf16.vlgmr.msra.gmra.mxu1 %vm3936_vm9, %v8923_v59  ;;  %v7605_v62 = vld [vmem:[#allocation10 + $0x7b4] sm:$0xf0] }
 0x247   :  { %4488 = vmatpush.bf16.msrb.mxu1 %v5577_v38  ;;  %4566 = vmatpush.bf16.msrb.mxu3 %v7113_v48  ;;  %v7600_v10 = vld [vmem:[#allocation10 + $0x794] sm:$0xf]  ;;  %v7049_v15 = vor.u32 %v7760_v3, %v7046_v4 }
 0x248   :  { %v6406_v11 = vld [vmem:[#allocation10 + $0x7b0] sm:$0xf0] }
 0x249   :  { %4551 = vmatpush.bf16.msrb.mxu2 %v6921_v29  ;;  %4465 = vmatpush.bf16.msra.mxu0 %v7013_v51  ;;  %v7704_v16 = vld [vmem:[#allocation10 + $0xad4] sm:$0xf]  ;;  %v6409_v25 = vor.u32 %v7600_v10, %v6406_v11 }
 0x24a   :  { %v6822_v18 = vld [vmem:[#allocation10 + $0xaf0] sm:$0xf0] }
 0x24b   :  { %4489 = vmatpush.bf16.msrb.mxu1 %v5545_v57  ;;  %4567 = vmatpush.bf16.msrb.mxu3 %v7081_v58  ;;  %v7368_v19 = vld [vmem:[#allocation10 + $0x54] sm:$0xf]  ;;  %v6825_v26 = vor.u32 %v7704_v16, %v6822_v18  ;;  %v4288_v57 = vpop.f32.mrf.mxu3  ;;  %v4262_v2 = vpop.f32.mrf.mxu2 }
 0x24c   :  { %v5478_v1 = vld [vmem:[#allocation10 + $0x70] sm:$0xf0]  ;;  %v7581_v57 = vld [vmem:[#allocation10 + $0x6f4] sm:$0xf0] }
 0x24d   :  { %4552 = vmatpush.bf16.msrb.mxu2 %v6889_v43  ;;  %v7752_v20 = vld [vmem:[#allocation10 + $0xc54] sm:$0xf]  ;;  %4466 = vmatpush.bf16.msra.mxu0 %v6981_v5  ;;  %v5481_v32 = vor.u32 %v7368_v19, %v5478_v1  ;;  %v6445_v43 = vor.u32 %v7613_v45, %v6444_v44  ;;  %v6380_v1 = vld [vmem:[#allocation10 + $0x758] sm:$0xf] }
 0x24e   :  { %v7014_v21 = vld [vmem:[#allocation10 + $0xc70] sm:$0xf0]  ;;  %v6092_v2 = vld [vmem:[#allocation10 + $0x518] sm:$0xf] }
 0x24f   :  { %v7592_v60 = vld [vmem:[#allocation10 + $0x754] sm:$0xf]  ;;  %4490 = vmatpush.bf16.msrb.mxu1 %v5513_v13  ;;  %4568 = vmatpush.bf16.msrb.mxu3 %v7049_v15  ;;  %v7017_v33 = vor.u32 %v7752_v20, %v7014_v21  ;;  %v4234_v13 = vpop.f32.mrf.mxu0  ;;  %v7549_v15 = vld [vmem:[#allocation10 + $0x5f4] sm:$0xf0] }
 0x250   :  { %v6374_v29 = vld [vmem:[#allocation10 + $0x770] sm:$0xf0]  ;;  %4467 = vmatmul.bf16.vlgmr.msra.gmra.mxu0 %v8927_v17  ;;  %v7597_v20 = vld [vmem:[#allocation10 + $0x774] sm:$0xf0] }
 0x251   :  { %4524 = vmatpush.bf16.msrb.mxu0 %v6441_v0  ;;  %4553 = vmatpush.bf16.msrb.mxu2 %v6857_v9  ;;  %v7696_v30 = vld [vmem:[#allocation10 + $0xa94] sm:$0xf]  ;;  %v6377_v24 = vor.u32 %v7592_v60, %v6374_v29  ;;  %v6413_v9 = vor.u32 %v7605_v62, %v6412_v31  ;;  %v6189_v60 = vor.u32 %v7549_v15, %v6188_v12  ;;  %v6284_v12 = vld [vmem:[#allocation10 + $0x698] sm:$0xf] }
 0x252   :  { %v6790_v37 = vld [vmem:[#allocation10 + $0xab0] sm:$0xf0]  ;;  %v7421_v15 = vld [vmem:[#allocation10 + $0x1f4] sm:$0xf0] }
 0x253   :  { %v7360_v38 = vld [vmem:[#allocation10 + $0x14] sm:$0xf]  ;;  %v6793_v46 = vor.u32 %v7696_v30, %v6790_v37  ;;  %4491 = vmatpush.bf16.msrb.mxu1 %v5481_v32  ;;  %4569 = vmatpush.bf16.msrb.mxu3 %v7017_v33  ;;  %v6156_v30 = vld [vmem:[#allocation10 + $0x598] sm:$0xf]  ;;  %v6381_v32 = vor.u32 %v7597_v20, %v6380_v1  ;;  %v4247_v45 = vpop.f32.mrf.mxu1 }
 0x254   :  { %v5446_v48 = vld [vmem:[#allocation10 + $0x30] sm:$0xf0]  ;;  %v7541_v33 = vld [vmem:[#allocation10 + $0x5b4] sm:$0xf0] }
 0x255   :  { %v7672_v39 = vld [vmem:[#allocation10 + $0x9d4] sm:$0xf]  ;;  %4525 = vmatpush.bf16.msrb.mxu0 %v6409_v25  ;;  %4554 = vmatpush.bf16.msrb.mxu2 %v6825_v26  ;;  %v5449_v47 = vor.u32 %v7360_v38, %v5446_v48  ;;  %v9032_v20 = vld [vmem:[#allocation10 + $0xe18] sm:$0x33] }
 0x256   :  { %v7744_v40 = vld [vmem:[#allocation10 + $0xc14] sm:$0xf] }
 0x257   :  { %v6982_v61 = vld [vmem:[#allocation10 + $0xc30] sm:$0xf0]  ;;  %4492 = vmatpush.bf16.msrb.mxu1 %v5449_v47  ;;  %v6124_v47 = vld [vmem:[#allocation10 + $0x558] sm:$0xf] }
 0x258   :  { %v6694_v42 = vld [vmem:[#allocation10 + $0x9f0] sm:$0xf0]  ;;  %v6985_v50 = vor.u32 %v7744_v40, %v6982_v61  ;;  %v7589_v40 = vld [vmem:[#allocation10 + $0x734] sm:$0xf0]  ;;  %v4235_v61 = vadd.f32 %v4234_v13, %v9013_v14 }
 0x259   :  { %v7584_v51 = vld [vmem:[#allocation10 + $0x714] sm:$0xf]  ;;  %v6697_v54 = vor.u32 %v7672_v39, %v6694_v42  ;;  %4526 = vmatpush.bf16.msrb.mxu0 %v6377_v24  ;;  %4555 = vmatpush.bf16.msrb.mxu2 %v6793_v46  ;;  %v6348_v39 = vld [vmem:[#allocation10 + $0x718] sm:$0xf]  ;;  %v6157_v24 = vor.u32 %v7541_v33, %v6156_v30 }
 0x25a   :  { %v6342_v53 = vld [vmem:[#allocation10 + $0x730] sm:$0xf0]  ;;  %4570 = vmatpush.bf16.msrb.mxu3 %v6985_v50  ;;  %4493 = vmatmul.bf16.vlgmr.msrb.gmra.mxu1 %v8900_v28  ;;  %v3029_v50 = vunpack.c.h.b16 %v8990_v41  ;;  %v5676_v13 = vld [vmem:[#allocation10 + $0x1d8] sm:$0xf] }
 0x25b   :  { %v7688_v55 = vld [vmem:[#allocation10 + $0xa54] sm:$0xf]  ;;  %v6345_v27 = vor.u32 %v7584_v51, %v6342_v53  ;;  %4537 = vmatpush.bf16.msra.mxu1 %v6697_v54  ;;  %v4248_v51 = vadd.f32 %v4247_v45, %v4235_v61  ;;  %v4236_v53 = vpop.f32.mrf.mxu0  ;;  %v6349_v54 = vor.u32 %v7589_v40, %v6348_v39  ;;  %v5677_v30 = vor.u32 %v7421_v15, %v5676_v13  ;;  %v7565_v33 = vld [vmem:[#allocation10 + $0x674] sm:$0xf0] }
 0x25c   :  { %v6758_v56 = vld [vmem:[#allocation10 + $0xa70] sm:$0xf0]  ;;  %v6220_v53 = vld [vmem:[#allocation10 + $0x618] sm:$0xf] }
 0x25d   :  { %v7664_v52 = vld [vmem:[#allocation10 + $0x994] sm:$0xf]  ;;  %v6761_v3 = vor.u32 %v7688_v55, %v6758_v56  ;;  %4527 = vmatpush.bf16.msrb.mxu0 %v6345_v27  ;;  %4571 = vmatmul.bf16.vlgmr.msrb.gmra.mxu3 %v8927_v17 }
 0x25e   :  { %v6662_v58 = vld [vmem:[#allocation10 + $0x9b0] sm:$0xf0]  ;;  %4628 = vmatpush.bf16.msra.mxu3 %v6445_v43  ;;  %v7533_v43 = vld [vmem:[#allocation10 + $0x574] sm:$0xf0] }
 0x25f   :  { %v7576_v4 = vld [vmem:[#allocation10 + $0x6d4] sm:$0xf]  ;;  %v6665_v0 = vor.u32 %v7664_v52, %v6662_v58  ;;  %4556 = vmatpush.bf16.msrb.mxu2 %v6761_v3  ;;  %v6316_v52 = vld [vmem:[#allocation10 + $0x6d8] sm:$0xf]  ;;  %v4261_v58 = vadd.f32 %v9019_v34, %v4248_v51  ;;  %v6125_v41 = vor.u32 %v7533_v43, %v6124_v47  ;;  %v3485_v3 = vpack.c.b16 %v3029_v50, %v3029_v50 }
 0x260   :  { %v6310_v5 = vld [vmem:[#allocation10 + $0x6f0] sm:$0xf0]  ;;  %v7573_v34 = vld [vmem:[#allocation10 + $0x6b4] sm:$0xf0] }
 0x261   :  { %v7680_v10 = vld [vmem:[#allocation10 + $0xa14] sm:$0xf]  ;;  %v6313_v19 = vor.u32 %v7576_v4, %v6310_v5  ;;  %4538 = vmatpush.bf16.msra.mxu1 %v6665_v0  ;;  %v9029_v4 = vadd.f32 %v9001_v36, %v4261_v58  ;;  %v6317_v5 = vor.u32 %v7581_v57, %v6316_v52  ;;  %v7525_v0 = vld [vmem:[#allocation10 + $0x534] sm:$0xf0]  ;;  %v3957_v1 = vsel %vm3940_vm2, %v3485_v3, 0 }
 0x262   :  { %v6726_v11 = vld [vmem:[#allocation10 + $0xa30] sm:$0xf0]  ;;  %4629 = vmatpush.bf16.msra.mxu3 %v6413_v9  ;;  %v6060_v36 = vld [vmem:[#allocation10 + $0x4d8] sm:$0xf] }
 0x263   :  { %v7656_v16 = vld [vmem:[#allocation10 + $0x954] sm:$0xf]  ;;  %v6729_v21 = vor.u32 %v7680_v10, %v6726_v11  ;;  %4528 = vmatpush.bf16.msrb.mxu0 %v6313_v19  ;;  %v9037_v39 = vpop.f32.mrf.mxu2  ;;  %v5932_v47 = vld [vmem:[#allocation10 + $0x3d8] sm:$0xf] }
 0x264   :  { %v6630_v18 = vld [vmem:[#allocation10 + $0x970] sm:$0xf0]  ;;  %v7485_v51 = vld [vmem:[#allocation10 + $0x3f4] sm:$0xf0] }
 0x265   :  { %v7568_v25 = vld [vmem:[#allocation10 + $0x694] sm:$0xf]  ;;  %v6633_v29 = vor.u32 %v7656_v16, %v6630_v18  ;;  %4557 = vmatpush.bf16.msrb.mxu2 %v6729_v21  ;;  %v4249_v16 = vpop.f32.mrf.mxu1  ;;  %v6093_v18 = vor.u32 %v7525_v0, %v6092_v2  ;;  %v6285_v21 = vor.u32 %v7573_v34, %v6284_v12  ;;  %v5612_v43 = vld [vmem:[#allocation10 + $0x158] sm:$0xf]  ;;  %v5933_v57 = vor.u32 %v7485_v51, %v5932_v47  ;;  %v5678_v0 = vld [vmem:[#allocation10 + $0x1f8] sm:$0xf0] }
 0x266   :  { %v6278_v26 = vld [vmem:[#allocation10 + $0x6b0] sm:$0xf0]  ;;  %4630 = vmatpush.bf16.msra.mxu3 %v6381_v32  ;;  %v6252_v32 = vld [vmem:[#allocation10 + $0x658] sm:$0xf]  ;;  %v5614_v47 = vld [vmem:[#allocation10 + $0x178] sm:$0xf0] }
 0x267   :  { %v7648_v37 = vld [vmem:[#allocation10 + $0x914] sm:$0xf]  ;;  %v6281_v48 = vor.u32 %v7568_v25, %v6278_v26  ;;  %4539 = vmatpush.bf16.msra.mxu1 %v6633_v29  ;;  %v7517_v25 = vld [vmem:[#allocation10 + $0x4f4] sm:$0xf0]  ;;  %v9034_v29 = vpop.f32.mrf.mxu3  ;;  %v6253_v45 = vor.u32 %v7565_v33, %v6252_v32 }
 0x268   :  { %v6598_v38 = vld [vmem:[#allocation10 + $0x930] sm:$0xf0]  ;;  %4558 = vmatmul.bf16.vlgmr.msrb.gmra.mxu2 %v8912_v22  ;;  %v6061_v40 = vor.u32 %v7517_v25, %v6060_v36  ;;  %v7477_v3 = vld [vmem:[#allocation10 + $0x3b4] sm:$0xf0] }
 0x269   :  { %v7560_v42 = vld [vmem:[#allocation10 + $0x654] sm:$0xf]  ;;  %4615 = vmatpush.bf16.msra.mxu2 %v6189_v60  ;;  %v6601_v46 = vor.u32 %v7648_v37, %v6598_v38  ;;  %4529 = vmatpush.bf16.msrb.mxu0 %v6281_v48  ;;  %v5644_v37 = vld [vmem:[#allocation10 + $0x198] sm:$0xf]  ;;  %v3030_v48 = vunpack.c.l.b16 %v9032_v20 }
 0x26a   :  { %v6246_v44 = vld [vmem:[#allocation10 + $0x670] sm:$0xf0]  ;;  %4631 = vmatpush.bf16.msra.mxu3 %v6349_v54  ;;  %v7413_v38 = vld [vmem:[#allocation10 + $0x1b4] sm:$0xf0] }
 0x26b   :  { %v7640_v55 = vld [vmem:[#allocation10 + $0x8d4] sm:$0xf]  ;;  %v6249_v14 = vor.u32 %v7560_v42, %v6246_v44  ;;  %4540 = vmatpush.bf16.msra.mxu1 %v6601_v46  ;;  %v6028_v42 = vld [vmem:[#allocation10 + $0x498] sm:$0xf]  ;;  %v5645_v50 = vor.u32 %v7413_v38, %v5644_v37  ;;  %v4327_v12 = vpop.f32.mrf.mxu2 }
 0x26c   :  { %v6566_v56 = vld [vmem:[#allocation10 + $0x8f0] sm:$0xf0]  ;;  %v7509_v44 = vld [vmem:[#allocation10 + $0x4b4] sm:$0xf0] }
 0x26d   :  { %v7552_v31 = vld [vmem:[#allocation10 + $0x614] sm:$0xf]  ;;  %4616 = vmatpush.bf16.msra.mxu2 %v6157_v24  ;;  %v6569_v27 = vor.u32 %v7640_v55, %v6566_v56  ;;  %4530 = vmatpush.bf16.msrb.mxu0 %v6249_v14  ;;  %v7557_v54 = vld [vmem:[#allocation10 + $0x634] sm:$0xf0]  ;;  %v3486_v56 = vpack.c.b16 %v3030_v48, %v3030_v48  ;;  %v6029_v14 = vor.u32 %v7509_v44, %v6028_v42 }
 0x26e   :  { %v6214_v62 = vld [vmem:[#allocation10 + $0x630] sm:$0xf0]  ;;  %4632 = vmatpush.bf16.msra.mxu3 %v6317_v5  ;;  %v7405_v55 = vld [vmem:[#allocation10 + $0x174] sm:$0xf0]  ;;  %v6221_v58 = vor.u32 %v7557_v54, %v6220_v53  ;;  %v7417_v5 = vld [vmem:[#allocation10 + $0x1dc] sm:$0xf] }
 0x26f   :  { %v7632_v9 = vld [vmem:[#allocation10 + $0x894] sm:$0xf]  ;;  %v6217_v11 = vor.u32 %v7552_v31, %v6214_v62  ;;  %4541 = vmatpush.bf16.msra.mxu1 %v6569_v27  ;;  %v5996_v31 = vld [vmem:[#allocation10 + $0x458] sm:$0xf]  ;;  %v4340_v27 = vpop.f32.mrf.mxu3  ;;  %v5613_v2 = vor.u32 %v7405_v55, %v5612_v43  ;;  %v5681_v15 = vor.u32 %v7417_v5, %v5678_v0 }
 0x270   :  { %v6534_v10 = vld [vmem:[#allocation10 + $0x8b0] sm:$0xf0]  ;;  %v7501_v62 = vld [vmem:[#allocation10 + $0x474] sm:$0xf0]  ;;  %v5582_v27 = vld [vmem:[#allocation10 + $0x138] sm:$0xf0] }
 0x271   :  { %4617 = vmatpush.bf16.msra.mxu2 %v6125_v41  ;;  %v6537_v19 = vor.u32 %v7632_v9, %v6534_v10  ;;  %v7624_v26 = vld [vmem:[#allocation10 + $0x854] sm:$0xf]  ;;  %4531 = vmatpush.bf16.msrb.mxu0 %v6217_v11  ;;  %v5900_v41 = vld [vmem:[#allocation10 + $0x398] sm:$0xf]  ;;  %v3960_v9 = vsel %vm3940_vm2, %v3486_v56, 0  ;;  %v5997_v34 = vor.u32 %v7501_v62, %v5996_v31 }
 0x272   :  { %v6502_v60 = vld [vmem:[#allocation10 + $0x870] sm:$0xf0]  ;;  %4633 = vmatpush.bf16.msra.mxu3 %v6285_v21  ;;  %v5580_v10 = vld [vmem:[#allocation10 + $0x118] sm:$0xf]  ;;  %v5901_v13 = vor.u32 %v7477_v3, %v5900_v41  ;;  %v7393_v41 = vld [vmem:[#allocation10 + $0x11c] sm:$0xf] }
 0x273   :  { %4542 = vmatpush.bf16.msra.mxu1 %v6537_v19  ;;  %v6505_v61 = vor.u32 %v7624_v26, %v6502_v60  ;;  %v7616_v24 = vld [vmem:[#allocation10 + $0x814] sm:$0xf]  ;;  %v7397_v11 = vld [vmem:[#allocation10 + $0x134] sm:$0xf0]  ;;  %v9041_v19 = vpop.f32.mrf.mxu0  ;;  %v7409_v60 = vld [vmem:[#allocation10 + $0x19c] sm:$0xf]  ;;  %v9045_v53 = vpop.f32.mrf.mxu1 }
 0x274   :  { %4532 = vmatmul.bf16.vlgmr.msrb.gmra.mxu0 %v8904_v8  ;;  %v6470_v46 = vld [vmem:[#allocation10 + $0x830] sm:$0xf0]  ;;  %v5964_v16 = vld [vmem:[#allocation10 + $0x418] sm:$0xf]  ;;  %v9047_v54 = vpop.f32.mrf.mxu2 }
 0x275   :  { %4583 = vmatpush.bf16.msra.mxu0 %v3957_v1  ;;  %4618 = vmatpush.bf16.msra.mxu2 %v6093_v18  ;;  %v6473_v52 = vor.u32 %v7616_v24, %v6470_v46  ;;  %v7493_v18 = vld [vmem:[#allocation10 + $0x434] sm:$0xf0]  ;;  %v5581_v1 = vor.u32 %v7397_v11, %v5580_v10  ;;  %v7401_v46 = vld [vmem:[#allocation10 + $0x15c] sm:$0xf] }
 0x276   :  { %4634 = vmatpush.bf16.msra.mxu3 %v6253_v45  ;;  %v7212_v36 = vld [vmem:[#allocation10 + $0xdd8] sm:$0xf]  ;;  %v5965_v32 = vor.u32 %v7493_v18, %v5964_v16  ;;  %v5550_v16 = vld [vmem:[#allocation10 + $0xf8] sm:$0xf0] }
 0x277   :  { %4543 = vmatpush.bf16.msra.mxu1 %v6505_v61  ;;  %v7805_v21 = vld [vmem:[#allocation10 + $0xdf4] sm:$0xf0] }
 0x278   :  { %v5868_v25 = vld [vmem:[#allocation10 + $0x358] sm:$0xf]  ;;  %v7213_v38 = vor.u32 %v7805_v21, %v7212_v36 }
 0x279   :  { %4589 = vmatpush.bf16.msrb.mxu0 %v5677_v30  ;;  %4619 = vmatpush.bf16.msra.mxu2 %v6061_v40  ;;  %v7469_v26 = vld [vmem:[#allocation10 + $0x374] sm:$0xf0]  ;;  %v5646_v30 = vld [vmem:[#allocation10 + $0x1b8] sm:$0xf0] }
 0x27a   :  { %4635 = vmatpush.bf16.msra.mxu3 %v6221_v58  ;;  %v5548_v33 = vld [vmem:[#allocation10 + $0xd8] sm:$0xf]  ;;  %v5869_v48 = vor.u32 %v7469_v26, %v5868_v25  ;;  %v5649_v40 = vor.u32 %v7409_v60, %v5646_v30 }
 0x27b   :  { %4544 = vmatpush.bf16.msra.mxu1 %v6473_v52  ;;  %v7389_v37 = vld [vmem:[#allocation10 + $0xf4] sm:$0xf0]  ;;  %v4301_v55 = vpop.f32.mrf.mxu0  ;;  %v4314_v36 = vpop.f32.mrf.mxu1 }
 0x27c   :  { %v7180_v61 = vld [vmem:[#allocation10 + $0xd98] sm:$0xf]  ;;  %v5549_v45 = vor.u32 %v7389_v37, %v5548_v33  ;;  %v4379_v21 = vpop.f32.mrf.mxu2 }
 0x27d   :  { %4590 = vmatpush.bf16.msrb.mxu0 %v5645_v50  ;;  %4620 = vmatpush.bf16.msra.mxu2 %v6029_v14  ;;  %v7797_v42 = vld [vmem:[#allocation10 + $0xdb4] sm:$0xf0]  ;;  %v5617_v14 = vor.u32 %v7401_v46, %v5614_v47 }
 0x27e   :  { %4687 = vmatpush.bf16.msrb.mxu3 %v3960_v9  ;;  %4545 = vmatmul.bf16.vlgmr.msra.gmra.mxu1 %v8915_v49  ;;  %v5836_v44 = vld [vmem:[#allocation10 + $0x318] sm:$0xf]  ;;  %v7181_v43 = vor.u32 %v7797_v42, %v7180_v61  ;;  %v5585_v9 = vor.u32 %v7393_v41, %v5582_v27  ;;  %v5486_v41 = vld [vmem:[#allocation10 + $0x78] sm:$0xf0] }
 0x27f   :  { %4602 = vmatpush.bf16.msrb.mxu1 %v5933_v57  ;;  %4636 = vmatmul.bf16.vlgmr.msra.gmra.mxu3 %v8904_v8  ;;  %v7461_v24 = vld [vmem:[#allocation10 + $0x334] sm:$0xf0] }
 0x280   :  { %v5516_v50 = vld [vmem:[#allocation10 + $0x98] sm:$0xf]  ;;  %v5837_v56 = vor.u32 %v7461_v24, %v5836_v44  ;;  %v5518_v24 = vld [vmem:[#allocation10 + $0xb8] sm:$0xf0] }
 0x281   :  { %4591 = vmatpush.bf16.msrb.mxu0 %v5613_v2  ;;  %4621 = vmatpush.bf16.msra.mxu2 %v5997_v34  ;;  %v7381_v51 = vld [vmem:[#allocation10 + $0xb4] sm:$0xf0] }
 0x282   :  { %4693 = vmatpush.bf16.msra.mxu3 %v5681_v15  ;;  %v7148_v52 = vld [vmem:[#allocation10 + $0xd58] sm:$0xf]  ;;  %v5517_v31 = vor.u32 %v7381_v51, %v5516_v50  ;;  %v7385_v15 = vld [vmem:[#allocation10 + $0xdc] sm:$0xf]  ;;  %v1664_v51 = vperm.slane %v9003_v6, 4 }
 0x283   :  { %4603 = vmatpush.bf16.msrb.mxu1 %v5901_v13  ;;  %v7789_v57 = vld [vmem:[#allocation10 + $0xd74] sm:$0xf0] }
 0x284   :  { %7223 = vmatmul.msk.bf16.vlgmr.msra.gmra.mxu0 %vm3936_vm9, %v8923_v59  ;;  %v5804_v58 = vld [vmem:[#allocation10 + $0x2d8] sm:$0xf]  ;;  %v7149_v5 = vor.u32 %v7789_v57, %v7148_v52 }
 0x285   :  { %4592 = vmatpush.bf16.msrb.mxu0 %v5581_v1  ;;  %4622 = vmatpush.bf16.msra.mxu2 %v5965_v32  ;;  %v7453_v62 = vld [vmem:[#allocation10 + $0x2f4] sm:$0xf0]  ;;  %v5553_v32 = vor.u32 %v7385_v15, %v5550_v16 }
 0x286   :  { %4694 = vmatpush.bf16.msra.mxu3 %v5649_v40  ;;  %v5484_v2 = vld [vmem:[#allocation10 + $0x58] sm:$0xf]  ;;  %v5805_v0 = vor.u32 %v7453_v62, %v5804_v58 }
 0x287   :  { %4604 = vmatpush.bf16.msrb.mxu1 %v5869_v48  ;;  %v7373_v3 = vld [vmem:[#allocation10 + $0x74] sm:$0xf0]  ;;  %v4403_v48 = vpop.f32.mrf.mxu3 }
 0x288   :  { %4623 = vmatmul.bf16.vlgmr.msra.gmra.mxu2 %v8907_v35  ;;  %v7116_v10 = vld [vmem:[#allocation10 + $0xd18] sm:$0xf]  ;;  %v5485_v34 = vor.u32 %v7373_v3, %v5484_v2 }
 0x289   :  { %4667 = vmatpush.bf16.msrb.mxu2 %v7213_v38  ;;  %4593 = vmatpush.bf16.msrb.mxu0 %v5549_v45  ;;  %v7781_v11 = vld [vmem:[#allocation10 + $0xd34] sm:$0xf0]  ;;  %v1663_v38 = vperm.slane %v9003_v6, 3  ;;  %v7377_v45 = vld [vmem:[#allocation10 + $0x9c] sm:$0xf] }
 0x28a   :  { %4695 = vmatpush.bf16.msra.mxu3 %v5617_v14  ;;  %v5772_v12 = vld [vmem:[#allocation10 + $0x298] sm:$0xf]  ;;  %v7117_v25 = vor.u32 %v7781_v11, %v7116_v10  ;;  %v5521_v52 = vor.u32 %v7377_v45, %v5518_v24  ;;  %v7609_v45 = vld [vmem:[#allocation10 + $0x7dc] sm:$0xf] }
 0x28b   :  { %4605 = vmatpush.bf16.msrb.mxu1 %v5837_v56  ;;  %v7445_v13 = vld [vmem:[#allocation10 + $0x2b4] sm:$0xf0]  ;;  %v4287_v14 = vadd.f32 %v9017_v23, %v1663_v38 }
 0x28c   :  { %v5452_v18 = vld [vmem:[#allocation10 + $0x18] sm:$0xf]  ;;  %v5773_v30 = vor.u32 %v7445_v13, %v5772_v12 }
 0x28d   :  { %4668 = vmatpush.bf16.msrb.mxu2 %v7181_v43  ;;  %4594 = vmatpush.bf16.msrb.mxu0 %v5517_v31  ;;  %v7365_v1 = vld [vmem:[#allocation10 + $0x34] sm:$0xf0]  ;;  %v7369_v31 = vld [vmem:[#allocation10 + $0x5c] sm:$0xf]  ;;  %v4300_v3 = vadd.f32 %v9041_v19, %v4287_v14 }
 0x28e   :  { %v6700_v26 = vld [vmem:[#allocation10 + $0x9d8] sm:$0xf]  ;;  %4696 = vmatpush.bf16.msra.mxu3 %v5585_v9  ;;  %v5453_v40 = vor.u32 %v7365_v1, %v5452_v18  ;;  %v5489_v15 = vor.u32 %v7369_v31, %v5486_v41  ;;  %v7361_v18 = vld [vmem:[#allocation10 + $0x1c] sm:$0xf] }
 0x28f   :  { %v7677_v60 = vld [vmem:[#allocation10 + $0x9f4] sm:$0xf0]  ;;  %4606 = vmatpush.bf16.msrb.mxu1 %v5805_v0  ;;  %7224 = vmatmul.msk.bf16.vlgmr.msrb.gmra.mxu3 %vm3936_vm9, %v8923_v59  ;;  %v4405_v13 = vpop.f32.mrf.mxu3  ;;  %v5454_v19 = vld [vmem:[#allocation10 + $0x38] sm:$0xf0] }
 0x290   :  { %v7084_v33 = vld [vmem:[#allocation10 + $0xcd8] sm:$0xf]  ;;  %v6701_v44 = vor.u32 %v7677_v60, %v6700_v26  ;;  %v7601_v31 = vld [vmem:[#allocation10 + $0x79c] sm:$0xf] }
 0x291   :  { %4669 = vmatpush.bf16.msrb.mxu2 %v7149_v5  ;;  %v7773_v37 = vld [vmem:[#allocation10 + $0xcf4] sm:$0xf0]  ;;  %4595 = vmatpush.bf16.msrb.mxu0 %v5485_v34  ;;  %v4390_v5 = vpop.f32.mrf.mxu2  ;;  %v4313_v34 = vadd.f32 %v9045_v53, %v4300_v3  ;;  %v4799_v53 = vsub.f32 0.0, %v9029_v4  ;;  %v7593_v13 = vld [vmem:[#allocation10 + $0x75c] sm:$0xf] }
 0x292   :  { %v5740_v61 = vld [vmem:[#allocation10 + $0x258] sm:$0xf]  ;;  %v7085_v46 = vor.u32 %v7773_v37, %v7084_v33  ;;  %4697 = vmatpush.bf16.msra.mxu3 %v5553_v32  ;;  %v4391_v10 = vadd.f32 %v4390_v5, %v1664_v51  ;;  %v7665_v51 = vld [vmem:[#allocation10 + $0x99c] sm:$0xf] }
 0x293   :  { %v7437_v42 = vld [vmem:[#allocation10 + $0x274] sm:$0xf0]  ;;  %4607 = vmatpush.bf16.msrb.mxu1 %v5773_v30  ;;  %v6702_v30 = vld [vmem:[#allocation10 + $0x9f8] sm:$0xf0]  ;;  %v4809_v14 = vmul.f32 1.442695, %v4799_v53 }
 0x294   :  { %v6668_v47 = vld [vmem:[#allocation10 + $0x998] sm:$0xf]  ;;  %v5741_v43 = vor.u32 %v7437_v42, %v5740_v61  ;;  %v9060_v26 = vadd.f32 %v4403_v48, %v4391_v10  ;;  %v4351_v61 = vpop.f32.mrf.mxu0  ;;  %v5457_v42 = vor.u32 %v7361_v18, %v5454_v19  ;;  %v6446_v48 = vld [vmem:[#allocation10 + $0x7f8] sm:$0xf0] }
 0x295   :  { %4670 = vmatpush.bf16.msrb.mxu2 %v7117_v25  ;;  %v7669_v50 = vld [vmem:[#allocation10 + $0x9b4] sm:$0xf0]  ;;  %4596 = vmatpush.bf16.msrb.mxu0 %v5453_v40  ;;  %v7673_v25 = vld [vmem:[#allocation10 + $0x9dc] sm:$0xf]  ;;  %v4326_v40 = vadd.f32 %v9037_v39, %v4313_v34  ;;  %7825 = vpow2.f32 %v4809_v14 }
 0x296   :  { %v7052_v55 = vld [vmem:[#allocation10 + $0xc98] sm:$0xf]  ;;  %v6669_v62 = vor.u32 %v7669_v50, %v6668_v47  ;;  %4698 = vmatpush.bf16.msra.mxu3 %v5521_v52  ;;  %v6705_v24 = vor.u32 %v7673_v25, %v6702_v30  ;;  %v6449_v52 = vor.u32 %v7609_v45, %v6446_v48  ;;  %v7657_v5 = vld [vmem:[#allocation10 + $0x95c] sm:$0xf] }
 0x297   :  { %v7765_v56 = vld [vmem:[#allocation10 + $0xcb4] sm:$0xf0]  ;;  %4608 = vmatpush.bf16.msrb.mxu1 %v5741_v43  ;;  %v6574_v45 = vld [vmem:[#allocation10 + $0x8f8] sm:$0xf0] }
 0x298   :  { %v5708_v57 = vld [vmem:[#allocation10 + $0x218] sm:$0xf]  ;;  %v7053_v6 = vor.u32 %v7765_v56, %v7052_v55  ;;  %4597 = vmatmul.bf16.vlgmr.msrb.gmra.mxu0 %v8900_v28  ;;  %v6670_v55 = vld [vmem:[#allocation10 + $0x9b8] sm:$0xf0] }
 0x299   :  { %v7429_v58 = vld [vmem:[#allocation10 + $0x234] sm:$0xf0]  ;;  %4641 = vmatpush.bf16.msra.mxu0 %v6701_v44  ;;  %4671 = vmatpush.bf16.msrb.mxu2 %v7085_v46  ;;  %v4392_v4 = vpop.f32.mrf.mxu2  ;;  %v6673_v41 = vor.u32 %v7665_v51, %v6670_v55  ;;  %v7481_v51 = vld [vmem:[#allocation10 + $0x3dc] sm:$0xf] }
 0x29a   :  { %v6956_v27 = vld [vmem:[#allocation10 + $0xbd8] sm:$0xf]  ;;  %v5709_v23 = vor.u32 %v7429_v58, %v5708_v57  ;;  %4699 = vmatpush.bf16.msra.mxu3 %v5489_v15  ;;  %v4339_v57 = vadd.f32 %v9034_v29, %v4326_v40  ;;  %v4364_v29 = vpop.f32.mrf.mxu1  ;;  %v6382_v15 = vld [vmem:[#allocation10 + $0x778] sm:$0xf0] }
 0x29b   :  { %v7741_v2 = vld [vmem:[#allocation10 + $0xbf4] sm:$0xf0]  ;;  %v6385_v30 = vor.u32 %v7593_v13, %v6382_v15  ;;  %v7826_v40 = vpop.eup %7825  ;;  %v5934_v4 = vld [vmem:[#allocation10 + $0x3f8] sm:$0xf0] }
 0x29c   :  { %v6636_v0 = vld [vmem:[#allocation10 + $0x958] sm:$0xf]  ;;  %v6957_v16 = vor.u32 %v7741_v2, %v6956_v27  ;;  %4609 = vmatpush.bf16.msrb.mxu1 %v5709_v23  ;;  %v6510_v13 = vld [vmem:[#allocation10 + $0x878] sm:$0xf0] }
 0x29d   :  { %v7661_v9 = vld [vmem:[#allocation10 + $0x974] sm:$0xf0]  ;;  %4642 = vmatpush.bf16.msra.mxu0 %v6669_v62  ;;  %4672 = vmatpush.bf16.msrb.mxu2 %v7053_v6  ;;  %v6414_v62 = vld [vmem:[#allocation10 + $0x7b8] sm:$0xf0]  ;;  %v4352_v6 = vadd.f32 %v4351_v61, %v4339_v57  ;;  %v9069_v14 = vpop.f32.mrf.mxu3 }
 0x29e   :  { %v7020_v11 = vld [vmem:[#allocation10 + $0xc58] sm:$0xf]  ;;  %v6637_v1 = vor.u32 %v7661_v9, %v6636_v0  ;;  %4700 = vmatpush.bf16.msra.mxu3 %v5457_v42  ;;  %v6638_v0 = vld [vmem:[#allocation10 + $0x978] sm:$0xf0]  ;;  %v6417_v23 = vor.u32 %v7601_v31, %v6414_v62  ;;  %v5937_v62 = vor.u32 %v7481_v51, %v5934_v4 }
 0x29f   :  { %v7757_v12 = vld [vmem:[#allocation10 + $0xc74] sm:$0xf0]  ;;  %4610 = vmatmul.bf16.vlgmr.msrb.gmra.mxu1 %v8895_v7  ;;  %v7545_v15 = vld [vmem:[#allocation10 + $0x5dc] sm:$0xf] }
 0x2a0   :  { %v6924_v36 = vld [vmem:[#allocation10 + $0xb98] sm:$0xf]  ;;  %v7021_v60 = vor.u32 %v7757_v12, %v7020_v11  ;;  %4654 = vmatpush.bf16.msra.mxu1 %v6957_v16  ;;  %v4365_v11 = vadd.f32 %v4364_v29, %v4352_v6  ;;  %v4353_v12 = vpop.f32.mrf.mxu0  ;;  %v6641_v16 = vor.u32 %v7657_v5, %v6638_v0  ;;  %v5902_v5 = vld [vmem:[#allocation10 + $0x3b8] sm:$0xf0] }
 0x2a1   :  { %v7733_v21 = vld [vmem:[#allocation10 + $0xbb4] sm:$0xf0]  ;;  %4643 = vmatpush.bf16.msra.mxu0 %v6637_v1  ;;  %4701 = vmatmul.bf16.vlgmr.msra.gmra.mxu3 %v8900_v28  ;;  %v6606_v28 = vld [vmem:[#allocation10 + $0x938] sm:$0xf0] }
 0x2a2   :  { %v6604_v32 = vld [vmem:[#allocation10 + $0x918] sm:$0xf]  ;;  %v6925_v44 = vor.u32 %v7733_v21, %v6924_v36  ;;  %4673 = vmatpush.bf16.msrb.mxu2 %v7021_v60  ;;  %4745 = vmatpush.bf16.msrb.mxu3 %v6705_v24  ;;  %v7649_v36 = vld [vmem:[#allocation10 + $0x91c] sm:$0xf]  ;;  %v4378_v21 = vadd.f32 %v9047_v54, %v4365_v11 }
 0x2a3   :  { %v7653_v33 = vld [vmem:[#allocation10 + $0x934] sm:$0xf0]  ;;  %v6609_v61 = vor.u32 %v7649_v36, %v6606_v28  ;;  %v7641_v54 = vld [vmem:[#allocation10 + $0x8dc] sm:$0xf] }
 0x2a4   :  { %v6988_v37 = vld [vmem:[#allocation10 + $0xc18] sm:$0xf]  ;;  %v6605_v46 = vor.u32 %v7653_v33, %v6604_v32  ;;  %4655 = vmatpush.bf16.msra.mxu1 %v6925_v44  ;;  %v7585_v32 = vld [vmem:[#allocation10 + $0x71c] sm:$0xf]  ;;  %v4800_v33 = vsub.f32 0.0, %v4378_v21 }
 0x2a5   :  { %v7749_v38 = vld [vmem:[#allocation10 + $0xc34] sm:$0xf0]  ;;  %v7569_v0 = vld [vmem:[#allocation10 + $0x69c] sm:$0xf] }
 0x2a6   :  { %v6892_v47 = vld [vmem:[#allocation10 + $0xb58] sm:$0xf]  ;;  %v6989_v43 = vor.u32 %v7749_v38, %v6988_v37  ;;  %4644 = vmatpush.bf16.msra.mxu0 %v6605_v46  ;;  %4746 = vmatpush.bf16.msrb.mxu3 %v6673_v41  ;;  %v6350_v37 = vld [vmem:[#allocation10 + $0x738] sm:$0xf0]  ;;  %v4811_v48 = vmul.f32 1.442695, %v4800_v33 }
 0x2a7   :  { %v7725_v50 = vld [vmem:[#allocation10 + $0xb74] sm:$0xf0]  ;;  %v7633_v41 = vld [vmem:[#allocation10 + $0x89c] sm:$0xf] }
 0x2a8   :  { %v6572_v39 = vld [vmem:[#allocation10 + $0x8d8] sm:$0xf]  ;;  %v6893_v58 = vor.u32 %v7725_v50, %v6892_v47  ;;  %4674 = vmatpush.bf16.msrb.mxu2 %v6989_v43  ;;  %v4366_v47 = vpop.f32.mrf.mxu1  ;;  %v6353_v50 = vor.u32 %v7585_v32, %v6350_v37  ;;  %v4823_v43 = vadd.f32 1.0, %v7826_v40  ;;  %7827 = vpow2.f32 %v4811_v48  ;;  %v7625_v11 = vld [vmem:[#allocation10 + $0x85c] sm:$0xf] }
 0x2a9   :  { %v7645_v56 = vld [vmem:[#allocation10 + $0x8f4] sm:$0xf0]  ;;  %v7465_v36 = vld [vmem:[#allocation10 + $0x35c] sm:$0xf]  ;;  %v6513_v32 = vor.u32 %v7625_v11, %v6510_v13  ;;  %v3031_v37 = vunpack.c.h.b16 %v9032_v20 }
 0x2aa   :  { %v6573_v27 = vor.u32 %v7645_v56, %v6572_v39  ;;  %v6860_v2 = vld [vmem:[#allocation10 + $0xb18] sm:$0xf]  ;;  %4656 = vmatpush.bf16.msra.mxu1 %v6893_v58  ;;  %4747 = vmatpush.bf16.msrb.mxu3 %v6641_v16  ;;  %v7577_v39 = vld [vmem:[#allocation10 + $0x6dc] sm:$0xf]  ;;  %7829 = vrcp.f32 %v4823_v43 }
 0x2ab   :  { %v7717_v3 = vld [vmem:[#allocation10 + $0xb34] sm:$0xf0]  ;;  %4675 = vmatmul.bf16.vlgmr.msrb.gmra.mxu2 %v8927_v17  ;;  %v6318_v56 = vld [vmem:[#allocation10 + $0x6f8] sm:$0xf0]  ;;  %v3487_v20 = vpack.c.b16 %v3031_v37, %v3031_v37 }
 0x2ac   :  { %v6540_v9 = vld [vmem:[#allocation10 + $0x898] sm:$0xf]  ;;  %4732 = vmatpush.bf16.msra.mxu2 %v6449_v52  ;;  %v6861_v34 = vor.u32 %v7717_v3, %v6860_v2  ;;  %4645 = vmatpush.bf16.msra.mxu0 %v6573_v27  ;;  %v6577_v52 = vor.u32 %v7641_v54, %v6574_v45  ;;  %v6542_v27 = vld [vmem:[#allocation10 + $0x8b8] sm:$0xf0]  ;;  %v6321_v2 = vor.u32 %v7577_v39, %v6318_v56 }
 0x2ad   :  { %v7637_v10 = vld [vmem:[#allocation10 + $0x8b4] sm:$0xf0]  ;;  %v7473_v3 = vld [vmem:[#allocation10 + $0x39c] sm:$0xf] }
 0x2ae   :  { %v6541_v18 = vor.u32 %v7637_v10, %v6540_v9  ;;  %v6828_v19 = vld [vmem:[#allocation10 + $0xad8] sm:$0xf]  ;;  %4657 = vmatpush.bf16.msra.mxu1 %v6861_v34  ;;  %4748 = vmatpush.bf16.msrb.mxu3 %v6609_v61  ;;  %v6286_v9 = vld [vmem:[#allocation10 + $0x6b8] sm:$0xf0]  ;;  %v6545_v10 = vor.u32 %v7633_v41, %v6542_v27  ;;  %v7828_v12 = vpop.eup %7827  ;;  %v5905_v34 = vor.u32 %v7473_v3, %v5902_v5  ;;  %v3963_v3 = vsel %vm3940_vm2, %v3487_v20, 0 }
 0x2af   :  { %v7709_v1 = vld [vmem:[#allocation10 + $0xaf4] sm:$0xf0]  ;;  %v6190_v16 = vld [vmem:[#allocation10 + $0x5f8] sm:$0xf0] }
 0x2b0   :  { %v6508_v25 = vld [vmem:[#allocation10 + $0x858] sm:$0xf]  ;;  %4733 = vmatpush.bf16.msra.mxu2 %v6417_v23  ;;  %v6829_v53 = vor.u32 %v7709_v1, %v6828_v19  ;;  %4646 = vmatpush.bf16.msra.mxu0 %v6541_v18  ;;  %v4824_v18 = vadd.f32 1.0, %v7828_v12  ;;  %v9071_v19 = vpop.f32.mrf.mxu2  ;;  %v6289_v1 = vor.u32 %v7569_v0, %v6286_v9  ;;  %v5870_v21 = vld [vmem:[#allocation10 + $0x378] sm:$0xf0]  ;;  %v6193_v33 = vor.u32 %v7545_v15, %v6190_v16 }
 0x2b1   :  { %v7629_v60 = vld [vmem:[#allocation10 + $0x874] sm:$0xf0]  ;;  %v5873_v40 = vor.u32 %v7465_v36, %v5870_v21  ;;  %v6478_v61 = vld [vmem:[#allocation10 + $0x838] sm:$0xf0] }
 0x2b2   :  { %v6796_v38 = vld [vmem:[#allocation10 + $0xa98] sm:$0xf]  ;;  %v6509_v42 = vor.u32 %v7629_v60, %v6508_v25  ;;  %4658 = vmatpush.bf16.msra.mxu1 %v6829_v53  ;;  %4749 = vmatpush.bf16.msrb.mxu3 %v6577_v52  ;;  %v7561_v25 = vld [vmem:[#allocation10 + $0x65c] sm:$0xf]  ;;  %7831 = vrcp.f32 %v4824_v18 }
 0x2b3   :  { %v7701_v44 = vld [vmem:[#allocation10 + $0xab4] sm:$0xf0]  ;;  %v6254_v60 = vld [vmem:[#allocation10 + $0x678] sm:$0xf0] }
 0x2b4   :  { %v6476_v24 = vld [vmem:[#allocation10 + $0x818] sm:$0xf]  ;;  %4734 = vmatpush.bf16.msra.mxu2 %v6385_v30  ;;  %v6797_v55 = vor.u32 %v7701_v44, %v6796_v38  ;;  %4647 = vmatpush.bf16.msra.mxu0 %v6509_v42  ;;  %v4457_v30 = vpop.f32.mrf.mxu3  ;;  %v7617_v53 = vld [vmem:[#allocation10 + $0x81c] sm:$0xf]  ;;  %v7830_v38 = vpop.eup %7829  ;;  %v6257_v54 = vor.u32 %v7561_v25, %v6254_v60 }
 0x2b5   :  { %v7621_v46 = vld [vmem:[#allocation10 + $0x834] sm:$0xf0]  ;;  %v7537_v42 = vld [vmem:[#allocation10 + $0x59c] sm:$0xf]  ;;  %v4839_v47 = vmin.f32 %v7830_v38, 1.0  ;;  %v6481_v51 = vor.u32 %v7617_v53, %v6478_v61 }
 0x2b6   :  { %v6477_v57 = vor.u32 %v7621_v46, %v6476_v24  ;;  %v6764_v58 = vld [vmem:[#allocation10 + $0xa58] sm:$0xf]  ;;  %4659 = vmatpush.bf16.msra.mxu1 %v6797_v55  ;;  %4750 = vmatpush.bf16.msrb.mxu3 %v6545_v10  ;;  %v6158_v44 = vld [vmem:[#allocation10 + $0x5b8] sm:$0xf0] }
 0x2b7   :  { %v7693_v31 = vld [vmem:[#allocation10 + $0xa74] sm:$0xf0]  ;;  %v7457_v45 = vld [vmem:[#allocation10 + $0x31c] sm:$0xf]  ;;  %v6161_v4 = vor.u32 %v7537_v42, %v6158_v44  ;;  %v4854_v27 = vrot.slane %v4839_v47, 4 }
 0x2b8   :  { %4735 = vmatpush.bf16.msra.mxu2 %v6353_v50  ;;  %v6765_v6 = vor.u32 %v7693_v31, %v6764_v58  ;;  %4648 = vmatpush.bf16.msra.mxu0 %v6477_v57  ;;  %v6732_v29 = vld [vmem:[#allocation10 + $0xa18] sm:$0xf]  ;;  %v5838_v48 = vld [vmem:[#allocation10 + $0x338] sm:$0xf0]  ;;  %v4416_v50 = vpop.f32.mrf.mxu0  ;;  %v7832_v52 = vpop.eup %7831 }
 0x2b9   :  { %v7685_v23 = vld [vmem:[#allocation10 + $0xa34] sm:$0xf0]  ;;  %v7553_v24 = vld [vmem:[#allocation10 + $0x61c] sm:$0xf]  ;;  %v4417_v43 = vadd.f32 %v4416_v50, %v9060_v26  ;;  %v5841_v55 = vor.u32 %v7457_v45, %v5838_v48  ;;  %v4444_v57 = vpop.f32.mrf.mxu2  ;;  %v4840_v41 = vmin.f32 %v7832_v52, 1.0 }
 0x2ba   :  { %4660 = vmatpush.bf16.msra.mxu1 %v6765_v6  ;;  %v6733_v28 = vor.u32 %v7685_v23, %v6732_v29  ;;  %v6222_v46 = vld [vmem:[#allocation10 + $0x638] sm:$0xf0]  ;;  %4751 = vmatpush.bf16.msrb.mxu3 %v6513_v32  ;;  %v4429_v29 = vpop.f32.mrf.mxu1 }
 0x2bb   :  { %4649 = vmatmul.bf16.vlgmr.msra.gmra.mxu0 %v8915_v49  ;;  %v7529_v39 = vld [vmem:[#allocation10 + $0x55c] sm:$0xf]  ;;  %v6225_v58 = vor.u32 %v7553_v24, %v6222_v46  ;;  %v4855_v26 = vrot.slane %v4840_v41, 2  ;;  %v4430_v11 = vadd.f32 %v4429_v29, %v4417_v43 }
 0x2bc   :  { %4706 = vmatpush.bf16.msrb.mxu0 %v5937_v62  ;;  %4736 = vmatpush.bf16.msra.mxu2 %v6321_v2  ;;  %v6126_v56 = vld [vmem:[#allocation10 + $0x578] sm:$0xf0] }
 0x2bd   :  { %v7449_v31 = vld [vmem:[#allocation10 + $0x2dc] sm:$0xf]  ;;  %v6129_v2 = vor.u32 %v7529_v39, %v6126_v56  ;;  %v4861_v23 = vsel %vm4860_vm11, %v4854_v27, %v4855_v26  ;;  %v9085_v38 = vpop.f32.mrf.mxu3 }
 0x2be   :  { %4661 = vmatpush.bf16.msra.mxu1 %v6733_v28  ;;  %v5806_v62 = vld [vmem:[#allocation10 + $0x2f8] sm:$0xf0]  ;;  %4752 = vmatpush.bf16.msrb.mxu3 %v6481_v51  ;;  %v4863_v13 = vsel %vm4862_vm12, %v9010_v63, %v4861_v23 }
 0x2bf   :  { %v5809_v5 = vor.u32 %v7449_v31, %v5806_v62  ;;  %v7521_v6 = vld [vmem:[#allocation10 + $0x51c] sm:$0xf]  ;;  %4869 = vst [vmem:[#allocation13] sm:$0xff] %v4863_v13 }
 0x2c0   :  { %4707 = vmatpush.bf16.msrb.mxu0 %v5905_v34  ;;  %4737 = vmatpush.bf16.msra.mxu2 %v6289_v1  ;;  %v6094_v0 = vld [vmem:[#allocation10 + $0x538] sm:$0xf0]  ;;  %v4418_v12 = vpop.f32.mrf.mxu0 }
 0x2c1   :  { %4662 = vmatmul.bf16.vlgmr.msra.gmra.mxu1 %v8912_v22  ;;  %v7441_v9 = vld [vmem:[#allocation10 + $0x29c] sm:$0xf]  ;;  %4753 = vmatmul.bf16.vlgmr.msrb.gmra.mxu3 %v8915_v49  ;;  %v6097_v34 = vor.u32 %v7521_v6, %v6094_v0  ;;  %v4443_v49 = vadd.f32 %v9071_v19, %v4430_v11 }
 0x2c2   :  { %4719 = vmatpush.bf16.msrb.mxu1 %v6193_v33  ;;  %v5774_v10 = vld [vmem:[#allocation10 + $0x2b8] sm:$0xf0]  ;;  %v4431_v33 = vpop.f32.mrf.mxu1 }
 0x2c3   :  { %v5777_v15 = vor.u32 %v7441_v9, %v5774_v10  ;;  %v7513_v16 = vld [vmem:[#allocation10 + $0x4dc] sm:$0xf]  ;;  %v4456_v28 = vadd.f32 %v9069_v14, %v4443_v49 }
 0x2c4   :  { %4708 = vmatpush.bf16.msrb.mxu0 %v5873_v40  ;;  %4738 = vmatpush.bf16.msra.mxu2 %v6257_v54  ;;  %v6062_v18 = vld [vmem:[#allocation10 + $0x4f8] sm:$0xf0] }
 0x2c5   :  { %v7433_v1 = vld [vmem:[#allocation10 + $0x25c] sm:$0xf]  ;;  %v6065_v21 = vor.u32 %v7513_v16, %v6062_v18 }
 0x2c6   :  { %4720 = vmatpush.bf16.msrb.mxu1 %v6161_v4  ;;  %v5742_v36 = vld [vmem:[#allocation10 + $0x278] sm:$0xf0] }
 0x2c7   :  { %v5745_v25 = vor.u32 %v7433_v1, %v5742_v36  ;;  %v7505_v60 = vld [vmem:[#allocation10 + $0x49c] sm:$0xf]  ;;  %v4507_v51 = vpop.f32.mrf.mxu2 }
 0x2c8   :  { %4709 = vmatpush.bf16.msrb.mxu0 %v5841_v55  ;;  %4739 = vmatpush.bf16.msra.mxu2 %v6225_v58  ;;  %v6030_v30 = vld [vmem:[#allocation10 + $0x4b8] sm:$0xf0]  ;;  %v4522_v55 = vpop.f32.mrf.mxu3 }
 0x2c9   :  { %v7425_v63 = vld [vmem:[#allocation10 + $0x21c] sm:$0xf]  ;;  %v6033_v37 = vor.u32 %v7505_v60, %v6030_v30 }
 0x2ca   :  { %4721 = vmatpush.bf16.msrb.mxu1 %v6129_v2  ;;  %v5710_v32 = vld [vmem:[#allocation10 + $0x238] sm:$0xf0]  ;;  %v4481_v50 = vpop.f32.mrf.mxu1 }
 0x2cb   :  { %4740 = vmatmul.bf16.vlgmr.msra.gmra.mxu2 %v8904_v8  ;;  %v7737_v8 = vld [vmem:[#allocation10 + $0xbdc] sm:$0xf]  ;;  %v5713_v19 = vor.u32 %v7425_v63, %v5710_v32 }
 0x2cc   :  { %4791 = vmatpush.bf16.msrb.mxu2 %v3963_v3  ;;  %4710 = vmatpush.bf16.msrb.mxu0 %v5809_v5  ;;  %v6958_v53 = vld [vmem:[#allocation10 + $0xbf8] sm:$0xf0] }
 0x2cd   :  { %v7497_v40 = vld [vmem:[#allocation10 + $0x45c] sm:$0xf]  ;;  %v6961_v42 = vor.u32 %v7737_v8, %v6958_v53  ;;  %v4468_v62 = vpop.f32.mrf.mxu0 }
 0x2ce   :  { %4722 = vmatpush.bf16.msrb.mxu1 %v6097_v34  ;;  %v5998_v61 = vld [vmem:[#allocation10 + $0x478] sm:$0xf0]  ;;  %v4469_v27 = vadd.f32 %v4468_v62, %v4456_v28  ;;  %v9091_v34 = vld [vmem:[#allocation11] sm:$0xff] }
 0x2cf   :  { %v7729_v44 = vld [vmem:[#allocation10 + $0xb9c] sm:$0xf]  ;;  %v6001_v54 = vor.u32 %v7497_v40, %v5998_v61  ;;  %v4509_v26 = vpop.f32.mrf.mxu2  ;;  %v1665_v13 = vperm.slane %v9091_v34, 5 }
 0x2d0   :  { %4711 = vmatpush.bf16.msrb.mxu0 %v5777_v15  ;;  %v6926_v14 = vld [vmem:[#allocation10 + $0xbb8] sm:$0xf0]  ;;  %v4482_v0 = vadd.f32 %v4481_v50, %v4469_v27 }
 0x2d1   :  { %v7489_v45 = vld [vmem:[#allocation10 + $0x41c] sm:$0xf]  ;;  %v6929_v24 = vor.u32 %v7729_v44, %v6926_v14 }
 0x2d2   :  { %4723 = vmatpush.bf16.msrb.mxu1 %v6065_v21  ;;  %v5966_v48 = vld [vmem:[#allocation10 + $0x438] sm:$0xf0] }
 0x2d3   :  { %v7801_v46 = vld [vmem:[#allocation10 + $0xddc] sm:$0xf]  ;;  %v5969_v43 = vor.u32 %v7489_v45, %v5966_v48 }
 0x2d4   :  { %4712 = vmatpush.bf16.msrb.mxu0 %v5745_v25  ;;  %v7214_v47 = vld [vmem:[#allocation10 + $0xdf8] sm:$0xf0] }
 0x2d5   :  { %v7721_v4 = vld [vmem:[#allocation10 + $0xb5c] sm:$0xf]  ;;  %v7217_v39 = vor.u32 %v7801_v46, %v7214_v47  ;;  %v4470_v15 = vpop.f32.mrf.mxu0 }
 0x2d6   :  { %4724 = vmatpush.bf16.msrb.mxu1 %v6033_v37  ;;  %v6894_v20 = vld [vmem:[#allocation10 + $0xb78] sm:$0xf0] }
 0x2d7   :  { %v6897_v56 = vor.u32 %v7721_v4, %v6894_v20  ;;  %v7793_v52 = vld [vmem:[#allocation10 + $0xd9c] sm:$0xf]  ;;  %v4801_v4 = vsub.f32 0.0, %v4482_v0  ;;  %v1666_v0 = vperm.slane %v9091_v34, 6 }
 0x2d8   :  { %4713 = vmatpush.bf16.msrb.mxu0 %v5713_v19  ;;  %v7182_v57 = vld [vmem:[#allocation10 + $0xdb8] sm:$0xf0] }
 0x2d9   :  { %v7713_v58 = vld [vmem:[#allocation10 + $0xb1c] sm:$0xf]  ;;  %v7185_v41 = vor.u32 %v7793_v52, %v7182_v57 }
 0x2da   :  { %4725 = vmatpush.bf16.msrb.mxu1 %v6001_v54  ;;  %v6862_v31 = vld [vmem:[#allocation10 + $0xb38] sm:$0xf0] }
 0x2db   :  { %4714 = vmatmul.bf16.vlgmr.msrb.gmra.mxu0 %v8895_v7  ;;  %7225 = vmatmul.msk.bf16.vlgmr.msrb.gmra.mxu2 %vm3936_vm9, %v8923_v59  ;;  %v6865_v7 = vor.u32 %v7713_v58, %v6862_v31  ;;  %v7785_v2 = vld [vmem:[#allocation10 + $0xd5c] sm:$0xf]  ;;  %v4483_v59 = vpop.f32.mrf.mxu1 }
 0x2dc   :  { %4758 = vmatpush.bf16.msra.mxu0 %v6961_v42  ;;  %v7150_v3 = vld [vmem:[#allocation10 + $0xd78] sm:$0xf0] }
 0x2dd   :  { %v7705_v5 = vld [vmem:[#allocation10 + $0xadc] sm:$0xf]  ;;  %v7153_v9 = vor.u32 %v7785_v2, %v7150_v3 }
 0x2de   :  { %4726 = vmatpush.bf16.msrb.mxu1 %v5969_v43  ;;  %v6830_v6 = vld [vmem:[#allocation10 + $0xaf8] sm:$0xf0] }
 0x2df   :  { %v6833_v10 = vor.u32 %v7705_v5, %v6830_v6  ;;  %v7777_v29 = vld [vmem:[#allocation10 + $0xd1c] sm:$0xf] }
 0x2e0   :  { %4759 = vmatpush.bf16.msra.mxu0 %v6929_v24  ;;  %v7118_v23 = vld [vmem:[#allocation10 + $0xd38] sm:$0xf0]  ;;  %v4572_v19 = vpop.f32.mrf.mxu3 }
 0x2e1   :  { %4727 = vmatmul.bf16.vlgmr.msrb.gmra.mxu1 %v8907_v35  ;;  %v7697_v11 = vld [vmem:[#allocation10 + $0xa9c] sm:$0xf]  ;;  %v7121_v35 = vor.u32 %v7777_v29, %v7118_v23 }
 0x2e2   :  { %4771 = vmatpush.bf16.msra.mxu1 %v7217_v39  ;;  %v6798_v12 = vld [vmem:[#allocation10 + $0xab8] sm:$0xf0]  ;;  %v4813_v39 = vmul.f32 1.442695, %v4801_v4 }
 0x2e3   :  { %v6801_v16 = vor.u32 %v7697_v11, %v6798_v12  ;;  %v7769_v18 = vld [vmem:[#allocation10 + $0xcdc] sm:$0xf]  ;;  %v4494_v1 = vpop.f32.mrf.mxu1 }
 0x2e4   :  { %4760 = vmatpush.bf16.msra.mxu0 %v6897_v56  ;;  %v7086_v49 = vld [vmem:[#allocation10 + $0xcf8] sm:$0xf0]  ;;  %v4495_v28 = vadd.f32 %v4494_v1, %v1665_v13  ;;  %7833 = vpow2.f32 %v4813_v39 }
 0x2e5   :  { %v7689_v36 = vld [vmem:[#allocation10 + $0xa5c] sm:$0xf]  ;;  %v7089_v25 = vor.u32 %v7769_v18, %v7086_v49 }
 0x2e6   :  { %4772 = vmatpush.bf16.msra.mxu1 %v7185_v41  ;;  %v6766_v21 = vld [vmem:[#allocation10 + $0xa78] sm:$0xf0]  ;;  %v4508_v60 = vadd.f32 %v4507_v51, %v4495_v28 }
 0x2e7   :  { %v6769_v30 = vor.u32 %v7689_v36, %v6766_v21  ;;  %v7761_v63 = vld [vmem:[#allocation10 + $0xc9c] sm:$0xf] }
 0x2e8   :  { %4761 = vmatpush.bf16.msra.mxu0 %v6865_v7  ;;  %v7054_v32 = vld [vmem:[#allocation10 + $0xcb8] sm:$0xf0]  ;;  %v4521_v53 = vadd.f32 %v9085_v38, %v4508_v60  ;;  %v4574_v46 = vpop.f32.mrf.mxu3 }
 0x2e9   :  { %v7681_v33 = vld [vmem:[#allocation10 + $0xa1c] sm:$0xf]  ;;  %v7057_v37 = vor.u32 %v7761_v63, %v7054_v32 }
 0x2ea   :  { %4773 = vmatpush.bf16.msra.mxu1 %v7153_v9  ;;  %v6734_v8 = vld [vmem:[#allocation10 + $0xa38] sm:$0xf0]  ;;  %v7834_v41 = vpop.eup %7833 }
 0x2eb   :  { %v6737_v40 = vor.u32 %v7681_v33, %v6734_v8  ;;  %v7753_v61 = vld [vmem:[#allocation10 + $0xc5c] sm:$0xf]  ;;  %v4496_v44 = vpop.f32.mrf.mxu1  ;;  %v4559_v48 = vpop.f32.mrf.mxu2  ;;  %v4825_v2 = vadd.f32 1.0, %v7834_v41 }
 0x2ec   :  { %4762 = vmatpush.bf16.msra.mxu0 %v6833_v10  ;;  %v7022_v42 = vld [vmem:[#allocation10 + $0xc78] sm:$0xf0] }
 0x2ed   :  { %v7025_v14 = vor.u32 %v7753_v61, %v7022_v42  ;;  %v7745_v54 = vld [vmem:[#allocation10 + $0xc1c] sm:$0xf] }
 0x2ee   :  { %4774 = vmatpush.bf16.msra.mxu1 %v7121_v35  ;;  %v6990_v45 = vld [vmem:[#allocation10 + $0xc38] sm:$0xf0] }
 0x2ef   :  { %v6993_v24 = vor.u32 %v7745_v54, %v6990_v45 }
 0x2f0   :  { %4763 = vmatpush.bf16.msra.mxu0 %v6801_v16 }
 0x2f1   :  { %v4533_v38 = vpop.f32.mrf.mxu0 }
 0x2f2   :  { %4775 = vmatpush.bf16.msra.mxu1 %v7089_v25  ;;  %v4534_v47 = vadd.f32 %v4533_v38, %v4521_v53  ;;  %v1667_v38 = vperm.slane %v9091_v34, 7 }
 0x2f3   :  { %v4561_v50 = vpop.f32.mrf.mxu2 }
 0x2f4   :  { %4764 = vmatpush.bf16.msra.mxu0 %v6769_v30 }
 0x2f6   :  { %4776 = vmatpush.bf16.msra.mxu1 %v7057_v37 }
 0x2f8   :  { %4765 = vmatpush.bf16.msra.mxu0 %v6737_v40 }
 0x2f9   :  { %v4535_v51 = vpop.f32.mrf.mxu0 }
 0x2fa   :  { %4777 = vmatpush.bf16.msra.mxu1 %v7025_v14 }
 0x2fb   :  { %4766 = vmatmul.bf16.vlgmr.msra.gmra.mxu0 %v8912_v22  ;;  %v4546_v20 = vpop.f32.mrf.mxu1 }
 0x2fc   :  { %v4547_v43 = vadd.f32 %v4546_v20, %v4534_v47 }
 0x2fe   :  { %4778 = vmatpush.bf16.msra.mxu1 %v6993_v24  ;;  %v4560_v55 = vadd.f32 %v4559_v48, %v4547_v43 }
 0x300   :  { %v4573_v56 = vadd.f32 %v4572_v19, %v4560_v55 }
 0x301   :  { %4779 = vmatmul.bf16.vlgmr.msra.gmra.mxu1 %v8927_v17  ;;  %v4585_v52 = vpop.f32.mrf.mxu0 }
 0x302   :  { %v4586_v57 = vadd.f32 %v4585_v52, %v4573_v56  ;;  %v4637_v58 = vpop.f32.mrf.mxu3 }
 0x303   :  { %v4548_v22 = vpop.f32.mrf.mxu1 }
 0x304   :  { %v4802_v31 = vsub.f32 0.0, %v4586_v57 }
 0x306   :  { %v4815_v62 = vmul.f32 1.442695, %v4802_v31 }
 0x308   :  { %7835 = vpow2.f32 %v4815_v62 }
 0x309   :  { %v4587_v7 = vpop.f32.mrf.mxu0  ;;  %7837 = vrcp.f32 %v4825_v2 }
 0x30a   :  { %v4639_v17 = vpop.f32.mrf.mxu3 }
 0x30b   :  { %v4624_v27 = vpop.f32.mrf.mxu2 }
 0x30e   :  { %v7836_v3 = vpop.eup %7835 }
 0x30f   :  { %v4826_v59 = vadd.f32 1.0, %v7836_v3  ;;  %v7838_v9 = vpop.eup %7837 }
 0x310   :  { %v4841_v12 = vmin.f32 %v7838_v9, 1.0 }
 0x311   :  { %7839 = vrcp.f32 %v4826_v59 }
 0x312   :  { %v4689_v6 = vpop.f32.mrf.mxu3 }
 0x313   :  { %v4626_v26 = vpop.f32.mrf.mxu2 }
 0x315   :  { %v4598_v5 = vpop.f32.mrf.mxu0 }
 0x316   :  { %v4599_v23 = vadd.f32 %v4598_v5, %v1666_v0 }
 0x317   :  { %v7840_v10 = vpop.eup %7839 }
 0x318   :  { %v4842_v29 = vmin.f32 %v7840_v10, 1.0 }
 0x31a   :  { %v4856_v13 = vrot.slane %v4842_v29, 6  ;;  %v4691_v16 = vpop.f32.mrf.mxu3 }
 0x31c   :  { %v4611_v11 = vpop.f32.mrf.mxu1  ;;  %v9099_v49 = vsel %vm3940_vm2, %v4841_v12, %v4856_v13 }
 0x31d   :  { %v4612_v15 = vadd.f32 %v4611_v11, %v4599_v23  ;;  %v4600_v35 = vpop.f32.mrf.mxu0 }
 0x31f   :  { %v4625_v18 = vadd.f32 %v4624_v27, %v4612_v15 }
 0x321   :  { %v4638_v1 = vadd.f32 %v4637_v58, %v4625_v18 }
 0x324   :  { %v4613_v36 = vpop.f32.mrf.mxu1  ;;  %v4702_v21 = vpop.f32.mrf.mxu3 }
 0x325   :  { %v4703_v47 = vadd.f32 %v4702_v21, %v1667_v38 }
 0x32c   :  { %v4704_v25 = vpop.f32.mrf.mxu3 }
 0x32e   :  { %v4676_v28 = vpop.f32.mrf.mxu2 }
 0x336   :  { %v4678_v60 = vpop.f32.mrf.mxu2 }
 0x338   :  { %v4650_v30 = vpop.f32.mrf.mxu0 }
 0x339   :  { %v4651_v63 = vadd.f32 %v4650_v30, %v4638_v1 }
 0x33e   :  { %v4663_v32 = vpop.f32.mrf.mxu1 }
 0x33f   :  { %v4664_v33 = vadd.f32 %v4663_v32, %v4651_v63 }
 0x340   :  { %v4652_v8 = vpop.f32.mrf.mxu0 }
 0x341   :  { %v4677_v53 = vadd.f32 %v4676_v28, %v4664_v33 }
 0x343   :  { %v4690_v37 = vadd.f32 %v4689_v6, %v4677_v53 }
 0x344   :  { %v4754_v40 = vpop.f32.mrf.mxu3 }
 0x345   :  { %v4803_v4 = vsub.f32 0.0, %v4690_v37 }
 0x346   :  { %v4665_v19 = vpop.f32.mrf.mxu1 }
 0x347   :  { %v4817_v55 = vmul.f32 1.442695, %v4803_v4 }
 0x349   :  { %7841 = vpow2.f32 %v4817_v55 }
 0x34c   :  { %v4756_v42 = vpop.f32.mrf.mxu3 }
 0x34e   :  { %v4741_v61 = vpop.f32.mrf.mxu2 }
 0x34f   :  { %v7842_v62 = vpop.eup %7841 }
 0x350   :  { %v4827_v34 = vadd.f32 1.0, %v7842_v62 }
 0x356   :  { %v4743_v44 = vpop.f32.mrf.mxu2 }
 0x358   :  { %v4715_v14 = vpop.f32.mrf.mxu0 }
 0x359   :  { %v4716_v50 = vadd.f32 %v4715_v14, %v4703_v47 }
 0x35e   :  { %v4728_v54 = vpop.f32.mrf.mxu1  ;;  %v4793_v45 = vpop.f32.mrf.mxu2 }
 0x35f   :  { %v4729_v51 = vadd.f32 %v4728_v54, %v4716_v50 }
 0x360   :  { %v4717_v48 = vpop.f32.mrf.mxu0 }
 0x361   :  { %v4742_v20 = vadd.f32 %v4741_v61, %v4729_v51 }
 0x363   :  { %v4755_v39 = vadd.f32 %v4754_v40, %v4742_v20 }
 0x366   :  { %v4730_v24 = vpop.f32.mrf.mxu1  ;;  %v4795_v46 = vpop.f32.mrf.mxu2 }
 0x378   :  { %v4767_v43 = vpop.f32.mrf.mxu0 }
 0x379   :  { %v4768_v56 = vadd.f32 %v4767_v43, %v4755_v39 }
 0x37e   :  { %v4780_v52 = vpop.f32.mrf.mxu1 }
 0x37f   :  { %v4781_v57 = vadd.f32 %v4780_v52, %v4768_v56 }
 0x380   :  { %v4769_v58 = vpop.f32.mrf.mxu0 }
 0x381   :  { %v4794_v22 = vadd.f32 %v4793_v45, %v4781_v57 }
 0x383   :  { %v4804_v31 = vsub.f32 0.0, %v4794_v22 }
 0x385   :  { %v4819_v41 = vmul.f32 1.442695, %v4804_v31 }
 0x386   :  { %v4782_v27 = vpop.f32.mrf.mxu1 }
 0x387   :  { %7843 = vpow2.f32 %v4819_v41 }
 0x388   :  { %7845 = vrcp.f32 %v4827_v34 }
 0x38d   :  { %v7844_v7 = vpop.eup %7843 }
 0x38e   :  { %v4828_v17 = vadd.f32 1.0, %v7844_v7  ;;  %v7846_v2 = vpop.eup %7845 }
 0x38f   :  { %v4843_v3 = vmin.f32 %v7846_v2, 1.0 }
 0x390   :  { %7847 = vrcp.f32 %v4828_v17 }
 0x391   :  { %v4857_v5 = vrot.slane %v4843_v3, 4 }
 0x396   :  { %v7848_v59 = vpop.eup %7847 }
 0x397   :  { %v4844_v26 = vmin.f32 %v7848_v59, 1.0 }
 0x399   :  { %v4858_v6 = vrot.slane %v4844_v26, 2 }
 0x39b   :  { %v4865_v0 = vsel %vm4860_vm11, %v4857_v5, %v4858_v6 }
 0x39c   :  { %v4866_v9 = vsel %vm4862_vm12, %v9099_v49, %v4865_v0 }
 0x39d   :  { %4875 = vst.msk [vmem:[#allocation13 + $0x8] sm:$0xff] %vm4874_vm1, %v4866_v9 }
 0x39e   :  { %4886 = dma.vmem_to_hbm [thread:$0]  %s4882_s23, 256, %s4884_s25, [#allocation4]  }
 0x39f   :  { %8027 = dma.done.wait [#allocation4], 256  }
 0x3a0   :  { %8028 = vsyncadd [#allocation4], 4294967040 }
 0x3a1   :  { %4891 = vsyncpa [#allocation3], 1 }
 0x3a2   :  { %4892 = vsyncpa [#allocation6], 1 }
 0x3a3   :  { %4893 = vsyncpa [#allocation9], 1 }
 0x3a4   :  { %4894 = vsyncpa [#allocation12], 1 }
 0x3a5   :  { %4895 = vsyncpa [#allocation4], 1 }

</bundles_post_ra>
